<compile_context>
chip_gen: v7x
topology: tpu7x:2x2x1
jax: 0.10.0
libtpu: 0.0.40
codegen_flags: <defaults>
</compile_context>

<pallas_src>
import jax
import jax.numpy as jnp
import numpy as np
from jax.experimental import pallas as pl
from jax.experimental.pallas import tpu as pltpu

F32 = jnp.float32
BF16 = jnp.bfloat16


def _gru_step_fused(xg, h, whh_f, bhh_f, hdim):
    """One GRU step, gate-fused weights, PyTorch gate order (r, z, n).
    xg: (M, 3H) f32 = W_i* x + b_i*.  whh_f: (H, 3H) bf16, bhh_f: (1, 3H) f32.
    The matmul uses bf16 operands with f32 accumulation; gate math stays f32."""
    hg = jnp.dot(h.astype(whh_f.dtype), whh_f, preferred_element_type=F32) + bhh_f
    r = jax.nn.sigmoid(xg[:, 0 * hdim:1 * hdim] + hg[:, 0 * hdim:1 * hdim])
    z = jax.nn.sigmoid(xg[:, 1 * hdim:2 * hdim] + hg[:, 1 * hdim:2 * hdim])
    n = jnp.tanh(xg[:, 2 * hdim:3 * hdim] + r * hg[:, 2 * hdim:3 * hdim])
    return (1.0 - z) * n + z * h


def _krnn_local_kernel(xflat_ref, wmix_ref,
                       ewih_ref, ewhh_ref, ebih_ref, ebhh_ref,
                       dwih_ref, dwhh_ref, dbih_ref, dbhh_ref,
                       lw_ref, lb_ref,
                       xloc_ref, w1_ref, b1_ref, w3_ref, b3_ref, w2_ref, b2_ref,
                       out_ref, xg_scr):
    c = pl.program_id(0)
    t_out, m = out_ref.shape
    tin_m, _ = xflat_ref.shape
    t_in = tin_m // m
    hdim = ewhh_ref.shape[1]

    # ---- grid step 0: initialize the resident (t_out, M) accumulator with the local
    # ---- per-node MLP output (fuses local_linear_model and the final out1+out2 add).
    @pl.when(c == 0)
    def _init_with_local():
        n_nodes, bf, _ = xloc_ref.shape
        fd_l = w2_ref.shape[1]
        b = bf // fd_l
        rows = []
        for n in range(n_nodes):          # static unrolled; tiny f32 per-node MLPs
            xs = xloc_ref[n]                                                # (B*F, T_in)
            h1 = jnp.maximum(
                jnp.dot(xs, w1_ref[n], preferred_element_type=F32) + b1_ref[n], 0.0)
            h2 = jnp.dot(h1, w3_ref[n], preferred_element_type=F32) + b3_ref[n]
            h3 = h2.reshape(b, fd_l, t_out)                                 # (B, F, t_out)
            acc = jnp.sum(h3 * w2_ref[n][None, :, :], axis=1) + b2_ref[n]   # (B, t_out)
            rows.append(jnp.maximum(acc, 0.0))
        local_mt = jnp.concatenate(rows, axis=0)       # (M, t_out), node-major rows
        out_ref[...] = local_mt.T                      # one lane-dense (t_out, M) store

    # ---- global GRU component c (weights arrive as per-component (1, ...) blocks) ----
    ewhh = ewhh_ref[0]                 # (H, 3H) bf16
    ebih = ebih_ref[0]                 # (1, 3H) f32
    ebhh = ebhh_ref[0]
    dwih = dwih_ref[0]                 # (1, 3H) f32 (element-wise path)
    dwhh = dwhh_ref[0]                 # (H, 3H) bf16
    dbih = dbih_ref[0]
    dbhh = dbhh_ref[0]
    lw_row = lw_ref[0]                 # (1, H)
    lb = lb_ref[0]                     # (1, 1)
    w_row = wmix_ref[0]                # (1, M) softmax mixture weight of component c

    # Encoder input projection hoisted out of the recurrence: one big matmul, result
    # parked in VMEM scratch (bounds live ranges; recurrence reads per-step slices).
    ewih = ewih_ref[0].astype(BF16)    # (F, 3H)
    xg_scr[...] = jnp.dot(xflat_ref[...].astype(BF16), ewih,
                          preferred_element_type=F32) + ebih

    h = jnp.zeros((m, hdim), dtype=F32)
    for t in range(t_in):              # static loop; only h is carried across steps
        h = _gru_step_fused(xg_scr[t * m:(t + 1) * m, :], h, ewhh, ebhh, hdim)

    # Autoregressive GRUCell decoder; accumulate w_c * value directly into out_ref rows.
    last = xflat_ref[(t_in - 1) * m:t_in * m, 0:1]        # (M, 1) feature-0, last step
    dh = h
    for t in range(t_out):
        xg = last * dwih + dbih                            # (M,1)*(1,3H) -> (M,3H), VPU
        dh = _gru_step_fused(xg, dh, dwhh, dbhh, hdim)
        # output projection on the serial chain: VPU mul + lane reduce (no 1-wide MXU op)
        val = jnp.sum(dh * lw_row, axis=-1, keepdims=True) + lb            # (M, 1)
        out_ref[t:t + 1, :] = out_ref[t:t + 1, :] + w_row * val.T          # lane-dense row
        last = val                     # .detach() is gradient-only -> no-op here


def prepare_params(params):
    """One-time weight prep (hoisted out of the per-call path): gate fusion,
    bf16 cast of MXU operands, mixture softmax, layout transposes."""
    gp, lp = params["glob"], params["loc"]

    def fuse_gates(w, dtype=F32):      # (C, 3, A, H) -> (C, A, 3H), gate order r|z|n
        c, g, a, h = w.shape
        return jnp.transpose(w, (0, 2, 1, 3)).reshape(c, a, g * h).astype(dtype)

    glob = {
        "ewih_f": fuse_gates(gp["ewih"]),          # f32 array; cast to bf16 in-kernel
        "ewhh_f": fuse_gates(gp["ewhh"], BF16),    # recurrent MXU operand
        "ebih_f": fuse_gates(gp["ebih"]),
        "ebhh_f": fuse_gates(gp["ebhh"]),
        "dwih_f": fuse_gates(gp["dwih"]),          # used element-wise -> keep f32
        "dwhh_f": fuse_gates(gp["dwhh"], BF16),
        "dbih_f": fuse_gates(gp["dbih"]),
        "dbhh_f": fuse_gates(gp["dbhh"]),
        "lw_row": jnp.transpose(gp["lw"], (0, 2, 1)),                            # (C,1,H)
        "lb": gp["lb"],                                                          # (C,1,1)
        "wsm_t": jnp.transpose(jax.nn.softmax(gp["embed"], axis=-1), (1, 0)),    # (C,N)
    }
    return {"glob": glob, "loc": lp}


def krnn_local_forward(A, X, prep, t_out):
    del A                              # deprecated in the pure-TS model (unused)
    gp, lp = prep["glob"], prep["loc"]
    B, N, T_in, Fd = X.shape
    M = N * B                          # kernel-internal node-major ordering: m = n*B + b
    C = gp["ewhh_f"].shape[0]
    H = gp["ewhh_f"].shape[1]

    # Wrapper-side layout plumbing (free XLA work; avoids any in-kernel input reshape).
    x_flat = jnp.transpose(X, (2, 1, 0, 3)).reshape(T_in * M, Fd)    # row = t*M + n*B + b
    x_loc = jnp.transpose(X, (1, 0, 3, 2)).reshape(N, B * Fd, T_in)  # torch row order b*F+f
    w_mix = jnp.repeat(gp["wsm_t"], B, axis=1).reshape(C, 1, M)      # w[c, n*B + b]

    def const(shape):                  # resident: constant block index across the C grid
        return pl.BlockSpec(shape, lambda c: (0,) * len(shape))

    def percomp(shape):                # per-component block, pipelined over the C grid
        return pl.BlockSpec(shape, lambda c: (c,) + (0,) * (len(shape) - 1))

    out = pl.pallas_call(
        _krnn_local_kernel,
        out_shape=jax.ShapeDtypeStruct((t_out, M), F32),
        grid_spec=pltpu.PrefetchScalarGridSpec(
            num_scalar_prefetch=0,
            grid=(C,),
            in_specs=[
                const((T_in * M, Fd)),          # x_flat (node-major, t-major rows)
                percomp((1, 1, M)),             # mixture weights
                percomp((1, Fd, 3 * H)),        # ewih
                percomp((1, H, 3 * H)),         # ewhh (bf16)
                percomp((1, 1, 3 * H)),         # ebih
                percomp((1, 1, 3 * H)),         # ebhh
                percomp((1, 1, 3 * H)),         # dwih
                percomp((1, H, 3 * H)),         # dwhh (bf16)
                percomp((1, 1, 3 * H)),         # dbih
                percomp((1, 1, 3 * H)),         # dbhh
                percomp((1, 1, H)),             # lw
                percomp((1, 1, 1)),             # lb
                const((N, B * Fd, T_in)),       # x_loc
                const((N, T_in, 2 * T_in)),     # w1
                const((N, 1, 2 * T_in)),        # b1
                const((N, 2 * T_in, t_out)),    # w3
                const((N, 1, t_out)),           # b3
                const((N, Fd, 1)),              # w2
                const((N, 1, 1)),               # b2
            ],
            out_specs=pl.BlockSpec((t_out, M), lambda c: (0, 0)),
            scratch_shapes=[pltpu.VMEM((T_in * M, 3 * H), F32)],
        ),
        compiler_params=pltpu.CompilerParams(
            dimension_semantics=("arbitrary",)),   # C is a reduction/accumulation axis
    )(x_flat, w_mix,
      gp["ewih_f"], gp["ewhh_f"], gp["ebih_f"], gp["ebhh_f"],
      gp["dwih_f"], gp["dwhh_f"], gp["dbih_f"], gp["dbhh_f"],
      gp["lw_row"], gp["lb"],
      x_loc, lp["w1"], lp["b1"], lp["w3"], lp["b3"], lp["w2"], lp["b2"])

    # (t_out, M with m = n*B + b) -> (B, N, t_out); pure layout plumbing in XLA.
    return jnp.transpose(out.reshape(t_out, N, B), (2, 1, 0))


# ---------------- pure-JAX reference (mirrors the PyTorch forward, unfused f32) ----------------
def _gru_step_ref(x_gates, h, whh, bhh):
    hr = h @ whh[0] + bhh[0]
    hz = h @ whh[1] + bhh[1]
    hn = h @ whh[2] + bhh[2]
    r = jax.nn.sigmoid(x_gates[0] + hr)
    z = jax.nn.sigmoid(x_gates[1] + hz)
    n = jnp.tanh(x_gates[2] + r * hn)
    return (1.0 - z) * n + z * h


def krnn_local_reference(X, params, t_out):
    B, N, T_in, Fd = X.shape
    M = B * N
    gp, lp = params["glob"], params["loc"]
    C = gp["ewih"].shape[0]
    H = gp["ewhh"].shape[-1]
    x_seq = jnp.transpose(X.reshape(M, T_in, Fd), (1, 0, 2))
    comps = []
    for c in range(C):
        ewih, ewhh, ebih, ebhh = (gp["ewih"][c], gp["ewhh"][c],
                                  gp["ebih"][c], gp["ebhh"][c])
        dwih, dwhh, dbih, dbhh = (gp["dwih"][c], gp["dwhh"][c],
                                  gp["dbih"][c], gp["dbhh"][c])
        lw, lb = gp["lw"][c], gp["lb"][c]
        h = jnp.zeros((M, H), F32)
        for t in range(T_in):
            xg = tuple(x_seq[t] @ ewih[g] + ebih[g] for g in range(3))
            h = _gru_step_ref(xg, h, ewhh, ebhh)
        last = x_seq[-1][:, 0:1]
        dh = h
        cols = []
        for _ in range(t_out):
            xg = tuple(last * dwih[g] + dbih[g] for g in range(3))
            dh = _gru_step_ref(xg, dh, dwhh, dbhh)
            val = dh @ lw + lb
            cols.append(val)
            last = val
        comps.append(jnp.concatenate(cols, -1))                  # (M, T_out)
    out_comps = jnp.stack(comps, axis=-1)                        # (M, T_out, C)
    wsm = jax.nn.softmax(gp["embed"], -1)                        # (N, C)
    w_rows = jnp.tile(wsm, (B, 1))                               # (M, C), m = b*N + n
    out1 = jnp.einsum('mtc,mc->mt', out_comps, w_rows).reshape(B, N, t_out)

    outs = []
    for n in range(N):
        xn = jnp.transpose(X[:, n], (0, 2, 1)).reshape(B * Fd, T_in)
        h = jnp.maximum(xn @ lp["w1"][n] + lp["b1"][n], 0.0)
        h = h @ lp["w3"][n] + lp["b3"][n]
        h3 = h.reshape(B, Fd, t_out)
        acc = jnp.sum(h3 * lp["w2"][n][None], axis=1)
        outs.append(jnp.maximum(acc + lp["b2"][n], 0.0))
    out2 = jnp.stack(outs, axis=1)
    return out1 + out2


# ---------------- deterministic parameter init ----------------
def init_params(key, N, Fd, T_in, T_out, H=64, C=10):
    keys = jax.random.split(key, 17)

    def u(kk, shape, scale):
        return jax.random.uniform(kk, shape, F32, -scale, scale)

    kh = 1.0 / float(np.sqrt(H))
    gp = {
        "ewih": u(keys[0], (C, 3, Fd, H), kh),
        "ewhh": u(keys[1], (C, 3, H, H), kh),
        "ebih": u(keys[2], (C, 3, 1, H), kh),
        "ebhh": u(keys[3], (C, 3, 1, H), kh),
        "dwih": u(keys[4], (C, 3, 1, H), kh),
        "dwhh": u(keys[5], (C, 3, H, H), kh),
        "dbih": u(keys[6], (C, 3, 1, H), kh),
        "dbhh": u(keys[7], (C, 3, 1, H), kh),
        "lw":   u(keys[8], (C, H, 1), kh),
        "lb":   u(keys[9], (C, 1, 1), kh),
        "embed": jax.random.normal(keys[10], (N, C), F32),
    }
    k1 = 1.0 / float(np.sqrt(T_in))
    k3 = 1.0 / float(np.sqrt(2 * T_in))
    k2 = 1.0 / float(np.sqrt(Fd))
    lp = {
        "w1": u(keys[11], (N, T_in, 2 * T_in), k1),
        "b1": u(keys[12], (N, 1, 2 * T_in), k1),
        "w3": u(keys[13], (N, 2 * T_in, T_out), k3),
        "b3": u(keys[14], (N, 1, T_out), k3),
        "w2": u(keys[15], (N, Fd, 1), k2),
        "b2": u(keys[16], (N, 1, 1), k2),
    }
    return {"glob": gp, "loc": lp}


if __name__ == "__main__":
    B, N, T_in, T_out, Fd, H, C = 2, 4, 8, 4, 4, 64, 10
    key = jax.random.PRNGKey(0)
    kx, kp = jax.random.split(key)
    X = jax.random.normal(kx, (B, N, T_in, Fd), F32)
    A = jnp.eye(N, dtype=F32)          # deprecated arg in the PyTorch model; unused
    params = init_params(kp, N, Fd, T_in, T_out, H, C)
    prep = prepare_params(params)      # one-time weight prep, hoisted out of forward

    fwd = jax.jit(krnn_local_forward, static_argnums=(3,))
    out = jax.block_until_ready(fwd(A, X, prep, T_out))
    assert out.shape == (B, N, T_out)

    ref = krnn_local_reference(X, params, T_out)
    # GRU matmuls run with bf16 operands (f32 accumulation) per the perf review;
    # the reference is pure f32, hence a slightly loosened tolerance.
    np.testing.assert_allclose(np.asarray(out), np.asarray(ref),
                               rtol=2e-2, atol=2e-2)
    print("KERNEL_OK")
</pallas_src>

<mosaic_0001>
module attributes {stable_mosaic.version = 11 : i64} {
  func.func @_krnn_local_kernel(%arg0: i32, %arg1: memref<64x4xf32, #tpu.memory_space<vmem>>, %arg2: memref<1x1x8xf32, #tpu.memory_space<vmem>>, %arg3: memref<1x4x192xf32, #tpu.memory_space<vmem>>, %arg4: memref<1x64x192xbf16, #tpu.memory_space<vmem>>, %arg5: memref<1x1x192xf32, #tpu.memory_space<vmem>>, %arg6: memref<1x1x192xf32, #tpu.memory_space<vmem>>, %arg7: memref<1x1x192xf32, #tpu.memory_space<vmem>>, %arg8: memref<1x64x192xbf16, #tpu.memory_space<vmem>>, %arg9: memref<1x1x192xf32, #tpu.memory_space<vmem>>, %arg10: memref<1x1x192xf32, #tpu.memory_space<vmem>>, %arg11: memref<1x1x64xf32, #tpu.memory_space<vmem>>, %arg12: memref<1x1x1xf32, #tpu.memory_space<vmem>>, %arg13: memref<4x8x8xf32, #tpu.memory_space<vmem>>, %arg14: memref<4x8x16xf32, #tpu.memory_space<vmem>>, %arg15: memref<4x1x16xf32, #tpu.memory_space<vmem>>, %arg16: memref<4x16x4xf32, #tpu.memory_space<vmem>>, %arg17: memref<4x1x4xf32, #tpu.memory_space<vmem>>, %arg18: memref<4x4x1xf32, #tpu.memory_space<vmem>>, %arg19: memref<4x1x1xf32, #tpu.memory_space<vmem>>, %arg20: memref<4x8xf32, #tpu.memory_space<vmem>>, %arg21: memref<64x192xf32, #tpu.memory_space<vmem>>) attributes {dimension_semantics = [#tpu.dimension_semantics<arbitrary>], iteration_bounds = array<i64: 10>, scalar_prefetch = 0 : i64, scratch_operands = 1 : i64, tpu.core_type = #tpu.core_type<tc>, window_params = [{pipeline_mode = #tpu.pipeline_mode<synchronous>, transform_indices = @transform_0, window_bounds = array<i64: 64, 4>}, {transform_indices = @transform_1, window_bounds = array<i64: 1, 1, 8>}, {transform_indices = @transform_2, window_bounds = array<i64: 1, 4, 192>}, {transform_indices = @transform_3, window_bounds = array<i64: 1, 64, 192>}, {transform_indices = @transform_4, window_bounds = array<i64: 1, 1, 192>}, {transform_indices = @transform_5, window_bounds = array<i64: 1, 1, 192>}, {transform_indices = @transform_6, window_bounds = array<i64: 1, 1, 192>}, {transform_indices = @transform_7, window_bounds = array<i64: 1, 64, 192>}, {transform_indices = @transform_8, window_bounds = array<i64: 1, 1, 192>}, {transform_indices = @transform_9, window_bounds = array<i64: 1, 1, 192>}, {transform_indices = @transform_10, window_bounds = array<i64: 1, 1, 64>}, {transform_indices = @transform_11, window_bounds = array<i64: 1, 1, 1>}, {pipeline_mode = #tpu.pipeline_mode<synchronous>, transform_indices = @transform_12, window_bounds = array<i64: 4, 8, 8>}, {pipeline_mode = #tpu.pipeline_mode<synchronous>, transform_indices = @transform_13, window_bounds = array<i64: 4, 8, 16>}, {pipeline_mode = #tpu.pipeline_mode<synchronous>, transform_indices = @transform_14, window_bounds = array<i64: 4, 1, 16>}, {pipeline_mode = #tpu.pipeline_mode<synchronous>, transform_indices = @transform_15, window_bounds = array<i64: 4, 16, 4>}, {pipeline_mode = #tpu.pipeline_mode<synchronous>, transform_indices = @transform_16, window_bounds = array<i64: 4, 1, 4>}, {pipeline_mode = #tpu.pipeline_mode<synchronous>, transform_indices = @transform_17, window_bounds = array<i64: 4, 4, 1>}, {pipeline_mode = #tpu.pipeline_mode<synchronous>, transform_indices = @transform_18, window_bounds = array<i64: 4, 1, 1>}, {pipeline_mode = #tpu.pipeline_mode<synchronous>, transform_indices = @transform_19, window_bounds = array<i64: 4, 8>}]} {
    %c0_i32 = arith.constant 0 : i32
    %0 = arith.cmpi eq, %arg0, %c0_i32 : i32
    %1 = arith.extui %0 : i1 to i32
    %c0_i32_0 = arith.constant 0 : i32
    %2 = arith.cmpi ne, %1, %c0_i32_0 : i32
    scf.if %2 {
      %c0_114 = arith.constant 0 : index
      %c0_115 = arith.constant 0 : index
      %c0_116 = arith.constant 0 : index
      %466 = vector.load %arg13[%c0_114, %c0_115, %c0_116] : memref<4x8x8xf32, #tpu.memory_space<vmem>>, vector<1x8x8xf32>
      %467 = vector.shape_cast %466 : vector<1x8x8xf32> to vector<8x8xf32>
      %c0_117 = arith.constant 0 : index
      %c0_118 = arith.constant 0 : index
      %c0_119 = arith.constant 0 : index
      %468 = vector.load %arg14[%c0_117, %c0_118, %c0_119] : memref<4x8x16xf32, #tpu.memory_space<vmem>>, vector<1x8x16xf32>
      %469 = vector.shape_cast %468 : vector<1x8x16xf32> to vector<8x16xf32>
      %cst_120 = arith.constant dense<0.000000e+00> : vector<8x16xf32>
      %470 = tpu.matmul %467, %469, %cst_120 {dimension_numbers = #tpu.dot_dimension_numbers<[1], [0], [0], [1], [0, 0, 1, 1], [], []>} : vector<8x8xf32>, vector<8x16xf32>, vector<8x16xf32> -> vector<8x16xf32>
      %c0_121 = arith.constant 0 : index
      %c0_122 = arith.constant 0 : index
      %c0_123 = arith.constant 0 : index
      %471 = vector.load %arg15[%c0_121, %c0_122, %c0_123] : memref<4x1x16xf32, #tpu.memory_space<vmem>>, vector<1x1x16xf32>
      %472 = vector.shape_cast %471 : vector<1x1x16xf32> to vector<1x16xf32>
      %473 = vector.broadcast %472 : vector<1x16xf32> to vector<8x16xf32>
      %474 = arith.addf %470, %473 : vector<8x16xf32>
      %cst_124 = arith.constant 0.000000e+00 : f32
      %475 = vector.broadcast %cst_124 : f32 to vector<8x16xf32>
      %476 = arith.maximumf %474, %475 : vector<8x16xf32>
      %c0_125 = arith.constant 0 : index
      %c0_126 = arith.constant 0 : index
      %c0_127 = arith.constant 0 : index
      %477 = vector.load %arg16[%c0_125, %c0_126, %c0_127] : memref<4x16x4xf32, #tpu.memory_space<vmem>>, vector<1x16x4xf32>
      %478 = vector.shape_cast %477 : vector<1x16x4xf32> to vector<16x4xf32>
      %cst_128 = arith.constant dense<0.000000e+00> : vector<8x4xf32>
      %479 = tpu.matmul %476, %478, %cst_128 {dimension_numbers = #tpu.dot_dimension_numbers<[1], [0], [0], [1], [0, 0, 1, 1], [], []>} : vector<8x16xf32>, vector<16x4xf32>, vector<8x4xf32> -> vector<8x4xf32>
      %c0_129 = arith.constant 0 : index
      %c0_130 = arith.constant 0 : index
      %c0_131 = arith.constant 0 : index
      %480 = vector.load %arg17[%c0_129, %c0_130, %c0_131] : memref<4x1x4xf32, #tpu.memory_space<vmem>>, vector<1x1x4xf32>
      %481 = vector.shape_cast %480 : vector<1x1x4xf32> to vector<1x4xf32>
      %482 = vector.broadcast %481 : vector<1x4xf32> to vector<8x4xf32>
      %483 = arith.addf %479, %482 : vector<8x4xf32>
      %484 = vector.shape_cast %483 : vector<8x4xf32> to vector<2x4x4xf32>
      %c0_132 = arith.constant 0 : index
      %c0_133 = arith.constant 0 : index
      %c0_134 = arith.constant 0 : index
      %485 = vector.load %arg18[%c0_132, %c0_133, %c0_134] : memref<4x4x1xf32, #tpu.memory_space<vmem>>, vector<1x4x1xf32>
      %486 = vector.shape_cast %485 : vector<1x4x1xf32> to vector<4x1xf32>
      %487 = vector.shape_cast %486 : vector<4x1xf32> to vector<1x4x1xf32>
      %488 = vector.broadcast %487 : vector<1x4x1xf32> to vector<2x4x4xf32>
      %489 = arith.mulf %484, %488 : vector<2x4x4xf32>
      %cst_135 = arith.constant dense<0.000000e+00> : vector<2x4xf32>
      %490 = vector.multi_reduction <add>, %489, %cst_135 [1] : vector<2x4x4xf32> to vector<2x4xf32>
      %c0_136 = arith.constant 0 : index
      %c0_137 = arith.constant 0 : index
      %c0_138 = arith.constant 0 : index
      %491 = vector.load %arg19[%c0_136, %c0_137, %c0_138] : memref<4x1x1xf32, #tpu.memory_space<vmem>>, vector<1x1x1xf32>
      %492 = vector.shape_cast %491 : vector<1x1x1xf32> to vector<1x1xf32>
      %493 = vector.broadcast %492 : vector<1x1xf32> to vector<2x4xf32>
      %494 = arith.addf %490, %493 : vector<2x4xf32>
      %cst_139 = arith.constant 0.000000e+00 : f32
      %495 = vector.broadcast %cst_139 : f32 to vector<2x4xf32>
      %496 = arith.maximumf %494, %495 : vector<2x4xf32>
      %c1_140 = arith.constant 1 : index
      %c0_141 = arith.constant 0 : index
      %c0_142 = arith.constant 0 : index
      %497 = vector.load %arg13[%c1_140, %c0_141, %c0_142] : memref<4x8x8xf32, #tpu.memory_space<vmem>>, vector<1x8x8xf32>
      %498 = vector.shape_cast %497 : vector<1x8x8xf32> to vector<8x8xf32>
      %c1_143 = arith.constant 1 : index
      %c0_144 = arith.constant 0 : index
      %c0_145 = arith.constant 0 : index
      %499 = vector.load %arg14[%c1_143, %c0_144, %c0_145] : memref<4x8x16xf32, #tpu.memory_space<vmem>>, vector<1x8x16xf32>
      %500 = vector.shape_cast %499 : vector<1x8x16xf32> to vector<8x16xf32>
      %cst_146 = arith.constant dense<0.000000e+00> : vector<8x16xf32>
      %501 = tpu.matmul %498, %500, %cst_146 {dimension_numbers = #tpu.dot_dimension_numbers<[1], [0], [0], [1], [0, 0, 1, 1], [], []>} : vector<8x8xf32>, vector<8x16xf32>, vector<8x16xf32> -> vector<8x16xf32>
      %c1_147 = arith.constant 1 : index
      %c0_148 = arith.constant 0 : index
      %c0_149 = arith.constant 0 : index
      %502 = vector.load %arg15[%c1_147, %c0_148, %c0_149] : memref<4x1x16xf32, #tpu.memory_space<vmem>>, vector<1x1x16xf32>
      %503 = vector.shape_cast %502 : vector<1x1x16xf32> to vector<1x16xf32>
      %504 = vector.broadcast %503 : vector<1x16xf32> to vector<8x16xf32>
      %505 = arith.addf %501, %504 : vector<8x16xf32>
      %cst_150 = arith.constant 0.000000e+00 : f32
      %506 = vector.broadcast %cst_150 : f32 to vector<8x16xf32>
      %507 = arith.maximumf %505, %506 : vector<8x16xf32>
      %c1_151 = arith.constant 1 : index
      %c0_152 = arith.constant 0 : index
      %c0_153 = arith.constant 0 : index
      %508 = vector.load %arg16[%c1_151, %c0_152, %c0_153] : memref<4x16x4xf32, #tpu.memory_space<vmem>>, vector<1x16x4xf32>
      %509 = vector.shape_cast %508 : vector<1x16x4xf32> to vector<16x4xf32>
      %cst_154 = arith.constant dense<0.000000e+00> : vector<8x4xf32>
      %510 = tpu.matmul %507, %509, %cst_154 {dimension_numbers = #tpu.dot_dimension_numbers<[1], [0], [0], [1], [0, 0, 1, 1], [], []>} : vector<8x16xf32>, vector<16x4xf32>, vector<8x4xf32> -> vector<8x4xf32>
      %c1_155 = arith.constant 1 : index
      %c0_156 = arith.constant 0 : index
      %c0_157 = arith.constant 0 : index
      %511 = vector.load %arg17[%c1_155, %c0_156, %c0_157] : memref<4x1x4xf32, #tpu.memory_space<vmem>>, vector<1x1x4xf32>
      %512 = vector.shape_cast %511 : vector<1x1x4xf32> to vector<1x4xf32>
      %513 = vector.broadcast %512 : vector<1x4xf32> to vector<8x4xf32>
      %514 = arith.addf %510, %513 : vector<8x4xf32>
      %515 = vector.shape_cast %514 : vector<8x4xf32> to vector<2x4x4xf32>
      %c1_158 = arith.constant 1 : index
      %c0_159 = arith.constant 0 : index
      %c0_160 = arith.constant 0 : index
      %516 = vector.load %arg18[%c1_158, %c0_159, %c0_160] : memref<4x4x1xf32, #tpu.memory_space<vmem>>, vector<1x4x1xf32>
      %517 = vector.shape_cast %516 : vector<1x4x1xf32> to vector<4x1xf32>
      %518 = vector.shape_cast %517 : vector<4x1xf32> to vector<1x4x1xf32>
      %519 = vector.broadcast %518 : vector<1x4x1xf32> to vector<2x4x4xf32>
      %520 = arith.mulf %515, %519 : vector<2x4x4xf32>
      %cst_161 = arith.constant dense<0.000000e+00> : vector<2x4xf32>
      %521 = vector.multi_reduction <add>, %520, %cst_161 [1] : vector<2x4x4xf32> to vector<2x4xf32>
      %c1_162 = arith.constant 1 : index
      %c0_163 = arith.constant 0 : index
      %c0_164 = arith.constant 0 : index
      %522 = vector.load %arg19[%c1_162, %c0_163, %c0_164] : memref<4x1x1xf32, #tpu.memory_space<vmem>>, vector<1x1x1xf32>
      %523 = vector.shape_cast %522 : vector<1x1x1xf32> to vector<1x1xf32>
      %524 = vector.broadcast %523 : vector<1x1xf32> to vector<2x4xf32>
      %525 = arith.addf %521, %524 : vector<2x4xf32>
      %cst_165 = arith.constant 0.000000e+00 : f32
      %526 = vector.broadcast %cst_165 : f32 to vector<2x4xf32>
      %527 = arith.maximumf %525, %526 : vector<2x4xf32>
      %c2_166 = arith.constant 2 : index
      %c0_167 = arith.constant 0 : index
      %c0_168 = arith.constant 0 : index
      %528 = vector.load %arg13[%c2_166, %c0_167, %c0_168] : memref<4x8x8xf32, #tpu.memory_space<vmem>>, vector<1x8x8xf32>
      %529 = vector.shape_cast %528 : vector<1x8x8xf32> to vector<8x8xf32>
      %c2_169 = arith.constant 2 : index
      %c0_170 = arith.constant 0 : index
      %c0_171 = arith.constant 0 : index
      %530 = vector.load %arg14[%c2_169, %c0_170, %c0_171] : memref<4x8x16xf32, #tpu.memory_space<vmem>>, vector<1x8x16xf32>
      %531 = vector.shape_cast %530 : vector<1x8x16xf32> to vector<8x16xf32>
      %cst_172 = arith.constant dense<0.000000e+00> : vector<8x16xf32>
      %532 = tpu.matmul %529, %531, %cst_172 {dimension_numbers = #tpu.dot_dimension_numbers<[1], [0], [0], [1], [0, 0, 1, 1], [], []>} : vector<8x8xf32>, vector<8x16xf32>, vector<8x16xf32> -> vector<8x16xf32>
      %c2_173 = arith.constant 2 : index
      %c0_174 = arith.constant 0 : index
      %c0_175 = arith.constant 0 : index
      %533 = vector.load %arg15[%c2_173, %c0_174, %c0_175] : memref<4x1x16xf32, #tpu.memory_space<vmem>>, vector<1x1x16xf32>
      %534 = vector.shape_cast %533 : vector<1x1x16xf32> to vector<1x16xf32>
      %535 = vector.broadcast %534 : vector<1x16xf32> to vector<8x16xf32>
      %536 = arith.addf %532, %535 : vector<8x16xf32>
      %cst_176 = arith.constant 0.000000e+00 : f32
      %537 = vector.broadcast %cst_176 : f32 to vector<8x16xf32>
      %538 = arith.maximumf %536, %537 : vector<8x16xf32>
      %c2_177 = arith.constant 2 : index
      %c0_178 = arith.constant 0 : index
      %c0_179 = arith.constant 0 : index
      %539 = vector.load %arg16[%c2_177, %c0_178, %c0_179] : memref<4x16x4xf32, #tpu.memory_space<vmem>>, vector<1x16x4xf32>
      %540 = vector.shape_cast %539 : vector<1x16x4xf32> to vector<16x4xf32>
      %cst_180 = arith.constant dense<0.000000e+00> : vector<8x4xf32>
      %541 = tpu.matmul %538, %540, %cst_180 {dimension_numbers = #tpu.dot_dimension_numbers<[1], [0], [0], [1], [0, 0, 1, 1], [], []>} : vector<8x16xf32>, vector<16x4xf32>, vector<8x4xf32> -> vector<8x4xf32>
      %c2_181 = arith.constant 2 : index
      %c0_182 = arith.constant 0 : index
      %c0_183 = arith.constant 0 : index
      %542 = vector.load %arg17[%c2_181, %c0_182, %c0_183] : memref<4x1x4xf32, #tpu.memory_space<vmem>>, vector<1x1x4xf32>
      %543 = vector.shape_cast %542 : vector<1x1x4xf32> to vector<1x4xf32>
      %544 = vector.broadcast %543 : vector<1x4xf32> to vector<8x4xf32>
      %545 = arith.addf %541, %544 : vector<8x4xf32>
      %546 = vector.shape_cast %545 : vector<8x4xf32> to vector<2x4x4xf32>
      %c2_184 = arith.constant 2 : index
      %c0_185 = arith.constant 0 : index
      %c0_186 = arith.constant 0 : index
      %547 = vector.load %arg18[%c2_184, %c0_185, %c0_186] : memref<4x4x1xf32, #tpu.memory_space<vmem>>, vector<1x4x1xf32>
      %548 = vector.shape_cast %547 : vector<1x4x1xf32> to vector<4x1xf32>
      %549 = vector.shape_cast %548 : vector<4x1xf32> to vector<1x4x1xf32>
      %550 = vector.broadcast %549 : vector<1x4x1xf32> to vector<2x4x4xf32>
      %551 = arith.mulf %546, %550 : vector<2x4x4xf32>
      %cst_187 = arith.constant dense<0.000000e+00> : vector<2x4xf32>
      %552 = vector.multi_reduction <add>, %551, %cst_187 [1] : vector<2x4x4xf32> to vector<2x4xf32>
      %c2_188 = arith.constant 2 : index
      %c0_189 = arith.constant 0 : index
      %c0_190 = arith.constant 0 : index
      %553 = vector.load %arg19[%c2_188, %c0_189, %c0_190] : memref<4x1x1xf32, #tpu.memory_space<vmem>>, vector<1x1x1xf32>
      %554 = vector.shape_cast %553 : vector<1x1x1xf32> to vector<1x1xf32>
      %555 = vector.broadcast %554 : vector<1x1xf32> to vector<2x4xf32>
      %556 = arith.addf %552, %555 : vector<2x4xf32>
      %cst_191 = arith.constant 0.000000e+00 : f32
      %557 = vector.broadcast %cst_191 : f32 to vector<2x4xf32>
      %558 = arith.maximumf %556, %557 : vector<2x4xf32>
      %c3_192 = arith.constant 3 : index
      %c0_193 = arith.constant 0 : index
      %c0_194 = arith.constant 0 : index
      %559 = vector.load %arg13[%c3_192, %c0_193, %c0_194] : memref<4x8x8xf32, #tpu.memory_space<vmem>>, vector<1x8x8xf32>
      %560 = vector.shape_cast %559 : vector<1x8x8xf32> to vector<8x8xf32>
      %c3_195 = arith.constant 3 : index
      %c0_196 = arith.constant 0 : index
      %c0_197 = arith.constant 0 : index
      %561 = vector.load %arg14[%c3_195, %c0_196, %c0_197] : memref<4x8x16xf32, #tpu.memory_space<vmem>>, vector<1x8x16xf32>
      %562 = vector.shape_cast %561 : vector<1x8x16xf32> to vector<8x16xf32>
      %cst_198 = arith.constant dense<0.000000e+00> : vector<8x16xf32>
      %563 = tpu.matmul %560, %562, %cst_198 {dimension_numbers = #tpu.dot_dimension_numbers<[1], [0], [0], [1], [0, 0, 1, 1], [], []>} : vector<8x8xf32>, vector<8x16xf32>, vector<8x16xf32> -> vector<8x16xf32>
      %c3_199 = arith.constant 3 : index
      %c0_200 = arith.constant 0 : index
      %c0_201 = arith.constant 0 : index
      %564 = vector.load %arg15[%c3_199, %c0_200, %c0_201] : memref<4x1x16xf32, #tpu.memory_space<vmem>>, vector<1x1x16xf32>
      %565 = vector.shape_cast %564 : vector<1x1x16xf32> to vector<1x16xf32>
      %566 = vector.broadcast %565 : vector<1x16xf32> to vector<8x16xf32>
      %567 = arith.addf %563, %566 : vector<8x16xf32>
      %cst_202 = arith.constant 0.000000e+00 : f32
      %568 = vector.broadcast %cst_202 : f32 to vector<8x16xf32>
      %569 = arith.maximumf %567, %568 : vector<8x16xf32>
      %c3_203 = arith.constant 3 : index
      %c0_204 = arith.constant 0 : index
      %c0_205 = arith.constant 0 : index
      %570 = vector.load %arg16[%c3_203, %c0_204, %c0_205] : memref<4x16x4xf32, #tpu.memory_space<vmem>>, vector<1x16x4xf32>
      %571 = vector.shape_cast %570 : vector<1x16x4xf32> to vector<16x4xf32>
      %cst_206 = arith.constant dense<0.000000e+00> : vector<8x4xf32>
      %572 = tpu.matmul %569, %571, %cst_206 {dimension_numbers = #tpu.dot_dimension_numbers<[1], [0], [0], [1], [0, 0, 1, 1], [], []>} : vector<8x16xf32>, vector<16x4xf32>, vector<8x4xf32> -> vector<8x4xf32>
      %c3_207 = arith.constant 3 : index
      %c0_208 = arith.constant 0 : index
      %c0_209 = arith.constant 0 : index
      %573 = vector.load %arg17[%c3_207, %c0_208, %c0_209] : memref<4x1x4xf32, #tpu.memory_space<vmem>>, vector<1x1x4xf32>
      %574 = vector.shape_cast %573 : vector<1x1x4xf32> to vector<1x4xf32>
      %575 = vector.broadcast %574 : vector<1x4xf32> to vector<8x4xf32>
      %576 = arith.addf %572, %575 : vector<8x4xf32>
      %577 = vector.shape_cast %576 : vector<8x4xf32> to vector<2x4x4xf32>
      %c3_210 = arith.constant 3 : index
      %c0_211 = arith.constant 0 : index
      %c0_212 = arith.constant 0 : index
      %578 = vector.load %arg18[%c3_210, %c0_211, %c0_212] : memref<4x4x1xf32, #tpu.memory_space<vmem>>, vector<1x4x1xf32>
      %579 = vector.shape_cast %578 : vector<1x4x1xf32> to vector<4x1xf32>
      %580 = vector.shape_cast %579 : vector<4x1xf32> to vector<1x4x1xf32>
      %581 = vector.broadcast %580 : vector<1x4x1xf32> to vector<2x4x4xf32>
      %582 = arith.mulf %577, %581 : vector<2x4x4xf32>
      %cst_213 = arith.constant dense<0.000000e+00> : vector<2x4xf32>
      %583 = vector.multi_reduction <add>, %582, %cst_213 [1] : vector<2x4x4xf32> to vector<2x4xf32>
      %c3_214 = arith.constant 3 : index
      %c0_215 = arith.constant 0 : index
      %c0_216 = arith.constant 0 : index
      %584 = vector.load %arg19[%c3_214, %c0_215, %c0_216] : memref<4x1x1xf32, #tpu.memory_space<vmem>>, vector<1x1x1xf32>
      %585 = vector.shape_cast %584 : vector<1x1x1xf32> to vector<1x1xf32>
      %586 = vector.broadcast %585 : vector<1x1xf32> to vector<2x4xf32>
      %587 = arith.addf %583, %586 : vector<2x4xf32>
      %cst_217 = arith.constant 0.000000e+00 : f32
      %588 = vector.broadcast %cst_217 : f32 to vector<2x4xf32>
      %589 = arith.maximumf %587, %588 : vector<2x4xf32>
      %590 = tpu.concatenate %496, %527, %558, %589 in 0 : vector<2x4xf32>, vector<2x4xf32>, vector<2x4xf32>, vector<2x4xf32> -> vector<8x4xf32>
      %591 = tpu.transpose %590, [1, 0] : vector<8x4xf32> -> vector<4x8xf32>
      %c0_218 = arith.constant 0 : index
      %c0_219 = arith.constant 0 : index
      %592 = vector.load %arg20[%c0_218, %c0_219] : memref<4x8xf32, #tpu.memory_space<vmem>>, vector<4x8xf32>
      tpu.vector_store %arg20[%c0_218, %c0_219], %591 {strides = array<i32>} : memref<4x8xf32, #tpu.memory_space<vmem>>, vector<4x8xf32>,
    } else {
    }
    %c0 = arith.constant 0 : index
    %c0_1 = arith.constant 0 : index
    %c0_2 = arith.constant 0 : index
    %3 = vector.load %arg4[%c0, %c0_1, %c0_2] : memref<1x64x192xbf16, #tpu.memory_space<vmem>>, vector<1x64x192xbf16>
    %4 = vector.shape_cast %3 : vector<1x64x192xbf16> to vector<64x192xbf16>
    %c0_3 = arith.constant 0 : index
    %c0_4 = arith.constant 0 : index
    %c0_5 = arith.constant 0 : index
    %5 = vector.load %arg5[%c0_3, %c0_4, %c0_5] : memref<1x1x192xf32, #tpu.memory_space<vmem>>, vector<1x1x192xf32>
    %6 = vector.shape_cast %5 : vector<1x1x192xf32> to vector<1x192xf32>
    %c0_6 = arith.constant 0 : index
    %c0_7 = arith.constant 0 : index
    %c0_8 = arith.constant 0 : index
    %7 = vector.load %arg6[%c0_6, %c0_7, %c0_8] : memref<1x1x192xf32, #tpu.memory_space<vmem>>, vector<1x1x192xf32>
    %8 = vector.shape_cast %7 : vector<1x1x192xf32> to vector<1x192xf32>
    %c0_9 = arith.constant 0 : index
    %c0_10 = arith.constant 0 : index
    %c0_11 = arith.constant 0 : index
    %9 = vector.load %arg7[%c0_9, %c0_10, %c0_11] : memref<1x1x192xf32, #tpu.memory_space<vmem>>, vector<1x1x192xf32>
    %10 = vector.shape_cast %9 : vector<1x1x192xf32> to vector<1x192xf32>
    %c0_12 = arith.constant 0 : index
    %c0_13 = arith.constant 0 : index
    %c0_14 = arith.constant 0 : index
    %11 = vector.load %arg8[%c0_12, %c0_13, %c0_14] : memref<1x64x192xbf16, #tpu.memory_space<vmem>>, vector<1x64x192xbf16>
    %12 = vector.shape_cast %11 : vector<1x64x192xbf16> to vector<64x192xbf16>
    %c0_15 = arith.constant 0 : index
    %c0_16 = arith.constant 0 : index
    %c0_17 = arith.constant 0 : index
    %13 = vector.load %arg9[%c0_15, %c0_16, %c0_17] : memref<1x1x192xf32, #tpu.memory_space<vmem>>, vector<1x1x192xf32>
    %14 = vector.shape_cast %13 : vector<1x1x192xf32> to vector<1x192xf32>
    %c0_18 = arith.constant 0 : index
    %c0_19 = arith.constant 0 : index
    %c0_20 = arith.constant 0 : index
    %15 = vector.load %arg10[%c0_18, %c0_19, %c0_20] : memref<1x1x192xf32, #tpu.memory_space<vmem>>, vector<1x1x192xf32>
    %16 = vector.shape_cast %15 : vector<1x1x192xf32> to vector<1x192xf32>
    %c0_21 = arith.constant 0 : index
    %c0_22 = arith.constant 0 : index
    %c0_23 = arith.constant 0 : index
    %17 = vector.load %arg11[%c0_21, %c0_22, %c0_23] : memref<1x1x64xf32, #tpu.memory_space<vmem>>, vector<1x1x64xf32>
    %18 = vector.shape_cast %17 : vector<1x1x64xf32> to vector<1x64xf32>
    %c0_24 = arith.constant 0 : index
    %c0_25 = arith.constant 0 : index
    %c0_26 = arith.constant 0 : index
    %19 = vector.load %arg12[%c0_24, %c0_25, %c0_26] : memref<1x1x1xf32, #tpu.memory_space<vmem>>, vector<1x1x1xf32>
    %20 = vector.shape_cast %19 : vector<1x1x1xf32> to vector<1x1xf32>
    %c0_27 = arith.constant 0 : index
    %c0_28 = arith.constant 0 : index
    %c0_29 = arith.constant 0 : index
    %21 = vector.load %arg2[%c0_27, %c0_28, %c0_29] : memref<1x1x8xf32, #tpu.memory_space<vmem>>, vector<1x1x8xf32>
    %22 = vector.shape_cast %21 : vector<1x1x8xf32> to vector<1x8xf32>
    %c0_30 = arith.constant 0 : index
    %c0_31 = arith.constant 0 : index
    %c0_32 = arith.constant 0 : index
    %23 = vector.load %arg3[%c0_30, %c0_31, %c0_32] : memref<1x4x192xf32, #tpu.memory_space<vmem>>, vector<1x4x192xf32>
    %24 = vector.shape_cast %23 : vector<1x4x192xf32> to vector<4x192xf32>
    %25 = arith.truncf %24 : vector<4x192xf32> to vector<4x192xbf16>
    %c0_33 = arith.constant 0 : index
    %c0_34 = arith.constant 0 : index
    %26 = vector.load %arg1[%c0_33, %c0_34] : memref<64x4xf32, #tpu.memory_space<vmem>>, vector<64x4xf32>
    %27 = arith.truncf %26 : vector<64x4xf32> to vector<64x4xbf16>
    %cst = arith.constant dense<0.000000e+00> : vector<64x192xf32>
    %28 = tpu.matmul %27, %25, %cst {dimension_numbers = #tpu.dot_dimension_numbers<[1], [0], [0], [1], [0, 0, 1, 1], [], []>} : vector<64x4xbf16>, vector<4x192xbf16>, vector<64x192xf32> -> vector<64x192xf32>
    %29 = vector.broadcast %6 : vector<1x192xf32> to vector<64x192xf32>
    %30 = arith.addf %28, %29 : vector<64x192xf32>
    %c0_35 = arith.constant 0 : index
    %c0_36 = arith.constant 0 : index
    %31 = vector.load %arg21[%c0_35, %c0_36] : memref<64x192xf32, #tpu.memory_space<vmem>>, vector<64x192xf32>
    tpu.vector_store %arg21[%c0_35, %c0_36], %30 {strides = array<i32>} : memref<64x192xf32, #tpu.memory_space<vmem>>, vector<64x192xf32>,
    %cst_37 = arith.constant 0.000000e+00 : f32
    %32 = vector.broadcast %cst_37 : f32 to vector<8x64xf32>
    %c0_38 = arith.constant 0 : index
    %c0_39 = arith.constant 0 : index
    %33 = vector.load %arg21[%c0_38, %c0_39] : memref<64x192xf32, #tpu.memory_space<vmem>>, vector<8x192xf32>
    %34 = arith.truncf %32 : vector<8x64xf32> to vector<8x64xbf16>
    %cst_40 = arith.constant dense<0.000000e+00> : vector<8x192xf32>
    %35 = tpu.matmul %34, %4, %cst_40 {dimension_numbers = #tpu.dot_dimension_numbers<[1], [0], [0], [1], [0, 0, 1, 1], [], []>} : vector<8x64xbf16>, vector<64x192xbf16>, vector<8x192xf32> -> vector<8x192xf32>
    %36 = vector.broadcast %8 : vector<1x192xf32> to vector<8x192xf32>
    %37 = arith.addf %35, %36 : vector<8x192xf32>
    %38 = vector.extract_strided_slice %33 {offsets = [0, 0], sizes = [8, 64], strides = [1, 1]} : vector<8x192xf32> to vector<8x64xf32>
    %39 = vector.extract_strided_slice %37 {offsets = [0, 0], sizes = [8, 64], strides = [1, 1]} : vector<8x192xf32> to vector<8x64xf32>
    %40 = arith.addf %38, %39 : vector<8x64xf32>
    %41 = arith.negf %40 : vector<8x64xf32>
    %42 = math.exp %41 : vector<8x64xf32>
    %cst_41 = arith.constant 1.000000e+00 : f32
    %43 = vector.broadcast %cst_41 : f32 to vector<8x64xf32>
    %44 = arith.addf %43, %42 : vector<8x64xf32>
    %45 = arith.divf %43, %44 : vector<8x64xf32>
    %46 = vector.extract_strided_slice %33 {offsets = [0, 64], sizes = [8, 64], strides = [1, 1]} : vector<8x192xf32> to vector<8x64xf32>
    %47 = vector.extract_strided_slice %37 {offsets = [0, 64], sizes = [8, 64], strides = [1, 1]} : vector<8x192xf32> to vector<8x64xf32>
    %48 = arith.addf %46, %47 : vector<8x64xf32>
    %49 = arith.negf %48 : vector<8x64xf32>
    %50 = math.exp %49 : vector<8x64xf32>
    %cst_42 = arith.constant 1.000000e+00 : f32
    %51 = vector.broadcast %cst_42 : f32 to vector<8x64xf32>
    %52 = arith.addf %51, %50 : vector<8x64xf32>
    %53 = arith.divf %51, %52 : vector<8x64xf32>
    %54 = vector.extract_strided_slice %33 {offsets = [0, 128], sizes = [8, 64], strides = [1, 1]} : vector<8x192xf32> to vector<8x64xf32>
    %55 = vector.extract_strided_slice %37 {offsets = [0, 128], sizes = [8, 64], strides = [1, 1]} : vector<8x192xf32> to vector<8x64xf32>
    %56 = arith.mulf %45, %55 : vector<8x64xf32>
    %57 = arith.addf %54, %56 : vector<8x64xf32>
    %58 = math.tanh %57 : vector<8x64xf32>
    %cst_43 = arith.constant 1.000000e+00 : f32
    %59 = vector.broadcast %cst_43 : f32 to vector<8x64xf32>
    %60 = arith.subf %59, %53 : vector<8x64xf32>
    %61 = arith.mulf %60, %58 : vector<8x64xf32>
    %62 = arith.mulf %53, %32 : vector<8x64xf32>
    %63 = arith.addf %61, %62 : vector<8x64xf32>
    %c8 = arith.constant 8 : index
    %c0_44 = arith.constant 0 : index
    %64 = vector.load %arg21[%c8, %c0_44] : memref<64x192xf32, #tpu.memory_space<vmem>>, vector<8x192xf32>
    %65 = arith.truncf %63 : vector<8x64xf32> to vector<8x64xbf16>
    %cst_45 = arith.constant dense<0.000000e+00> : vector<8x192xf32>
    %66 = tpu.matmul %65, %4, %cst_45 {dimension_numbers = #tpu.dot_dimension_numbers<[1], [0], [0], [1], [0, 0, 1, 1], [], []>} : vector<8x64xbf16>, vector<64x192xbf16>, vector<8x192xf32> -> vector<8x192xf32>
    %67 = vector.broadcast %8 : vector<1x192xf32> to vector<8x192xf32>
    %68 = arith.addf %66, %67 : vector<8x192xf32>
    %69 = vector.extract_strided_slice %64 {offsets = [0, 0], sizes = [8, 64], strides = [1, 1]} : vector<8x192xf32> to vector<8x64xf32>
    %70 = vector.extract_strided_slice %68 {offsets = [0, 0], sizes = [8, 64], strides = [1, 1]} : vector<8x192xf32> to vector<8x64xf32>
    %71 = arith.addf %69, %70 : vector<8x64xf32>
    %72 = arith.negf %71 : vector<8x64xf32>
    %73 = math.exp %72 : vector<8x64xf32>
    %cst_46 = arith.constant 1.000000e+00 : f32
    %74 = vector.broadcast %cst_46 : f32 to vector<8x64xf32>
    %75 = arith.addf %74, %73 : vector<8x64xf32>
    %76 = arith.divf %74, %75 : vector<8x64xf32>
    %77 = vector.extract_strided_slice %64 {offsets = [0, 64], sizes = [8, 64], strides = [1, 1]} : vector<8x192xf32> to vector<8x64xf32>
    %78 = vector.extract_strided_slice %68 {offsets = [0, 64], sizes = [8, 64], strides = [1, 1]} : vector<8x192xf32> to vector<8x64xf32>
    %79 = arith.addf %77, %78 : vector<8x64xf32>
    %80 = arith.negf %79 : vector<8x64xf32>
    %81 = math.exp %80 : vector<8x64xf32>
    %cst_47 = arith.constant 1.000000e+00 : f32
    %82 = vector.broadcast %cst_47 : f32 to vector<8x64xf32>
    %83 = arith.addf %82, %81 : vector<8x64xf32>
    %84 = arith.divf %82, %83 : vector<8x64xf32>
    %85 = vector.extract_strided_slice %64 {offsets = [0, 128], sizes = [8, 64], strides = [1, 1]} : vector<8x192xf32> to vector<8x64xf32>
    %86 = vector.extract_strided_slice %68 {offsets = [0, 128], sizes = [8, 64], strides = [1, 1]} : vector<8x192xf32> to vector<8x64xf32>
    %87 = arith.mulf %76, %86 : vector<8x64xf32>
    %88 = arith.addf %85, %87 : vector<8x64xf32>
    %89 = math.tanh %88 : vector<8x64xf32>
    %cst_48 = arith.constant 1.000000e+00 : f32
    %90 = vector.broadcast %cst_48 : f32 to vector<8x64xf32>
    %91 = arith.subf %90, %84 : vector<8x64xf32>
    %92 = arith.mulf %91, %89 : vector<8x64xf32>
    %93 = arith.mulf %84, %63 : vector<8x64xf32>
    %94 = arith.addf %92, %93 : vector<8x64xf32>
    %c16 = arith.constant 16 : index
    %c0_49 = arith.constant 0 : index
    %95 = vector.load %arg21[%c16, %c0_49] : memref<64x192xf32, #tpu.memory_space<vmem>>, vector<8x192xf32>
    %96 = arith.truncf %94 : vector<8x64xf32> to vector<8x64xbf16>
    %cst_50 = arith.constant dense<0.000000e+00> : vector<8x192xf32>
    %97 = tpu.matmul %96, %4, %cst_50 {dimension_numbers = #tpu.dot_dimension_numbers<[1], [0], [0], [1], [0, 0, 1, 1], [], []>} : vector<8x64xbf16>, vector<64x192xbf16>, vector<8x192xf32> -> vector<8x192xf32>
    %98 = vector.broadcast %8 : vector<1x192xf32> to vector<8x192xf32>
    %99 = arith.addf %97, %98 : vector<8x192xf32>
    %100 = vector.extract_strided_slice %95 {offsets = [0, 0], sizes = [8, 64], strides = [1, 1]} : vector<8x192xf32> to vector<8x64xf32>
    %101 = vector.extract_strided_slice %99 {offsets = [0, 0], sizes = [8, 64], strides = [1, 1]} : vector<8x192xf32> to vector<8x64xf32>
    %102 = arith.addf %100, %101 : vector<8x64xf32>
    %103 = arith.negf %102 : vector<8x64xf32>
    %104 = math.exp %103 : vector<8x64xf32>
    %cst_51 = arith.constant 1.000000e+00 : f32
    %105 = vector.broadcast %cst_51 : f32 to vector<8x64xf32>
    %106 = arith.addf %105, %104 : vector<8x64xf32>
    %107 = arith.divf %105, %106 : vector<8x64xf32>
    %108 = vector.extract_strided_slice %95 {offsets = [0, 64], sizes = [8, 64], strides = [1, 1]} : vector<8x192xf32> to vector<8x64xf32>
    %109 = vector.extract_strided_slice %99 {offsets = [0, 64], sizes = [8, 64], strides = [1, 1]} : vector<8x192xf32> to vector<8x64xf32>
    %110 = arith.addf %108, %109 : vector<8x64xf32>
    %111 = arith.negf %110 : vector<8x64xf32>
    %112 = math.exp %111 : vector<8x64xf32>
    %cst_52 = arith.constant 1.000000e+00 : f32
    %113 = vector.broadcast %cst_52 : f32 to vector<8x64xf32>
    %114 = arith.addf %113, %112 : vector<8x64xf32>
    %115 = arith.divf %113, %114 : vector<8x64xf32>
    %116 = vector.extract_strided_slice %95 {offsets = [0, 128], sizes = [8, 64], strides = [1, 1]} : vector<8x192xf32> to vector<8x64xf32>
    %117 = vector.extract_strided_slice %99 {offsets = [0, 128], sizes = [8, 64], strides = [1, 1]} : vector<8x192xf32> to vector<8x64xf32>
    %118 = arith.mulf %107, %117 : vector<8x64xf32>
    %119 = arith.addf %116, %118 : vector<8x64xf32>
    %120 = math.tanh %119 : vector<8x64xf32>
    %cst_53 = arith.constant 1.000000e+00 : f32
    %121 = vector.broadcast %cst_53 : f32 to vector<8x64xf32>
    %122 = arith.subf %121, %115 : vector<8x64xf32>
    %123 = arith.mulf %122, %120 : vector<8x64xf32>
    %124 = arith.mulf %115, %94 : vector<8x64xf32>
    %125 = arith.addf %123, %124 : vector<8x64xf32>
    %c24 = arith.constant 24 : index
    %c0_54 = arith.constant 0 : index
    %126 = vector.load %arg21[%c24, %c0_54] : memref<64x192xf32, #tpu.memory_space<vmem>>, vector<8x192xf32>
    %127 = arith.truncf %125 : vector<8x64xf32> to vector<8x64xbf16>
    %cst_55 = arith.constant dense<0.000000e+00> : vector<8x192xf32>
    %128 = tpu.matmul %127, %4, %cst_55 {dimension_numbers = #tpu.dot_dimension_numbers<[1], [0], [0], [1], [0, 0, 1, 1], [], []>} : vector<8x64xbf16>, vector<64x192xbf16>, vector<8x192xf32> -> vector<8x192xf32>
    %129 = vector.broadcast %8 : vector<1x192xf32> to vector<8x192xf32>
    %130 = arith.addf %128, %129 : vector<8x192xf32>
    %131 = vector.extract_strided_slice %126 {offsets = [0, 0], sizes = [8, 64], strides = [1, 1]} : vector<8x192xf32> to vector<8x64xf32>
    %132 = vector.extract_strided_slice %130 {offsets = [0, 0], sizes = [8, 64], strides = [1, 1]} : vector<8x192xf32> to vector<8x64xf32>
    %133 = arith.addf %131, %132 : vector<8x64xf32>
    %134 = arith.negf %133 : vector<8x64xf32>
    %135 = math.exp %134 : vector<8x64xf32>
    %cst_56 = arith.constant 1.000000e+00 : f32
    %136 = vector.broadcast %cst_56 : f32 to vector<8x64xf32>
    %137 = arith.addf %136, %135 : vector<8x64xf32>
    %138 = arith.divf %136, %137 : vector<8x64xf32>
    %139 = vector.extract_strided_slice %126 {offsets = [0, 64], sizes = [8, 64], strides = [1, 1]} : vector<8x192xf32> to vector<8x64xf32>
    %140 = vector.extract_strided_slice %130 {offsets = [0, 64], sizes = [8, 64], strides = [1, 1]} : vector<8x192xf32> to vector<8x64xf32>
    %141 = arith.addf %139, %140 : vector<8x64xf32>
    %142 = arith.negf %141 : vector<8x64xf32>
    %143 = math.exp %142 : vector<8x64xf32>
    %cst_57 = arith.constant 1.000000e+00 : f32
    %144 = vector.broadcast %cst_57 : f32 to vector<8x64xf32>
    %145 = arith.addf %144, %143 : vector<8x64xf32>
    %146 = arith.divf %144, %145 : vector<8x64xf32>
    %147 = vector.extract_strided_slice %126 {offsets = [0, 128], sizes = [8, 64], strides = [1, 1]} : vector<8x192xf32> to vector<8x64xf32>
    %148 = vector.extract_strided_slice %130 {offsets = [0, 128], sizes = [8, 64], strides = [1, 1]} : vector<8x192xf32> to vector<8x64xf32>
    %149 = arith.mulf %138, %148 : vector<8x64xf32>
    %150 = arith.addf %147, %149 : vector<8x64xf32>
    %151 = math.tanh %150 : vector<8x64xf32>
    %cst_58 = arith.constant 1.000000e+00 : f32
    %152 = vector.broadcast %cst_58 : f32 to vector<8x64xf32>
    %153 = arith.subf %152, %146 : vector<8x64xf32>
    %154 = arith.mulf %153, %151 : vector<8x64xf32>
    %155 = arith.mulf %146, %125 : vector<8x64xf32>
    %156 = arith.addf %154, %155 : vector<8x64xf32>
    %c32 = arith.constant 32 : index
    %c0_59 = arith.constant 0 : index
    %157 = vector.load %arg21[%c32, %c0_59] : memref<64x192xf32, #tpu.memory_space<vmem>>, vector<8x192xf32>
    %158 = arith.truncf %156 : vector<8x64xf32> to vector<8x64xbf16>
    %cst_60 = arith.constant dense<0.000000e+00> : vector<8x192xf32>
    %159 = tpu.matmul %158, %4, %cst_60 {dimension_numbers = #tpu.dot_dimension_numbers<[1], [0], [0], [1], [0, 0, 1, 1], [], []>} : vector<8x64xbf16>, vector<64x192xbf16>, vector<8x192xf32> -> vector<8x192xf32>
    %160 = vector.broadcast %8 : vector<1x192xf32> to vector<8x192xf32>
    %161 = arith.addf %159, %160 : vector<8x192xf32>
    %162 = vector.extract_strided_slice %157 {offsets = [0, 0], sizes = [8, 64], strides = [1, 1]} : vector<8x192xf32> to vector<8x64xf32>
    %163 = vector.extract_strided_slice %161 {offsets = [0, 0], sizes = [8, 64], strides = [1, 1]} : vector<8x192xf32> to vector<8x64xf32>
    %164 = arith.addf %162, %163 : vector<8x64xf32>
    %165 = arith.negf %164 : vector<8x64xf32>
    %166 = math.exp %165 : vector<8x64xf32>
    %cst_61 = arith.constant 1.000000e+00 : f32
    %167 = vector.broadcast %cst_61 : f32 to vector<8x64xf32>
    %168 = arith.addf %167, %166 : vector<8x64xf32>
    %169 = arith.divf %167, %168 : vector<8x64xf32>
    %170 = vector.extract_strided_slice %157 {offsets = [0, 64], sizes = [8, 64], strides = [1, 1]} : vector<8x192xf32> to vector<8x64xf32>
    %171 = vector.extract_strided_slice %161 {offsets = [0, 64], sizes = [8, 64], strides = [1, 1]} : vector<8x192xf32> to vector<8x64xf32>
    %172 = arith.addf %170, %171 : vector<8x64xf32>
    %173 = arith.negf %172 : vector<8x64xf32>
    %174 = math.exp %173 : vector<8x64xf32>
    %cst_62 = arith.constant 1.000000e+00 : f32
    %175 = vector.broadcast %cst_62 : f32 to vector<8x64xf32>
    %176 = arith.addf %175, %174 : vector<8x64xf32>
    %177 = arith.divf %175, %176 : vector<8x64xf32>
    %178 = vector.extract_strided_slice %157 {offsets = [0, 128], sizes = [8, 64], strides = [1, 1]} : vector<8x192xf32> to vector<8x64xf32>
    %179 = vector.extract_strided_slice %161 {offsets = [0, 128], sizes = [8, 64], strides = [1, 1]} : vector<8x192xf32> to vector<8x64xf32>
    %180 = arith.mulf %169, %179 : vector<8x64xf32>
    %181 = arith.addf %178, %180 : vector<8x64xf32>
    %182 = math.tanh %181 : vector<8x64xf32>
    %cst_63 = arith.constant 1.000000e+00 : f32
    %183 = vector.broadcast %cst_63 : f32 to vector<8x64xf32>
    %184 = arith.subf %183, %177 : vector<8x64xf32>
    %185 = arith.mulf %184, %182 : vector<8x64xf32>
    %186 = arith.mulf %177, %156 : vector<8x64xf32>
    %187 = arith.addf %185, %186 : vector<8x64xf32>
    %c40 = arith.constant 40 : index
    %c0_64 = arith.constant 0 : index
    %188 = vector.load %arg21[%c40, %c0_64] : memref<64x192xf32, #tpu.memory_space<vmem>>, vector<8x192xf32>
    %189 = arith.truncf %187 : vector<8x64xf32> to vector<8x64xbf16>
    %cst_65 = arith.constant dense<0.000000e+00> : vector<8x192xf32>
    %190 = tpu.matmul %189, %4, %cst_65 {dimension_numbers = #tpu.dot_dimension_numbers<[1], [0], [0], [1], [0, 0, 1, 1], [], []>} : vector<8x64xbf16>, vector<64x192xbf16>, vector<8x192xf32> -> vector<8x192xf32>
    %191 = vector.broadcast %8 : vector<1x192xf32> to vector<8x192xf32>
    %192 = arith.addf %190, %191 : vector<8x192xf32>
    %193 = vector.extract_strided_slice %188 {offsets = [0, 0], sizes = [8, 64], strides = [1, 1]} : vector<8x192xf32> to vector<8x64xf32>
    %194 = vector.extract_strided_slice %192 {offsets = [0, 0], sizes = [8, 64], strides = [1, 1]} : vector<8x192xf32> to vector<8x64xf32>
    %195 = arith.addf %193, %194 : vector<8x64xf32>
    %196 = arith.negf %195 : vector<8x64xf32>
    %197 = math.exp %196 : vector<8x64xf32>
    %cst_66 = arith.constant 1.000000e+00 : f32
    %198 = vector.broadcast %cst_66 : f32 to vector<8x64xf32>
    %199 = arith.addf %198, %197 : vector<8x64xf32>
    %200 = arith.divf %198, %199 : vector<8x64xf32>
    %201 = vector.extract_strided_slice %188 {offsets = [0, 64], sizes = [8, 64], strides = [1, 1]} : vector<8x192xf32> to vector<8x64xf32>
    %202 = vector.extract_strided_slice %192 {offsets = [0, 64], sizes = [8, 64], strides = [1, 1]} : vector<8x192xf32> to vector<8x64xf32>
    %203 = arith.addf %201, %202 : vector<8x64xf32>
    %204 = arith.negf %203 : vector<8x64xf32>
    %205 = math.exp %204 : vector<8x64xf32>
    %cst_67 = arith.constant 1.000000e+00 : f32
    %206 = vector.broadcast %cst_67 : f32 to vector<8x64xf32>
    %207 = arith.addf %206, %205 : vector<8x64xf32>
    %208 = arith.divf %206, %207 : vector<8x64xf32>
    %209 = vector.extract_strided_slice %188 {offsets = [0, 128], sizes = [8, 64], strides = [1, 1]} : vector<8x192xf32> to vector<8x64xf32>
    %210 = vector.extract_strided_slice %192 {offsets = [0, 128], sizes = [8, 64], strides = [1, 1]} : vector<8x192xf32> to vector<8x64xf32>
    %211 = arith.mulf %200, %210 : vector<8x64xf32>
    %212 = arith.addf %209, %211 : vector<8x64xf32>
    %213 = math.tanh %212 : vector<8x64xf32>
    %cst_68 = arith.constant 1.000000e+00 : f32
    %214 = vector.broadcast %cst_68 : f32 to vector<8x64xf32>
    %215 = arith.subf %214, %208 : vector<8x64xf32>
    %216 = arith.mulf %215, %213 : vector<8x64xf32>
    %217 = arith.mulf %208, %187 : vector<8x64xf32>
    %218 = arith.addf %216, %217 : vector<8x64xf32>
    %c48 = arith.constant 48 : index
    %c0_69 = arith.constant 0 : index
    %219 = vector.load %arg21[%c48, %c0_69] : memref<64x192xf32, #tpu.memory_space<vmem>>, vector<8x192xf32>
    %220 = arith.truncf %218 : vector<8x64xf32> to vector<8x64xbf16>
    %cst_70 = arith.constant dense<0.000000e+00> : vector<8x192xf32>
    %221 = tpu.matmul %220, %4, %cst_70 {dimension_numbers = #tpu.dot_dimension_numbers<[1], [0], [0], [1], [0, 0, 1, 1], [], []>} : vector<8x64xbf16>, vector<64x192xbf16>, vector<8x192xf32> -> vector<8x192xf32>
    %222 = vector.broadcast %8 : vector<1x192xf32> to vector<8x192xf32>
    %223 = arith.addf %221, %222 : vector<8x192xf32>
    %224 = vector.extract_strided_slice %219 {offsets = [0, 0], sizes = [8, 64], strides = [1, 1]} : vector<8x192xf32> to vector<8x64xf32>
    %225 = vector.extract_strided_slice %223 {offsets = [0, 0], sizes = [8, 64], strides = [1, 1]} : vector<8x192xf32> to vector<8x64xf32>
    %226 = arith.addf %224, %225 : vector<8x64xf32>
    %227 = arith.negf %226 : vector<8x64xf32>
    %228 = math.exp %227 : vector<8x64xf32>
    %cst_71 = arith.constant 1.000000e+00 : f32
    %229 = vector.broadcast %cst_71 : f32 to vector<8x64xf32>
    %230 = arith.addf %229, %228 : vector<8x64xf32>
    %231 = arith.divf %229, %230 : vector<8x64xf32>
    %232 = vector.extract_strided_slice %219 {offsets = [0, 64], sizes = [8, 64], strides = [1, 1]} : vector<8x192xf32> to vector<8x64xf32>
    %233 = vector.extract_strided_slice %223 {offsets = [0, 64], sizes = [8, 64], strides = [1, 1]} : vector<8x192xf32> to vector<8x64xf32>
    %234 = arith.addf %232, %233 : vector<8x64xf32>
    %235 = arith.negf %234 : vector<8x64xf32>
    %236 = math.exp %235 : vector<8x64xf32>
    %cst_72 = arith.constant 1.000000e+00 : f32
    %237 = vector.broadcast %cst_72 : f32 to vector<8x64xf32>
    %238 = arith.addf %237, %236 : vector<8x64xf32>
    %239 = arith.divf %237, %238 : vector<8x64xf32>
    %240 = vector.extract_strided_slice %219 {offsets = [0, 128], sizes = [8, 64], strides = [1, 1]} : vector<8x192xf32> to vector<8x64xf32>
    %241 = vector.extract_strided_slice %223 {offsets = [0, 128], sizes = [8, 64], strides = [1, 1]} : vector<8x192xf32> to vector<8x64xf32>
    %242 = arith.mulf %231, %241 : vector<8x64xf32>
    %243 = arith.addf %240, %242 : vector<8x64xf32>
    %244 = math.tanh %243 : vector<8x64xf32>
    %cst_73 = arith.constant 1.000000e+00 : f32
    %245 = vector.broadcast %cst_73 : f32 to vector<8x64xf32>
    %246 = arith.subf %245, %239 : vector<8x64xf32>
    %247 = arith.mulf %246, %244 : vector<8x64xf32>
    %248 = arith.mulf %239, %218 : vector<8x64xf32>
    %249 = arith.addf %247, %248 : vector<8x64xf32>
    %c56 = arith.constant 56 : index
    %c0_74 = arith.constant 0 : index
    %250 = vector.load %arg21[%c56, %c0_74] : memref<64x192xf32, #tpu.memory_space<vmem>>, vector<8x192xf32>
    %251 = arith.truncf %249 : vector<8x64xf32> to vector<8x64xbf16>
    %cst_75 = arith.constant dense<0.000000e+00> : vector<8x192xf32>
    %252 = tpu.matmul %251, %4, %cst_75 {dimension_numbers = #tpu.dot_dimension_numbers<[1], [0], [0], [1], [0, 0, 1, 1], [], []>} : vector<8x64xbf16>, vector<64x192xbf16>, vector<8x192xf32> -> vector<8x192xf32>
    %253 = vector.broadcast %8 : vector<1x192xf32> to vector<8x192xf32>
    %254 = arith.addf %252, %253 : vector<8x192xf32>
    %255 = vector.extract_strided_slice %250 {offsets = [0, 0], sizes = [8, 64], strides = [1, 1]} : vector<8x192xf32> to vector<8x64xf32>
    %256 = vector.extract_strided_slice %254 {offsets = [0, 0], sizes = [8, 64], strides = [1, 1]} : vector<8x192xf32> to vector<8x64xf32>
    %257 = arith.addf %255, %256 : vector<8x64xf32>
    %258 = arith.negf %257 : vector<8x64xf32>
    %259 = math.exp %258 : vector<8x64xf32>
    %cst_76 = arith.constant 1.000000e+00 : f32
    %260 = vector.broadcast %cst_76 : f32 to vector<8x64xf32>
    %261 = arith.addf %260, %259 : vector<8x64xf32>
    %262 = arith.divf %260, %261 : vector<8x64xf32>
    %263 = vector.extract_strided_slice %250 {offsets = [0, 64], sizes = [8, 64], strides = [1, 1]} : vector<8x192xf32> to vector<8x64xf32>
    %264 = vector.extract_strided_slice %254 {offsets = [0, 64], sizes = [8, 64], strides = [1, 1]} : vector<8x192xf32> to vector<8x64xf32>
    %265 = arith.addf %263, %264 : vector<8x64xf32>
    %266 = arith.negf %265 : vector<8x64xf32>
    %267 = math.exp %266 : vector<8x64xf32>
    %cst_77 = arith.constant 1.000000e+00 : f32
    %268 = vector.broadcast %cst_77 : f32 to vector<8x64xf32>
    %269 = arith.addf %268, %267 : vector<8x64xf32>
    %270 = arith.divf %268, %269 : vector<8x64xf32>
    %271 = vector.extract_strided_slice %250 {offsets = [0, 128], sizes = [8, 64], strides = [1, 1]} : vector<8x192xf32> to vector<8x64xf32>
    %272 = vector.extract_strided_slice %254 {offsets = [0, 128], sizes = [8, 64], strides = [1, 1]} : vector<8x192xf32> to vector<8x64xf32>
    %273 = arith.mulf %262, %272 : vector<8x64xf32>
    %274 = arith.addf %271, %273 : vector<8x64xf32>
    %275 = math.tanh %274 : vector<8x64xf32>
    %cst_78 = arith.constant 1.000000e+00 : f32
    %276 = vector.broadcast %cst_78 : f32 to vector<8x64xf32>
    %277 = arith.subf %276, %270 : vector<8x64xf32>
    %278 = arith.mulf %277, %275 : vector<8x64xf32>
    %279 = arith.mulf %270, %249 : vector<8x64xf32>
    %280 = arith.addf %278, %279 : vector<8x64xf32>
    %c56_79 = arith.constant 56 : index
    %c0_80 = arith.constant 0 : index
    %281 = vector.load %arg1[%c56_79, %c0_80] : memref<64x4xf32, #tpu.memory_space<vmem>>, vector<8x1xf32>
    %282 = vector.broadcast %281 : vector<8x1xf32> to vector<8x192xf32>
    %283 = vector.broadcast %10 : vector<1x192xf32> to vector<8x192xf32>
    %284 = arith.mulf %282, %283 : vector<8x192xf32>
    %285 = vector.broadcast %14 : vector<1x192xf32> to vector<8x192xf32>
    %286 = arith.addf %284, %285 : vector<8x192xf32>
    %287 = arith.truncf %280 : vector<8x64xf32> to vector<8x64xbf16>
    %cst_81 = arith.constant dense<0.000000e+00> : vector<8x192xf32>
    %288 = tpu.matmul %287, %12, %cst_81 {dimension_numbers = #tpu.dot_dimension_numbers<[1], [0], [0], [1], [0, 0, 1, 1], [], []>} : vector<8x64xbf16>, vector<64x192xbf16>, vector<8x192xf32> -> vector<8x192xf32>
    %289 = vector.broadcast %16 : vector<1x192xf32> to vector<8x192xf32>
    %290 = arith.addf %288, %289 : vector<8x192xf32>
    %291 = vector.extract_strided_slice %286 {offsets = [0, 0], sizes = [8, 64], strides = [1, 1]} : vector<8x192xf32> to vector<8x64xf32>
    %292 = vector.extract_strided_slice %290 {offsets = [0, 0], sizes = [8, 64], strides = [1, 1]} : vector<8x192xf32> to vector<8x64xf32>
    %293 = arith.addf %291, %292 : vector<8x64xf32>
    %294 = arith.negf %293 : vector<8x64xf32>
    %295 = math.exp %294 : vector<8x64xf32>
    %cst_82 = arith.constant 1.000000e+00 : f32
    %296 = vector.broadcast %cst_82 : f32 to vector<8x64xf32>
    %297 = arith.addf %296, %295 : vector<8x64xf32>
    %298 = arith.divf %296, %297 : vector<8x64xf32>
    %299 = vector.extract_strided_slice %286 {offsets = [0, 64], sizes = [8, 64], strides = [1, 1]} : vector<8x192xf32> to vector<8x64xf32>
    %300 = vector.extract_strided_slice %290 {offsets = [0, 64], sizes = [8, 64], strides = [1, 1]} : vector<8x192xf32> to vector<8x64xf32>
    %301 = arith.addf %299, %300 : vector<8x64xf32>
    %302 = arith.negf %301 : vector<8x64xf32>
    %303 = math.exp %302 : vector<8x64xf32>
    %cst_83 = arith.constant 1.000000e+00 : f32
    %304 = vector.broadcast %cst_83 : f32 to vector<8x64xf32>
    %305 = arith.addf %304, %303 : vector<8x64xf32>
    %306 = arith.divf %304, %305 : vector<8x64xf32>
    %307 = vector.extract_strided_slice %286 {offsets = [0, 128], sizes = [8, 64], strides = [1, 1]} : vector<8x192xf32> to vector<8x64xf32>
    %308 = vector.extract_strided_slice %290 {offsets = [0, 128], sizes = [8, 64], strides = [1, 1]} : vector<8x192xf32> to vector<8x64xf32>
    %309 = arith.mulf %298, %308 : vector<8x64xf32>
    %310 = arith.addf %307, %309 : vector<8x64xf32>
    %311 = math.tanh %310 : vector<8x64xf32>
    %cst_84 = arith.constant 1.000000e+00 : f32
    %312 = vector.broadcast %cst_84 : f32 to vector<8x64xf32>
    %313 = arith.subf %312, %306 : vector<8x64xf32>
    %314 = arith.mulf %313, %311 : vector<8x64xf32>
    %315 = arith.mulf %306, %280 : vector<8x64xf32>
    %316 = arith.addf %314, %315 : vector<8x64xf32>
    %317 = vector.broadcast %18 : vector<1x64xf32> to vector<8x64xf32>
    %318 = arith.mulf %316, %317 : vector<8x64xf32>
    %cst_85 = arith.constant dense<0.000000e+00> : vector<8xf32>
    %319 = vector.multi_reduction <add>, %318, %cst_85 [1] : vector<8x64xf32> to vector<8xf32>
    %320 = vector.shape_cast %319 : vector<8xf32> to vector<8x1xf32>
    %321 = vector.broadcast %20 : vector<1x1xf32> to vector<8x1xf32>
    %322 = arith.addf %320, %321 : vector<8x1xf32>
    %c0_86 = arith.constant 0 : index
    %c0_87 = arith.constant 0 : index
    %323 = vector.load %arg20[%c0_86, %c0_87] : memref<4x8xf32, #tpu.memory_space<vmem>>, vector<1x8xf32>
    %324 = tpu.transpose %322, [1, 0] : vector<8x1xf32> -> vector<1x8xf32>
    %325 = arith.mulf %22, %324 : vector<1x8xf32>
    %326 = arith.addf %323, %325 : vector<1x8xf32>
    %c0_88 = arith.constant 0 : index
    %c0_89 = arith.constant 0 : index
    %327 = vector.load %arg20[%c0_88, %c0_89] : memref<4x8xf32, #tpu.memory_space<vmem>>, vector<1x8xf32>
    tpu.vector_store %arg20[%c0_88, %c0_89], %326 {strides = array<i32>} : memref<4x8xf32, #tpu.memory_space<vmem>>, vector<1x8xf32>,
    %328 = vector.broadcast %322 : vector<8x1xf32> to vector<8x192xf32>
    %329 = vector.broadcast %10 : vector<1x192xf32> to vector<8x192xf32>
    %330 = arith.mulf %328, %329 : vector<8x192xf32>
    %331 = vector.broadcast %14 : vector<1x192xf32> to vector<8x192xf32>
    %332 = arith.addf %330, %331 : vector<8x192xf32>
    %333 = arith.truncf %316 : vector<8x64xf32> to vector<8x64xbf16>
    %cst_90 = arith.constant dense<0.000000e+00> : vector<8x192xf32>
    %334 = tpu.matmul %333, %12, %cst_90 {dimension_numbers = #tpu.dot_dimension_numbers<[1], [0], [0], [1], [0, 0, 1, 1], [], []>} : vector<8x64xbf16>, vector<64x192xbf16>, vector<8x192xf32> -> vector<8x192xf32>
    %335 = vector.broadcast %16 : vector<1x192xf32> to vector<8x192xf32>
    %336 = arith.addf %334, %335 : vector<8x192xf32>
    %337 = vector.extract_strided_slice %332 {offsets = [0, 0], sizes = [8, 64], strides = [1, 1]} : vector<8x192xf32> to vector<8x64xf32>
    %338 = vector.extract_strided_slice %336 {offsets = [0, 0], sizes = [8, 64], strides = [1, 1]} : vector<8x192xf32> to vector<8x64xf32>
    %339 = arith.addf %337, %338 : vector<8x64xf32>
    %340 = arith.negf %339 : vector<8x64xf32>
    %341 = math.exp %340 : vector<8x64xf32>
    %cst_91 = arith.constant 1.000000e+00 : f32
    %342 = vector.broadcast %cst_91 : f32 to vector<8x64xf32>
    %343 = arith.addf %342, %341 : vector<8x64xf32>
    %344 = arith.divf %342, %343 : vector<8x64xf32>
    %345 = vector.extract_strided_slice %332 {offsets = [0, 64], sizes = [8, 64], strides = [1, 1]} : vector<8x192xf32> to vector<8x64xf32>
    %346 = vector.extract_strided_slice %336 {offsets = [0, 64], sizes = [8, 64], strides = [1, 1]} : vector<8x192xf32> to vector<8x64xf32>
    %347 = arith.addf %345, %346 : vector<8x64xf32>
    %348 = arith.negf %347 : vector<8x64xf32>
    %349 = math.exp %348 : vector<8x64xf32>
    %cst_92 = arith.constant 1.000000e+00 : f32
    %350 = vector.broadcast %cst_92 : f32 to vector<8x64xf32>
    %351 = arith.addf %350, %349 : vector<8x64xf32>
    %352 = arith.divf %350, %351 : vector<8x64xf32>
    %353 = vector.extract_strided_slice %332 {offsets = [0, 128], sizes = [8, 64], strides = [1, 1]} : vector<8x192xf32> to vector<8x64xf32>
    %354 = vector.extract_strided_slice %336 {offsets = [0, 128], sizes = [8, 64], strides = [1, 1]} : vector<8x192xf32> to vector<8x64xf32>
    %355 = arith.mulf %344, %354 : vector<8x64xf32>
    %356 = arith.addf %353, %355 : vector<8x64xf32>
    %357 = math.tanh %356 : vector<8x64xf32>
    %cst_93 = arith.constant 1.000000e+00 : f32
    %358 = vector.broadcast %cst_93 : f32 to vector<8x64xf32>
    %359 = arith.subf %358, %352 : vector<8x64xf32>
    %360 = arith.mulf %359, %357 : vector<8x64xf32>
    %361 = arith.mulf %352, %316 : vector<8x64xf32>
    %362 = arith.addf %360, %361 : vector<8x64xf32>
    %363 = vector.broadcast %18 : vector<1x64xf32> to vector<8x64xf32>
    %364 = arith.mulf %362, %363 : vector<8x64xf32>
    %cst_94 = arith.constant dense<0.000000e+00> : vector<8xf32>
    %365 = vector.multi_reduction <add>, %364, %cst_94 [1] : vector<8x64xf32> to vector<8xf32>
    %366 = vector.shape_cast %365 : vector<8xf32> to vector<8x1xf32>
    %367 = vector.broadcast %20 : vector<1x1xf32> to vector<8x1xf32>
    %368 = arith.addf %366, %367 : vector<8x1xf32>
    %c1 = arith.constant 1 : index
    %c0_95 = arith.constant 0 : index
    %369 = vector.load %arg20[%c1, %c0_95] : memref<4x8xf32, #tpu.memory_space<vmem>>, vector<1x8xf32>
    %370 = tpu.transpose %368, [1, 0] : vector<8x1xf32> -> vector<1x8xf32>
    %371 = arith.mulf %22, %370 : vector<1x8xf32>
    %372 = arith.addf %369, %371 : vector<1x8xf32>
    %c1_96 = arith.constant 1 : index
    %c0_97 = arith.constant 0 : index
    %373 = vector.load %arg20[%c1_96, %c0_97] : memref<4x8xf32, #tpu.memory_space<vmem>>, vector<1x8xf32>
    tpu.vector_store %arg20[%c1_96, %c0_97], %372 {strides = array<i32>} : memref<4x8xf32, #tpu.memory_space<vmem>>, vector<1x8xf32>,
    %374 = vector.broadcast %368 : vector<8x1xf32> to vector<8x192xf32>
    %375 = vector.broadcast %10 : vector<1x192xf32> to vector<8x192xf32>
    %376 = arith.mulf %374, %375 : vector<8x192xf32>
    %377 = vector.broadcast %14 : vector<1x192xf32> to vector<8x192xf32>
    %378 = arith.addf %376, %377 : vector<8x192xf32>
    %379 = arith.truncf %362 : vector<8x64xf32> to vector<8x64xbf16>
    %cst_98 = arith.constant dense<0.000000e+00> : vector<8x192xf32>
    %380 = tpu.matmul %379, %12, %cst_98 {dimension_numbers = #tpu.dot_dimension_numbers<[1], [0], [0], [1], [0, 0, 1, 1], [], []>} : vector<8x64xbf16>, vector<64x192xbf16>, vector<8x192xf32> -> vector<8x192xf32>
    %381 = vector.broadcast %16 : vector<1x192xf32> to vector<8x192xf32>
    %382 = arith.addf %380, %381 : vector<8x192xf32>
    %383 = vector.extract_strided_slice %378 {offsets = [0, 0], sizes = [8, 64], strides = [1, 1]} : vector<8x192xf32> to vector<8x64xf32>
    %384 = vector.extract_strided_slice %382 {offsets = [0, 0], sizes = [8, 64], strides = [1, 1]} : vector<8x192xf32> to vector<8x64xf32>
    %385 = arith.addf %383, %384 : vector<8x64xf32>
    %386 = arith.negf %385 : vector<8x64xf32>
    %387 = math.exp %386 : vector<8x64xf32>
    %cst_99 = arith.constant 1.000000e+00 : f32
    %388 = vector.broadcast %cst_99 : f32 to vector<8x64xf32>
    %389 = arith.addf %388, %387 : vector<8x64xf32>
    %390 = arith.divf %388, %389 : vector<8x64xf32>
    %391 = vector.extract_strided_slice %378 {offsets = [0, 64], sizes = [8, 64], strides = [1, 1]} : vector<8x192xf32> to vector<8x64xf32>
    %392 = vector.extract_strided_slice %382 {offsets = [0, 64], sizes = [8, 64], strides = [1, 1]} : vector<8x192xf32> to vector<8x64xf32>
    %393 = arith.addf %391, %392 : vector<8x64xf32>
    %394 = arith.negf %393 : vector<8x64xf32>
    %395 = math.exp %394 : vector<8x64xf32>
    %cst_100 = arith.constant 1.000000e+00 : f32
    %396 = vector.broadcast %cst_100 : f32 to vector<8x64xf32>
    %397 = arith.addf %396, %395 : vector<8x64xf32>
    %398 = arith.divf %396, %397 : vector<8x64xf32>
    %399 = vector.extract_strided_slice %378 {offsets = [0, 128], sizes = [8, 64], strides = [1, 1]} : vector<8x192xf32> to vector<8x64xf32>
    %400 = vector.extract_strided_slice %382 {offsets = [0, 128], sizes = [8, 64], strides = [1, 1]} : vector<8x192xf32> to vector<8x64xf32>
    %401 = arith.mulf %390, %400 : vector<8x64xf32>
    %402 = arith.addf %399, %401 : vector<8x64xf32>
    %403 = math.tanh %402 : vector<8x64xf32>
    %cst_101 = arith.constant 1.000000e+00 : f32
    %404 = vector.broadcast %cst_101 : f32 to vector<8x64xf32>
    %405 = arith.subf %404, %398 : vector<8x64xf32>
    %406 = arith.mulf %405, %403 : vector<8x64xf32>
    %407 = arith.mulf %398, %362 : vector<8x64xf32>
    %408 = arith.addf %406, %407 : vector<8x64xf32>
    %409 = vector.broadcast %18 : vector<1x64xf32> to vector<8x64xf32>
    %410 = arith.mulf %408, %409 : vector<8x64xf32>
    %cst_102 = arith.constant dense<0.000000e+00> : vector<8xf32>
    %411 = vector.multi_reduction <add>, %410, %cst_102 [1] : vector<8x64xf32> to vector<8xf32>
    %412 = vector.shape_cast %411 : vector<8xf32> to vector<8x1xf32>
    %413 = vector.broadcast %20 : vector<1x1xf32> to vector<8x1xf32>
    %414 = arith.addf %412, %413 : vector<8x1xf32>
    %c2 = arith.constant 2 : index
    %c0_103 = arith.constant 0 : index
    %415 = vector.load %arg20[%c2, %c0_103] : memref<4x8xf32, #tpu.memory_space<vmem>>, vector<1x8xf32>
    %416 = tpu.transpose %414, [1, 0] : vector<8x1xf32> -> vector<1x8xf32>
    %417 = arith.mulf %22, %416 : vector<1x8xf32>
    %418 = arith.addf %415, %417 : vector<1x8xf32>
    %c2_104 = arith.constant 2 : index
    %c0_105 = arith.constant 0 : index
    %419 = vector.load %arg20[%c2_104, %c0_105] : memref<4x8xf32, #tpu.memory_space<vmem>>, vector<1x8xf32>
    tpu.vector_store %arg20[%c2_104, %c0_105], %418 {strides = array<i32>} : memref<4x8xf32, #tpu.memory_space<vmem>>, vector<1x8xf32>,
    %420 = vector.broadcast %414 : vector<8x1xf32> to vector<8x192xf32>
    %421 = vector.broadcast %10 : vector<1x192xf32> to vector<8x192xf32>
    %422 = arith.mulf %420, %421 : vector<8x192xf32>
    %423 = vector.broadcast %14 : vector<1x192xf32> to vector<8x192xf32>
    %424 = arith.addf %422, %423 : vector<8x192xf32>
    %425 = arith.truncf %408 : vector<8x64xf32> to vector<8x64xbf16>
    %cst_106 = arith.constant dense<0.000000e+00> : vector<8x192xf32>
    %426 = tpu.matmul %425, %12, %cst_106 {dimension_numbers = #tpu.dot_dimension_numbers<[1], [0], [0], [1], [0, 0, 1, 1], [], []>} : vector<8x64xbf16>, vector<64x192xbf16>, vector<8x192xf32> -> vector<8x192xf32>
    %427 = vector.broadcast %16 : vector<1x192xf32> to vector<8x192xf32>
    %428 = arith.addf %426, %427 : vector<8x192xf32>
    %429 = vector.extract_strided_slice %424 {offsets = [0, 0], sizes = [8, 64], strides = [1, 1]} : vector<8x192xf32> to vector<8x64xf32>
    %430 = vector.extract_strided_slice %428 {offsets = [0, 0], sizes = [8, 64], strides = [1, 1]} : vector<8x192xf32> to vector<8x64xf32>
    %431 = arith.addf %429, %430 : vector<8x64xf32>
    %432 = arith.negf %431 : vector<8x64xf32>
    %433 = math.exp %432 : vector<8x64xf32>
    %cst_107 = arith.constant 1.000000e+00 : f32
    %434 = vector.broadcast %cst_107 : f32 to vector<8x64xf32>
    %435 = arith.addf %434, %433 : vector<8x64xf32>
    %436 = arith.divf %434, %435 : vector<8x64xf32>
    %437 = vector.extract_strided_slice %424 {offsets = [0, 64], sizes = [8, 64], strides = [1, 1]} : vector<8x192xf32> to vector<8x64xf32>
    %438 = vector.extract_strided_slice %428 {offsets = [0, 64], sizes = [8, 64], strides = [1, 1]} : vector<8x192xf32> to vector<8x64xf32>
    %439 = arith.addf %437, %438 : vector<8x64xf32>
    %440 = arith.negf %439 : vector<8x64xf32>
    %441 = math.exp %440 : vector<8x64xf32>
    %cst_108 = arith.constant 1.000000e+00 : f32
    %442 = vector.broadcast %cst_108 : f32 to vector<8x64xf32>
    %443 = arith.addf %442, %441 : vector<8x64xf32>
    %444 = arith.divf %442, %443 : vector<8x64xf32>
    %445 = vector.extract_strided_slice %424 {offsets = [0, 128], sizes = [8, 64], strides = [1, 1]} : vector<8x192xf32> to vector<8x64xf32>
    %446 = vector.extract_strided_slice %428 {offsets = [0, 128], sizes = [8, 64], strides = [1, 1]} : vector<8x192xf32> to vector<8x64xf32>
    %447 = arith.mulf %436, %446 : vector<8x64xf32>
    %448 = arith.addf %445, %447 : vector<8x64xf32>
    %449 = math.tanh %448 : vector<8x64xf32>
    %cst_109 = arith.constant 1.000000e+00 : f32
    %450 = vector.broadcast %cst_109 : f32 to vector<8x64xf32>
    %451 = arith.subf %450, %444 : vector<8x64xf32>
    %452 = arith.mulf %451, %449 : vector<8x64xf32>
    %453 = arith.mulf %444, %408 : vector<8x64xf32>
    %454 = arith.addf %452, %453 : vector<8x64xf32>
    %455 = vector.broadcast %18 : vector<1x64xf32> to vector<8x64xf32>
    %456 = arith.mulf %454, %455 : vector<8x64xf32>
    %cst_110 = arith.constant dense<0.000000e+00> : vector<8xf32>
    %457 = vector.multi_reduction <add>, %456, %cst_110 [1] : vector<8x64xf32> to vector<8xf32>
    %458 = vector.shape_cast %457 : vector<8xf32> to vector<8x1xf32>
    %459 = vector.broadcast %20 : vector<1x1xf32> to vector<8x1xf32>
    %460 = arith.addf %458, %459 : vector<8x1xf32>
    %c3 = arith.constant 3 : index
    %c0_111 = arith.constant 0 : index
    %461 = vector.load %arg20[%c3, %c0_111] : memref<4x8xf32, #tpu.memory_space<vmem>>, vector<1x8xf32>
    %462 = tpu.transpose %460, [1, 0] : vector<8x1xf32> -> vector<1x8xf32>
    %463 = arith.mulf %22, %462 : vector<1x8xf32>
    %464 = arith.addf %461, %463 : vector<1x8xf32>
    %c3_112 = arith.constant 3 : index
    %c0_113 = arith.constant 0 : index
    %465 = vector.load %arg20[%c3_112, %c0_113] : memref<4x8xf32, #tpu.memory_space<vmem>>, vector<1x8xf32>
    tpu.vector_store %arg20[%c3_112, %c0_113], %464 {strides = array<i32>} : memref<4x8xf32, #tpu.memory_space<vmem>>, vector<1x8xf32>,
    return
  }
  func.func @transform_0(%arg0: i32) -> (i32, i32) {
    %c0_i32 = arith.constant 0 : i32
    %c0_i32_0 = arith.constant 0 : i32
    %c0_i32_1 = arith.constant 0 : i32
    return %c0_i32, %c0_i32_0 : i32, i32
  }
  func.func @transform_1(%arg0: i32) -> (i32, i32, i32) {
    %c0_i32 = arith.constant 0 : i32
    %c0_i32_0 = arith.constant 0 : i32
    %c0_i32_1 = arith.constant 0 : i32
    return %arg0, %c0_i32, %c0_i32_0 : i32, i32, i32
  }
  func.func @transform_2(%arg0: i32) -> (i32, i32, i32) {
    %c0_i32 = arith.constant 0 : i32
    %c0_i32_0 = arith.constant 0 : i32
    %c0_i32_1 = arith.constant 0 : i32
    return %arg0, %c0_i32, %c0_i32_0 : i32, i32, i32
  }
  func.func @transform_3(%arg0: i32) -> (i32, i32, i32) {
    %c0_i32 = arith.constant 0 : i32
    %c0_i32_0 = arith.constant 0 : i32
    %c0_i32_1 = arith.constant 0 : i32
    return %arg0, %c0_i32, %c0_i32_0 : i32, i32, i32
  }
  func.func @transform_4(%arg0: i32) -> (i32, i32, i32) {
    %c0_i32 = arith.constant 0 : i32
    %c0_i32_0 = arith.constant 0 : i32
    %c0_i32_1 = arith.constant 0 : i32
    return %arg0, %c0_i32, %c0_i32_0 : i32, i32, i32
  }
  func.func @transform_5(%arg0: i32) -> (i32, i32, i32) {
    %c0_i32 = arith.constant 0 : i32
    %c0_i32_0 = arith.constant 0 : i32
    %c0_i32_1 = arith.constant 0 : i32
    return %arg0, %c0_i32, %c0_i32_0 : i32, i32, i32
  }
  func.func @transform_6(%arg0: i32) -> (i32, i32, i32) {
    %c0_i32 = arith.constant 0 : i32
    %c0_i32_0 = arith.constant 0 : i32
    %c0_i32_1 = arith.constant 0 : i32
    return %arg0, %c0_i32, %c0_i32_0 : i32, i32, i32
  }
  func.func @transform_7(%arg0: i32) -> (i32, i32, i32) {
    %c0_i32 = arith.constant 0 : i32
    %c0_i32_0 = arith.constant 0 : i32
    %c0_i32_1 = arith.constant 0 : i32
    return %arg0, %c0_i32, %c0_i32_0 : i32, i32, i32
  }
  func.func @transform_8(%arg0: i32) -> (i32, i32, i32) {
    %c0_i32 = arith.constant 0 : i32
    %c0_i32_0 = arith.constant 0 : i32
    %c0_i32_1 = arith.constant 0 : i32
    return %arg0, %c0_i32, %c0_i32_0 : i32, i32, i32
  }
  func.func @transform_9(%arg0: i32) -> (i32, i32, i32) {
    %c0_i32 = arith.constant 0 : i32
    %c0_i32_0 = arith.constant 0 : i32
    %c0_i32_1 = arith.constant 0 : i32
    return %arg0, %c0_i32, %c0_i32_0 : i32, i32, i32
  }
  func.func @transform_10(%arg0: i32) -> (i32, i32, i32) {
    %c0_i32 = arith.constant 0 : i32
    %c0_i32_0 = arith.constant 0 : i32
    %c0_i32_1 = arith.constant 0 : i32
    return %arg0, %c0_i32, %c0_i32_0 : i32, i32, i32
  }
  func.func @transform_11(%arg0: i32) -> (i32, i32, i32) {
    %c0_i32 = arith.constant 0 : i32
    %c0_i32_0 = arith.constant 0 : i32
    %c0_i32_1 = arith.constant 0 : i32
    return %arg0, %c0_i32, %c0_i32_0 : i32, i32, i32
  }
  func.func @transform_12(%arg0: i32) -> (i32, i32, i32) {
    %c0_i32 = arith.constant 0 : i32
    %c0_i32_0 = arith.constant 0 : i32
    %c0_i32_1 = arith.constant 0 : i32
    %c0_i32_2 = arith.constant 0 : i32
    return %c0_i32, %c0_i32_0, %c0_i32_1 : i32, i32, i32
  }
  func.func @transform_13(%arg0: i32) -> (i32, i32, i32) {
    %c0_i32 = arith.constant 0 : i32
    %c0_i32_0 = arith.constant 0 : i32
    %c0_i32_1 = arith.constant 0 : i32
    %c0_i32_2 = arith.constant 0 : i32
    return %c0_i32, %c0_i32_0, %c0_i32_1 : i32, i32, i32
  }
  func.func @transform_14(%arg0: i32) -> (i32, i32, i32) {
    %c0_i32 = arith.constant 0 : i32
    %c0_i32_0 = arith.constant 0 : i32
    %c0_i32_1 = arith.constant 0 : i32
    %c0_i32_2 = arith.constant 0 : i32
    return %c0_i32, %c0_i32_0, %c0_i32_1 : i32, i32, i32
  }
  func.func @transform_15(%arg0: i32) -> (i32, i32, i32) {
    %c0_i32 = arith.constant 0 : i32
    %c0_i32_0 = arith.constant 0 : i32
    %c0_i32_1 = arith.constant 0 : i32
    %c0_i32_2 = arith.constant 0 : i32
    return %c0_i32, %c0_i32_0, %c0_i32_1 : i32, i32, i32
  }
  func.func @transform_16(%arg0: i32) -> (i32, i32, i32) {
    %c0_i32 = arith.constant 0 : i32
    %c0_i32_0 = arith.constant 0 : i32
    %c0_i32_1 = arith.constant 0 : i32
    %c0_i32_2 = arith.constant 0 : i32
    return %c0_i32, %c0_i32_0, %c0_i32_1 : i32, i32, i32
  }
  func.func @transform_17(%arg0: i32) -> (i32, i32, i32) {
    %c0_i32 = arith.constant 0 : i32
    %c0_i32_0 = arith.constant 0 : i32
    %c0_i32_1 = arith.constant 0 : i32
    %c0_i32_2 = arith.constant 0 : i32
    return %c0_i32, %c0_i32_0, %c0_i32_1 : i32, i32, i32
  }
  func.func @transform_18(%arg0: i32) -> (i32, i32, i32) {
    %c0_i32 = arith.constant 0 : i32
    %c0_i32_0 = arith.constant 0 : i32
    %c0_i32_1 = arith.constant 0 : i32
    %c0_i32_2 = arith.constant 0 : i32
    return %c0_i32, %c0_i32_0, %c0_i32_1 : i32, i32, i32
  }
  func.func @transform_19(%arg0: i32) -> (i32, i32) {
    %c0_i32 = arith.constant 0 : i32
    %c0_i32_0 = arith.constant 0 : i32
    %c0_i32_1 = arith.constant 0 : i32
    return %c0_i32, %c0_i32_0 : i32, i32
  }
}

</mosaic_0001>

<bundles_post_ra>
// kernel: krnn_local_forward.1
= control target key start
LH: loop header
LB: loop body
LE: loop exit
PB: predicated region body
PF: predicated region fallthrough
CT: control target
= control target key end

     0   :  { %s4534_s0 = inlined_call_operand.vmem [shape: f32[64,4], index: 0, kind: input, shape index: {}]   ;;  %s4535_s1 = inlined_call_operand.vmem [shape: f32[10,1,8], index: 1, kind: input, shape index: {}]   ;;  %s4536_s2 = inlined_call_operand.vmem [shape: f32[10,4,192], index: 2, kind: input, shape index: {}]   ;;  %s4537_s3 = inlined_call_operand.hbm [shape: bf16[10,64,192], index: 3, kind: input, shape index: {}]   ;;  %s4538_s4 = inlined_call_operand.vmem [shape: f32[10,1,192], index: 4, kind: input, shape index: {}]   ;;  %s4539_s5 = inlined_call_operand.vmem [shape: f32[10,1,192], index: 5, kind: input, shape index: {}]   ;;  %s4540_s6 = inlined_call_operand.vmem [shape: f32[10,1,192], index: 6, kind: input, shape index: {}]   ;;  %s4541_s7 = inlined_call_operand.hbm [shape: bf16[10,64,192], index: 7, kind: input, shape index: {}]   ;;  %s4542_s8 = inlined_call_operand.vmem [shape: f32[10,1,192], index: 8, kind: input, shape index: {}]   ;;  %s4543_s9 = inlined_call_operand.vmem [shape: f32[10,1,192], index: 9, kind: input, shape index: {}]   ;;  %s4544_s10 = inlined_call_operand.vmem [shape: f32[10,1,64], index: 10, kind: input, shape index: {}]   ;;  %s4545_s11 = inlined_call_operand.vmem [shape: f32[10,1,1], index: 11, kind: input, shape index: {}]   ;;  %s4546_s12 = inlined_call_operand.vmem [shape: f32[4,8,8], index: 12, kind: input, shape index: {}]   ;;  %s4547_s13 = inlined_call_operand.vmem [shape: f32[4,8,16], index: 13, kind: input, shape index: {}]   ;;  %s4548_s14 = inlined_call_operand.vmem [shape: f32[4,1,16], index: 14, kind: input, shape index: {}]   ;;  %s4549_s15 = inlined_call_operand.vmem [shape: f32[4,16,4], index: 15, kind: input, shape index: {}]   ;;  %s4550_s16 = inlined_call_operand.vmem [shape: f32[4,1,4], index: 16, kind: input, shape index: {}]   ;;  %s4551_s17 = inlined_call_operand.vmem [shape: f32[4,4,1], index: 17, kind: input, shape index: {}]   ;;  %s4552_s18 = inlined_call_operand.vmem [shape: f32[4,1,1], index: 18, kind: input, shape index: {}]   ;;  %s4553_s19 = inlined_call_operand.vmem [shape: f32[4,8], index: 19, kind: output, shape index: {}]  }
   0x1   :  { %4569 = sst [smem:[#allocation15_spill]] %s4534_s0 }
   0x2   :  { %4570 = sst [smem:[#allocation16_spill]] %s4535_s1 }
   0x3   :  { %4571 = sst [smem:[#allocation17_spill]] %s4536_s2 }
   0x4   :  { %4572 = sst [smem:[#allocation18_spill]] %s4537_s3 }
   0x5   :  { %4573 = sst [smem:[#allocation19_spill]] %s4538_s4 }
   0x6   :  { %4574 = sst [smem:[#allocation20_spill]] %s4541_s7 }
   0x7   :  { %4575 = sst [smem:[#allocation21_spill]] %s4548_s14 }
   0x8   :  { %4576 = sst [smem:[#allocation22_spill]] %s4550_s16 }
   0x9   :  { %4577 = sst [smem:[#allocation23_spill]] %s4552_s18 }
   0xa   :  { %4578 = sst [smem:[#allocation24_spill]] %s4553_s19 }
   0xb   :  { %24 = vsyncpa [#allocation4], 0 }
   0xc   :  { %26 = vsyncpa [#allocation4 + $0x1], 0 }
   0xd   :  { %27 = vsyncpa [#allocation6], 0 }
   0xe   :  { %29 = vsyncpa [#allocation6 + $0x1], 0  ;;  %s3743_s0 = smov 0   ;;  %s3745_s30 = smov 0  }
   0xf   :  { %s3747_s20 = smov 0   ;;  %s3749_s21 = smov 0  }
  0x10 LB: > { %4579 = sst [smem:[#allocation9_spill]] %s3623_s30  ;;  %s3762_s1 = sadd.s32 4294967295, %s3631_s21   ;;  %s3631_s21 = sphi %s3749_s21, %s4612_s21   ;;  %s3627_s20 = sphi %s3747_s20, %s4615_s20   ;;  %s3623_s30 = sphi %s3745_s30, %s4614_s30   ;;  %s3619_s0 = sphi %s3743_s0, %s4613_s0  }
  0x11   : > { %4580 = sst [smem:[#allocation10_spill]] %s3627_s20  ;;  %s3765_s22 = sadd.s32 1, %s3631_s21  }
  0x12   : > { %4581 = sst [smem:[#allocation11_spill]] %s3765_s22  ;;  %s112_s2 = ssub.s32 %s3631_s21, %s3765_s22 }
  0x13   : > { %s115_s23 = sadd.s32 1, %s3627_s20  ;;  %p113_p0 = scmp.eq.s32.totalorder %s112_s2, 0 }
  0x14   : > { %p122_p1 = scmp.ne.s32.totalorder %s3627_s20, %s3623_s30  ;;  %p123_p2 = scmp.eq.s32.totalorder %s3631_s21, 0 }
  0x15   : > { %p128_p3 = scmp.ne.s32.totalorder %s3623_s30, %s3619_s0  ;;  %p129_p5 = scmp.eq.s32.totalorder %s3762_s1, 0 }
  0x16   : > { %s3775_s24 = scalar_select %p113_p0, %s3627_s20, %s115_s23  }
  0x17   : > { %p124_p4 = por %p123_p2, %p122_p1  ;;  %p3390_p6 = scmp.lt.s32.totalorder %s3631_s21, 10 }
  0x18   : > { %4582 = sst [smem:[#allocation12_spill]] %s3775_s24  ;;  %p3779_p7 = por %p129_p5, %p128_p3 }
  0x19   : > { %s3784_s3 = sand.u32 1, %s3627_s20   ;;  %s4561_s27 = sshll.u32 %s3631_s21, 10 }
  0x1a   : > { %s4583_s25 = scalar_select %p3779_p7, 1, 0 }
  0x1b   : > { %s4560_s26 = sshll.u32 %s3784_s3, 6  ;;  %s4584_s0 = sld [smem:[#allocation18_spill]] }
  0x1c   : > { %s570_s24 = scalar_lea.vmem [#allocation3], %s4560_s26  ;;  %p3799_p8 = pnand %p3390_p6, %p124_p4 }
  0x1d   : > { %s577_s22 = sshll.u32 %s570_s24, 4  ;;  %s3797_s22 = int_to_ptr.vmem [resolvable:$true] %s577_s22 }
  0x1e   : > { %p3535_p11 = pneg %p3799_p8 }
  0x21   : > { %s4585_s2 = smov %s4584_s0  ;;  %s3793_s23 = scalar_lea.hbm %s4584_s0, %s4561_s27 }
  0x22   : > { %s3533_s28 = scalar_lea.hbm %s3793_s23, 1024  ;;  %s3538_s0 = scalar_lea.hbm %s4585_s2, 10240 }
  0x23   : > { %p3534_p10 = scmp.ne.s32.totalorder %s3793_s23, %s3533_s28  ;;  %p3539_p0 = scmp.lt.u32.totalorder %s3793_s23, %s4585_s2 }
  0x24   : > { %p3540_p1 = scmp.lt.u32.totalorder %s3538_s0, %s3533_s28  ;;  %p3542_p3 = scmp.lt.u32.totalorder %s3533_s28, %s3793_s23 }
  0x25   : > { %p3536_p12 = pnand %p3535_p11, %p3534_p10 }
  0x26   : > { %p3541_p2 = por %p3540_p1, %p3539_p0 }
  0x27   : > { %p3537_p13 = pneg %p3536_p12 }
  0x28   : > { %p3543_p4 = por %p3542_p3, %p3541_p2 }
  0x2a   : > { %p3544_p5 = pnand %p3543_p4, %p3537_p13 }
  0x2c   : > { %3547 = shalt.err (!%p3544_p5)
}
  0x2d   : > { %s3548_s19 = scalar_lea.vmem %s3797_s22, 1024  ;;  %s3633_s29 = smov [#allocation3]  }
  0x2e   : > { %p3549_p6 = scmp.ne.s32.totalorder %s3797_s22, %s3548_s19  ;;  %s3553_s24 = sshll.u32 %s3633_s29, 4  ;;  %s3554_s24 = int_to_ptr.vmem [resolvable:$false] %s3553_s24 }
  0x2f   : > { %s3555_s26 = scalar_lea.vmem %s3554_s24, 2048  ;;  %p3556_p9 = scmp.lt.s32.totalorder %s3797_s22, %s3554_s24 }
  0x30   : > { %p3551_p10 = pnand %p3549_p6, %p3535_p11  ;;  %p3557_p0 = scmp.lt.s32.totalorder %s3555_s26, %s3548_s19 }
  0x32   : > { %p3552_p12 = pneg %p3551_p10  ;;  %p3558_p1 = por %p3557_p0, %p3556_p9 }
  0x34   : > { %p3559_p2 = pnand %p3558_p1, %p3552_p12 }
  0x36   : > { %3562 = shalt.err (!%p3559_p2)
}
  0x37   : > { %s3634_s27 = smov 128   ;;  %s3635_s28 = smov 8  }
  0x38   : > { %s4587_s19 = scalar_lea.sflag [#allocation4], %s3784_s3  ;;  %p653_p9 = scmp.lt.s32.totalorder %s3631_s21, 11 }
  0x39   : > { %3386 = dma.hbm_to_vmem [thread:$0]  (!%p3799_p8), %s3793_s23, 1024, %s3797_s22, %s4587_s19, %s3634_s27, %s3634_s27, %s3635_s28  }
  0x3a   : > { %s4588_s0 = sshll.u32 %s3631_s21, 10  ;;  %s4589_s7 = sld [smem:[#allocation20_spill]] }
  0x3b   : > { %p4590_p13 = scmp.ge.s32.totalorder %s3631_s21, 1  ;;  %s4592_s16 = sshll.u32 %s3784_s3, 6 }
  0x3c   : > { %s612_s14 = scalar_lea.vmem [#allocation5], %s4592_s16  ;;  %s609_s22 = scalar_lea.sflag [#allocation6], %s3784_s3 }
  0x3d   : > { %p3845_p3 = pnand %p4590_p13, %p653_p9  ;;  %s619_s18 = sshll.u32 %s612_s14, 4  ;;  %s3851_s18 = int_to_ptr.vmem [resolvable:$true] %s619_s18 }
  0x40   : > { %s3841_s26 = scalar_lea.hbm %s4589_s7, %s4588_s0  ;;  %s3568_s0 = scalar_lea.hbm %s4589_s7, 10240 }
  0x41   : > { %s3563_s23 = scalar_lea.hbm %s3841_s26, 1024  ;;  %p3569_p10 = scmp.lt.u32.totalorder %s3841_s26, %s4589_s7 }
  0x42   : > { %p3564_p4 = scmp.ne.s32.totalorder %s3841_s26, %s3563_s23  ;;  %p3570_p12 = scmp.lt.u32.totalorder %s3568_s0, %s3563_s23 }
  0x43   : > { %p3572_p1 = scmp.lt.u32.totalorder %s3563_s23, %s3841_s26 }
  0x44   : > { %p3566_p5 = pnand %p3564_p4, %p3535_p11  ;;  %p3571_p0 = por %p3570_p12, %p3569_p10 }
  0x46   : > { %p3567_p6 = pneg %p3566_p5  ;;  %p3573_p2 = por %p3572_p1, %p3571_p0 }
  0x48   : > { %p3574_p9 = pnand %p3573_p2, %p3567_p6 }
  0x4a   : > { %3577 = shalt.err (!%p3574_p9)
}
  0x4b   : > { %s3578_s14 = scalar_lea.vmem %s3851_s18, 1024  ;;  %s3636_s16 = smov [#allocation5]  }
  0x4c   : > { %p3579_p13 = scmp.ne.s32.totalorder %s3851_s18, %s3578_s14  ;;  %s3583_s21 = sshll.u32 %s3636_s16, 4  ;;  %s3584_s21 = int_to_ptr.vmem [resolvable:$false] %s3583_s21 }
  0x4d   : > { %s3585_s19 = scalar_lea.vmem %s3584_s21, 2048  ;;  %p3586_p7 = scmp.lt.s32.totalorder %s3851_s18, %s3584_s21 }
  0x4e   : > { %p3581_p4 = pnand %p3579_p13, %p3535_p11  ;;  %p3587_p10 = scmp.lt.s32.totalorder %s3585_s19, %s3578_s14 }
  0x50   : > { %p3582_p5 = pneg %p3581_p4  ;;  %p3588_p12 = por %p3587_p10, %p3586_p7 }
  0x52   : > { %p3589_p0 = pnand %p3588_p12, %p3582_p5 }
  0x54   : > { %3592 = shalt.err (!%p3589_p0)
}
  0x55   : > { %3389 = dma.hbm_to_vmem [thread:$0]  (!%p3799_p8), %s3841_s26, 1024, %s3851_s18, %s609_s22, %s3634_s27, %s3634_s27, %s3635_s28  }
  0x56   : > { %657 = sbr.rel (%p3845_p3) target bundleno = 7116 (0x1bcc), region = 96 }
  0x5d   : > { %s659_s23 = sand.u32 1, %s3623_s30   ;;  %p4593_p7 = scmp.ne.s32.totalorder %s4583_s25, 0 }
  0x5e   : > { %s3194_s0 = sshll.u32 %s659_s23, 6  ;;  %s660_s29 = scalar_lea.sflag [#allocation4], %s659_s23 }
  0x5f   : > { %s3885_s24 = scalar_lea.vmem [#allocation3], %s3194_s0 }
  0x60   : > { %3610 = dma.done.wait (%p4593_p7), %s660_s29, 1024  }
  0x61   : > { %3612 = vsyncadd (%p4593_p7), %s660_s29, 4294966272  ;;  %s669_s20 = scalar_lea.sflag [#allocation6], %s659_s23  ;;  %s3891_s3 = scalar_lea.vmem [#allocation5], %s3194_s0 }
  0x62   : > { %4594 = sst [smem:[#allocation13_spill]] %s3891_s3 }
  0x63   : > { %3614 = dma.done.wait (%p4593_p7), %s669_s20, 1024  }
  0x64   : > { %3616 = vsyncadd (%p4593_p7), %s669_s20, 4294966272  ;;  %p761_p8 = scmp.lt.s32.totalorder %s3762_s1, 9  ;;  %s4596_s21 = sld [smem:[#allocation17_spill]] }
  0x65   : > { %p3203_p11 = scmp.ne.s32.totalorder %s3762_s1, 0 }
  0x66   : > { %s3899_s18 = scalar_select %p761_p8, %s3762_s1, 9 }
  0x67   : > { %799 = sbr.rel (%p3203_p11) target bundleno = 702 (0x2be), region = 108  ;;  %v801_v0 = vld [vmem:[%s4547_s13] sm:$0xff] (!%p3203_p11)  ;;  %vm809_vm0 = vcmask (!%p3203_p11), 64512   ;;  %v3637_v2 = vmov (!%p3203_p11), 0.0   ;;  %vm3638_vm1 = vmmov (!%p3203_p11), 0   ;;  %v3210_v3 = vld [vmem:[%s4547_s13 + $0x8] sm:$0xff] (!%p3203_p11) }
  0x68   : > { %s3298_s22 = sshll.u32 %s3899_s18, 3  ;;  %s3912_s19 = sshll.u32 %s3899_s18, 1  ;;  %v800_v1 = vld [vmem:[%s4546_s12] sm:$0xff] (!%p3203_p11)  ;;  %3319 = vmatprep.subr.mxu0 (!%p3203_p11), %v3637_v2  ;;  %3321 = vmatprep.mubr.msk.f32.mxu0 (!%p3203_p11), %vm3638_vm1, %v3637_v2  ;;  %v3209_v4 = vld [vmem:[%s4546_s12 + $0x8] sm:$0xff] (!%p3203_p11)  ;;  %v3223_v5 = vld [vmem:[%s4547_s13 + $0x10] sm:$0xff] (!%p3203_p11)  ;;  %v3639_v12 = vmov (!%p3203_p11), 0.0|0.0  }
  0x69   : > { %s776_s27 = scalar_lea.vmem %s4539_s5, %s3912_s19  ;;  %s788_s23 = scalar_lea.vmem %s4543_s9, %s3912_s19  ;;  %3320 = vmatpush3.msra.mxu0 (!%p3203_p11), %v801_v0  ;;  %3328 = vmatprep.mubr.msk.f32.mxu1 (!%p3203_p11), %vm3638_vm1, %v3637_v2  ;;  %v3222_v6 = vld [vmem:[%s4546_s12 + $0x10] sm:$0xff] (!%p3203_p11)  ;;  %v3236_v7 = vld [vmem:[%s4547_s13 + $0x18] sm:$0xff] (!%p3203_p11)  ;;  %v884_v9 = vld [vmem:[%s4549_s15] sm:$0xff] (!%p3203_p11)  ;;  %v3640_v15 = vmov (!%p3203_p11), 0   ;;  %vm893_vm2 = vcmask (!%p3203_p11), 130048   ;;  %vm978_vm3 = vcmask (!%p3203_p11), 27648  }
  0x6a   : > { %s3909_s25 = scalar_lea.vmem %s4596_s21, %s3298_s22  ;;  %s780_s22 = scalar_lea.vmem %s4540_s6, %s3912_s19  ;;  %3322 = vmatmul.mubr.msk.f32.vlgmr.msra.gmra.mrb[0].mxu0 (!%p3203_p11), %vm809_vm0, %v800_v1  ;;  %3331 = vmatprep.subr.mxu0 (!%p3203_p11), %v3637_v2  ;;  %v3235_v8 = vld [vmem:[%s4546_s12 + $0x18] sm:$0xff] (!%p3203_p11)  ;;  %v885_v10 = vld [vmem:[%s4549_s15 + $0x8] sm:$0xff] (!%p3203_p11)  ;;  %v970_v13 = vld [vmem:[%s4551_s17] sm:$0xf] (!%p3203_p11)  ;;  %vm1642_vm4 = vcmask (!%p3203_p11), 1041409   ;;  %vm1647_vm5 = vcmask (!%p3203_p11), 1043459  }
  0x6b   : > { %4597 = sst [smem:[#allocation14_spill]] %s3909_s25  ;;  %s784_s21 = scalar_lea.vmem %s4542_s8, %s3912_s19  ;;  %3332 = vmatpush3.msra.mxu0 (!%p3203_p11), %v3210_v3  ;;  %3333 = vmatprep.mubr.msk.f32.mxu0 (!%p3203_p11), %vm3638_vm1, %v3637_v2  ;;  %v3368_v11 = vpack.c.bf16 (!%p3203_p11), %v885_v10, %v884_v9  ;;  %v3232_v14 = vld [vmem:[%s4551_s17 + $0x8] sm:$0xf] (!%p3203_p11)  ;;  %v3219_v16 = vld [vmem:[%s4551_s17 + $0x4] sm:$0xf] (!%p3203_p11)  ;;  %v3214_v23 = vld [vmem:[%s4549_s15 + $0x10] sm:$0xff] (!%p3203_p11) }
  0x6c   : > { %s791_s29 = scalar_lea.vmem %s4544_s10, %s3899_s18  ;;  %s794_s20 = scalar_lea.vmem %s4545_s11, %s3899_s18  ;;  %3343 = vmatprep.subr.mxu0 (!%p3203_p11), %v3637_v2  ;;  %3367 = vmatprep.subr.bf16.mxu1 (!%p3203_p11), %v3639_v12  ;;  %v3245_v17 = vld [vmem:[%s4551_s17 + $0xc] sm:$0xf] (!%p3203_p11)  ;;  %v3215_v24 = vld [vmem:[%s4549_s15 + $0x18] sm:$0xff] (!%p3203_p11)  ;;  %v3227_v31 = vld [vmem:[%s4549_s15 + $0x20] sm:$0xff] (!%p3203_p11)  ;;  %vm1660_vm6 = vcmask (!%p3203_p11), 1041408   ;;  %vm1652_vm7 = vcmask (!%p3203_p11), 1045509  }
  0x6d   : > { %3369 = vmatpush3.bf16.msra.mxu1 (!%p3203_p11), %v3368_v11  ;;  %3432 = vset.pattern.permute.xlu0 (!%p3203_p11), %v3640_v15  ;;  %s4599_s30 = sld [smem:[#allocation23_spill]] (!%p3203_p11)  ;;  %s4601_s4 = sld [smem:[#allocation21_spill]] (!%p3203_p11)  ;;  %v3371_v29 = vpack.c.bf16 (!%p3203_p11), %v3215_v24, %v3214_v23  ;;  %v3228_v32 = vld [vmem:[%s4549_s15 + $0x28] sm:$0xff] (!%p3203_p11)  ;;  %v3240_v39 = vld [vmem:[%s4549_s15 + $0x30] sm:$0xff] (!%p3203_p11)  ;;  %v3241_v40 = vld [vmem:[%s4549_s15 + $0x38] sm:$0xff] (!%p3203_p11)  ;;  %vm1662_vm8 = vcmask (!%p3203_p11), 1043456  }
  0x6e   : > { %3334 = vmatmul.mubr.msk.f32.vlgmr.msra.gmra.mrb[2].mxu0 %vm809_vm0, %v3209_v4  ;;  %3370 = vmatprep.subr.bf16.mxu1 %v3639_v12  ;;  %v3374_v37 = vpack.c.bf16 %v3228_v32, %v3227_v31  ;;  %v3377_v45 = vpack.c.bf16 %v3241_v40, %v3240_v39  ;;  %s4602_s7 = sld [smem:[#allocation22_spill]]  ;;  %vm1657_vm9 = vcmask 1047559   ;;  %vm1664_vm10 = vcmask 1045504   ;;  %s4603_s14 = sld [smem:[#allocation24_spill]] }
  0x6f   : > { %3344 = vmatpush3.msra.mxu0 %v3223_v5  ;;  %3345 = vmatprep.mubr.msk.f32.mxu0 %vm3638_vm1, %v3637_v2  ;;  %vm1698_vm11 = vcmask 60416  }
  0x70   : > { %3355 = vmatprep.subr.mxu0 %v3637_v2  ;;  %3433 = vset.pattern.permute.xlu1 %v3640_v15 }
  0x71   : > { %973 = vperm.xlu0 %3432, %v970_v13   ;;  %1395 = vperm.xlu1 %3433, %v3232_v14  }
  0x72   : > { %3346 = vmatmul.mubr.msk.f32.vlgmr.msra.gmra.mrb[4].mxu0 %vm809_vm0, %v3222_v6 }
  0x73   : > { %3356 = vmatpush3.msra.mxu0 %v3236_v7  ;;  %3357 = vmatprep.mubr.msk.f32.mxu0 %vm3638_vm1, %v3637_v2  ;;  %s4600_s1 = smov %s4599_s30  ;;  %v3208_v18 = vld [vmem:[%s4599_s30] ss:$0 sm:$0xff]  ;;  %v3212_v28 = vld [vmem:[%s4601_s4 + $0x1] ss:$0 sm:$0xff]  ;;  %v3225_v36 = vld [vmem:[%s4601_s4 + $0x2] ss:$0 sm:$0xff] }
  0x74   : > { %v3221_v19 = vld [vmem:[%s4600_s1 + $0x1] ss:$0 sm:$0xff]  ;;  %v3234_v20 = vld [vmem:[%s4600_s1 + $0x2] ss:$0 sm:$0xff]  ;;  %v3247_v21 = vld [vmem:[%s4600_s1 + $0x3] ss:$0 sm:$0xff] }
  0x75   : > { %1184 = vperm.xlu0 %3432, %v3219_v16   ;;  %1606 = vperm.xlu1 %3433, %v3245_v17   ;;  %v3204_v22 = vld [vmem:[%s4601_s4] ss:$0 sm:$0xff]  ;;  %v3238_v44 = vld [vmem:[%s4601_s4 + $0x3] ss:$0 sm:$0xff]  ;;  %v3217_v56 = vld [vmem:[%s4602_s7 + $0x1] ss:$0 sm:$0xff] }
  0x76   : > { %3358 = vmatmul.mubr.msk.f32.vlgmr.msra.gmra.mrb[6].mxu0 %vm809_vm0, %v3235_v8  ;;  %v3206_v51 = vld [vmem:[%s4602_s7] ss:$0 sm:$0xff]  ;;  %v3243_v17 = vld [vmem:[%s4602_s7 + $0x3] ss:$0 sm:$0xff] }
  0x79   : > { %1000 = vperm.xlu0 %3432, %v3208_v18   ;;  %1211 = vperm.xlu1 %3433, %v3221_v19  }
  0x7d   : > { %1422 = vperm.xlu0 %3432, %v3234_v20   ;;  %1633 = vperm.xlu1 %3433, %v3247_v21  }
  0xf0   : > { %v974_v52 = vpop.permute.xlu0 %973  ;;  %v1396_v8 = vpop.permute.xlu1 %1395 }
  0xf4   : > { %v1185_v1 = vpop.permute.xlu0 %1184  ;;  %v1607_v32 = vpop.permute.xlu1 %1606 }
 0x13d   : > { %v879_v25 = vpop.f32.mrb[0].mxu0 }
 0x13e   : > { %v880_v26 = vadd.f32 %v3204_v22, %v879_v25  ;;  %v3323_v27 = vpop.f32.mrb[1].mxu0 }
 0x140   : > { %v883_v30 = vmax.f32 %v880_v26, 0.0 }
 0x141   : > { %v1088_v33 = vpop.f32.mrb[2].mxu0 }
 0x142   : > { %v1089_v34 = vadd.f32 %v3212_v28, %v1088_v33  ;;  %3329 = vmatmul.mubr.msk.f32.vlgmr.msra.gmra.mrb[0].mxu1 %vm893_vm2, %v883_v30  ;;  %v3335_v35 = vpop.f32.mrb[3].mxu0 }
 0x143   : > { %3372 = vmatpush3.bf16.msra.mxu1 %v3371_v29  ;;  %3340 = vmatprep.mubr.msk.f32.mxu1 %vm3638_vm1, %v3637_v2 }
 0x144   : > { %v1092_v38 = vmax.f32 %v1089_v34, 0.0  ;;  %3373 = vmatprep.subr.bf16.mxu1 %v3639_v12 }
 0x145   : > { %v1299_v41 = vpop.f32.mrb[4].mxu0 }
 0x146   : > { %v1300_v42 = vadd.f32 %v3225_v36, %v1299_v41  ;;  %3341 = vmatmul.mubr.msk.f32.vlgmr.msra.gmra.mrb[2].mxu1 %vm893_vm2, %v1092_v38  ;;  %v3347_v43 = vpop.f32.mrb[5].mxu0 }
 0x147   : > { %3375 = vmatpush3.bf16.msra.mxu1 %v3374_v37  ;;  %3352 = vmatprep.mubr.msk.f32.mxu1 %vm3638_vm1, %v3637_v2 }
 0x148   : > { %v1303_v46 = vmax.f32 %v1300_v42, 0.0  ;;  %3376 = vmatprep.subr.bf16.mxu1 %v3639_v12 }
 0x149   : > { %v1510_v47 = vpop.f32.mrb[6].mxu0 }
 0x14a   : > { %v1511_v48 = vadd.f32 %v3238_v44, %v1510_v47  ;;  %3353 = vmatmul.mubr.msk.f32.vlgmr.msra.gmra.mrb[4].mxu1 %vm893_vm2, %v1303_v46  ;;  %v3359_v49 = vpop.f32.mrb[7].mxu0 }
 0x14b   : > { %3378 = vmatpush3.bf16.msra.mxu1 %v3377_v45  ;;  %3364 = vmatprep.mubr.msk.f32.mxu1 %vm3638_vm1, %v3637_v2  ;;  %v3230_v2 = vld [vmem:[%s4602_s7 + $0x2] ss:$0 sm:$0xff] }
 0x14c   : > { %v1514_v50 = vmax.f32 %v1511_v48, 0.0 }
 0x14e   : > { %3365 = vmatmul.mubr.msk.f32.vlgmr.msra.gmra.mrb[6].mxu1 %vm893_vm2, %v1514_v50  ;;  %v1001_v50 = vpop.permute.xlu0 %1000 }
 0x215   : > { %v963_v53 = vpop.f32.mrb[0].mxu1 }
 0x216   : > { %v964_v54 = vadd.f32 %v3206_v51, %v963_v53  ;;  %v3330_v55 = vpop.f32.mrb[1].mxu1 }
 0x218   : > { %v968_v57 = vcombine.high %v964_v54, %v964_v54  ;;  %v976_v58 = vmul.f32 %v974_v52, %v964_v54 }
 0x219   : > { %v1173_v59 = vpop.f32.mrb[2].mxu1 }
 0x21a   : > { %v977_v60 = vmul.f32 %v974_v52, %v968_v57  ;;  %v979_v61 = vsel %vm978_vm3, %v976_v58, 0.0  ;;  %v1174_v62 = vadd.f32 %v3217_v56, %v1173_v59  ;;  %v3342_v63 = vpop.f32.mrb[3].mxu1  ;;  %v1212_v58 = vpop.permute.xlu1 %1211 }
 0x21b   : > { %v980_v0 = vrot.slane %v979_v61, 4 }
 0x21c   : > { %v986_v3 = vsel %vm978_vm3, %v977_v60, 0.0  ;;  %v1178_v4 = vcombine.high %v1174_v62, %v1174_v62  ;;  %v1187_v5 = vmul.f32 %v1185_v1, %v1174_v62 }
 0x21d   : > { %v981_v6 = vadd.f32 %v980_v0, %v979_v61  ;;  %v987_v7 = vrot.slane %v986_v3, 4  ;;  %v1384_v9 = vpop.f32.mrb[4].mxu1 }
 0x21e   : > { %v1188_v10 = vmul.f32 %v1185_v1, %v1178_v4  ;;  %v1189_v11 = vsel %vm978_vm3, %v1187_v5, 0.0  ;;  %v1385_v12 = vadd.f32 %v3230_v2, %v1384_v9  ;;  %v3354_v13 = vpop.f32.mrb[5].mxu1 }
 0x21f   : > { %v982_v14 = vrot.slane %v981_v6, 2  ;;  %v988_v15 = vadd.f32 %v987_v7, %v986_v3  ;;  %v1190_v16 = vrot.slane %v1189_v11, 4 }
 0x220   : > { %v1196_v18 = vsel %vm978_vm3, %v1188_v10, 0.0  ;;  %v1389_v19 = vcombine.high %v1385_v12, %v1385_v12  ;;  %v1398_v20 = vmul.f32 %v1396_v8, %v1385_v12 }
 0x221   : > { %v1191_v21 = vadd.f32 %v1190_v16, %v1189_v11  ;;  %v1197_v22 = vrot.slane %v1196_v18, 4  ;;  %v983_v23 = vadd.f32 %v982_v14, %v981_v6  ;;  %v989_v24 = vrot.slane %v988_v15, 2  ;;  %v1595_v25 = vpop.f32.mrb[6].mxu1  ;;  %v1423_v14 = vpop.permute.xlu0 %1422 }
 0x222   : > { %v1399_v26 = vmul.f32 %v1396_v8, %v1389_v19  ;;  %v1400_v27 = vsel %vm978_vm3, %v1398_v20, 0.0  ;;  %v1596_v28 = vadd.f32 %v3243_v17, %v1595_v25  ;;  %v3366_v29 = vpop.f32.mrb[7].mxu1 }
 0x223   : > { %v1192_v30 = vrot.slane %v1191_v21, 2  ;;  %v1198_v31 = vadd.f32 %v1197_v22, %v1196_v18  ;;  %v984_v33 = vrot.slane %v983_v23, 1  ;;  %v990_v34 = vadd.f32 %v989_v24, %v988_v15 }
 0x224   : > { %v1401_v35 = vrot.slane %v1400_v27, 4  ;;  %v1407_v36 = vsel %vm978_vm3, %v1399_v26, 0.0  ;;  %v1600_v37 = vcombine.high %v1596_v28, %v1596_v28  ;;  %v1609_v38 = vmul.f32 %v1607_v32, %v1596_v28 }
 0x225   : > { %v991_v39 = vrot.slane %v990_v34, 1  ;;  %v1408_v40 = vrot.slane %v1407_v36, 4  ;;  %v1193_v41 = vadd.f32 %v1192_v30, %v1191_v21  ;;  %v1199_v43 = vrot.slane %v1198_v31, 2 }
 0x226   : > { %v1402_v42 = vadd.f32 %v1401_v35, %v1400_v27  ;;  %v1610_v44 = vmul.f32 %v1607_v32, %v1600_v37  ;;  %v1611_v45 = vsel %vm978_vm3, %v1609_v38, 0.0  ;;  %v985_v46 = vadd.f32 %v984_v33, %v983_v23  ;;  %v1634_v27 = vpop.permute.xlu1 %1633 }
 0x227   : > { %v992_v47 = vadd.f32 %v991_v39, %v990_v34  ;;  %v1409_v48 = vadd.f32 %v1408_v40, %v1407_v36  ;;  %v1194_v49 = vrot.slane %v1193_v41, 1  ;;  %v1200_v52 = vadd.f32 %v1199_v43, %v1198_v31 }
 0x228   : > { %v1403_v51 = vrot.slane %v1402_v42, 2  ;;  %v1612_v53 = vrot.slane %v1611_v45, 4  ;;  %v1618_v54 = vsel %vm978_vm3, %v1610_v44, 0.0  ;;  %v1003_v63 = vadd.f32 %v1001_v50, %v985_v46 }
 0x229   : > { %v1004_v55 = vadd.f32 %v1001_v50, %v992_v47  ;;  %v1195_v56 = vadd.f32 %v1194_v49, %v1193_v41  ;;  %v1410_v57 = vrot.slane %v1409_v48, 2  ;;  %v1201_v59 = vrot.slane %v1200_v52, 1 }
 0x22a   : > { %v1404_v60 = vadd.f32 %v1403_v51, %v1402_v42  ;;  %v1613_v61 = vadd.f32 %v1612_v53, %v1611_v45  ;;  %v1619_v62 = vrot.slane %v1618_v54, 4  ;;  %v1005_v12 = vmax.f32 %v1003_v63, 0.0 }
 0x22b   : > { %v1214_v0 = vadd.f32 %v1212_v58, %v1195_v56  ;;  %v1411_v1 = vadd.f32 %v1410_v57, %v1409_v48  ;;  %v1202_v2 = vadd.f32 %v1201_v59, %v1200_v52  ;;  %v1006_v6 = vmax.f32 %v1004_v55, 0.0 }
 0x22c   : > { %v1405_v3 = vrot.slane %v1404_v60, 1  ;;  %v1614_v4 = vrot.slane %v1613_v61, 2  ;;  %v1620_v5 = vadd.f32 %v1619_v62, %v1618_v54 }
 0x22d   : > { %v1412_v7 = vrot.slane %v1411_v1, 1  ;;  %v1215_v8 = vadd.f32 %v1212_v58, %v1202_v2  ;;  %v1216_v13 = vmax.f32 %v1214_v0, 0.0  ;;  %v1643_v21 = vsel %vm1642_vm4, %v1006_v6, %v1005_v12 }
 0x22e   : > { %v1406_v9 = vadd.f32 %v1405_v3, %v1404_v60  ;;  %v1615_v10 = vadd.f32 %v1614_v4, %v1613_v61  ;;  %v1621_v11 = vrot.slane %v1620_v5, 2 }
 0x22f   : > { %v1413_v15 = vadd.f32 %v1412_v7, %v1411_v1  ;;  %v1217_v16 = vmax.f32 %v1215_v8, 0.0 }
 0x230   : > { %v1425_v17 = vadd.f32 %v1423_v14, %v1406_v9  ;;  %v1616_v18 = vrot.slane %v1615_v10, 1  ;;  %v1622_v19 = vadd.f32 %v1621_v11, %v1620_v5 }
 0x231   : > { %v1426_v20 = vadd.f32 %v1423_v14, %v1413_v15  ;;  %v1648_v22 = vsel %vm1647_vm5, %v1217_v16, %v1216_v13 }
 0x232   : > { %v1617_v23 = vadd.f32 %v1616_v18, %v1615_v10  ;;  %v1623_v24 = vrot.slane %v1622_v19, 1  ;;  %v1427_v25 = vmax.f32 %v1425_v17, 0.0  ;;  %v1661_v28 = vsel %vm1660_vm6, %v1643_v21, %v1648_v22 }
 0x233   : > { %v1428_v26 = vmax.f32 %v1426_v20, 0.0 }
 0x234   : > { %v1624_v29 = vadd.f32 %v1623_v24, %v1622_v19  ;;  %v1636_v30 = vadd.f32 %v1634_v27, %v1617_v23 }
 0x235   : > { %v1653_v31 = vsel %vm1652_vm7, %v1428_v26, %v1427_v25 }
 0x236   : > { %v1637_v32 = vadd.f32 %v1634_v27, %v1624_v29  ;;  %v1663_v33 = vsel %vm1662_vm8, %v1661_v28, %v1653_v31  ;;  %v1638_v34 = vmax.f32 %v1636_v30, 0.0 }
 0x238   : > { %v1639_v35 = vmax.f32 %v1637_v32, 0.0 }
 0x23a   : > { %v1658_v36 = vsel %vm1657_vm9, %v1639_v35, %v1638_v34 }
 0x23b   : > { %v1665_v37 = vsel %vm1664_vm10, %v1663_v33, %v1658_v36 }
 0x23c   : > { %1666 = vxpose.xlu0.b32.start.end [1/1] (short) (narrow) %v1665_v37, 8 }
 0x2bc   : > { %v1682_v38 = vpop.trf.xlu0 }
 0x2bd   : > { %1699 = vst.msk [vmem:[%s4603_s14] sm:$0xf] %vm1698_vm11, %v1682_v38 }
 0x2be PF: > { %s4604_s30 = sld [smem:[#allocation14_spill]]  ;;  %v4081_v39 = vld [vmem:[%s3885_s24 + $0x4] ss:$8 sps:$4 sm:$0xff]   ;;  %v4084_v40 = vld [vmem:[%s3885_s24] ss:$8 sps:$4 sm:$0xff]   ;;  %vm1766_vm12 = vcmask 1041408   ;;  %v1743_v56 = vlaneseq }
 0x2bf   : > { %v3641_v42 = vmov 0   ;;  %1919 = vmatprep.subr.bf16.mxu1 %v4081_v39  ;;  %v4091_v45 = vld [vmem:[%s3885_s24 + $0x14] ss:$8 sps:$4 sm:$0xff]   ;;  %v4094_v46 = vld [vmem:[%s3885_s24 + $0x10] ss:$8 sps:$4 sm:$0xff]   ;;  %s4605_s16 = sld [smem:[#allocation15_spill]] }
 0x2c0   : > { %1805 = vmatprep.mubr.bf16.mxu0 %v3641_v42  ;;  %1951 = vmatprep.mubr.bf16.mxu1 %v3641_v42  ;;  %v4108_v51 = vld [vmem:[%s3885_s24 + $0x24] ss:$8 sps:$4 sm:$0xff]   ;;  %v4112_v53 = vld [vmem:[%s3885_s24 + $0x20] ss:$8 sps:$4 sm:$0xff]   ;;  %v4115_v54 = vld [vmem:[%s3885_s24 + $0x34] ss:$8 sps:$4 sm:$0xff]  }
 0x2c1   : > { %3434 = vset.pattern.permute.xlu0 %v3641_v42  ;;  %1920 = vmatpush1.bf16.msra.mxu1 %v4084_v40  ;;  %vm1753_vm13 = vcmask 31744   ;;  %v4123_v55 = vld [vmem:[%s3885_s24 + $0x30] ss:$8 sps:$4 sm:$0xff]   ;;  %v1744_v57 = vshrl.u32 %v1743_v56, 7  ;;  %s4606_s28 = sld [smem:[#allocation19_spill]]  ;;  %vm1847_vm14 = vcmask 523264  }
 0x2c2   : > { %3435 = vset.pattern.permute.xlu1 %v3641_v42  ;;  %1921 = vmatprep.subr.bf16.mxu1 %v4091_v45  ;;  %v1709_v4 = vld [vmem:[%s776_s27] sm:$0x3]  ;;  %s3642_s27 = smov 64   ;;  %s4608_s24 = sld [smem:[#allocation13_spill]]  ;;  %vm2661_vm15 = vcmask 57344  }
 0x2c3   : > { %v4147_v58 = vsub.s32 0, %v1744_v57  ;;  %v4154_v60 = vsub.s32 1, %v1744_v57 }
 0x2c4   : > { %v1724_v41 = vld [vmem:[%s4604_s30] sm:$0xff] }
 0x2c5   : > { %v1726_v43 = vcombine.high %v1724_v41, %v1724_v41  ;;  %v1728_v44 = vpack.c.bf16 %v1724_v41, %v1724_v41  ;;  %v1730_v47 = vld [vmem:[%s4605_s16] sm:$0xff]  ;;  %v1731_v48 = vld [vmem:[%s4605_s16 + $0x8] sm:$0xff]  ;;  %1922 = vmatpush1.bf16.msra.mxu1 %v4094_v46  ;;  %v4173_v8 = vrot.slane %v1709_v4, %v4147_v58  ;;  %v4178_v18 = vrot.slane %v1709_v4, %v4154_v60  ;;  %v1733_v56 = vld [vmem:[%s4605_s16 + $0x18] sm:$0xff] }
 0x2c6   : > { %v1738_v52 = vpack.c.bf16 %v1731_v48, %v1730_v47  ;;  %1923 = vmatprep.subr.bf16.mxu1 %v4108_v51 }
 0x2c7   : > { %v1729_v49 = vpack.c.bf16 %v1726_v43, %v1726_v43  ;;  %v1768_v50 = vsel %vm1766_vm12, %v1728_v44, 0  ;;  %s4607_s14 = scalar_lea.vmem %s4606_s28, %s3912_s19  ;;  %s4611_s28 = sld [smem:[#allocation24_spill]] }
 0x2c8   : > { %v1708_v59 = vld [vmem:[%s4607_s14] sm:$0x3] }
 0x2c9   : > { %3248 = vmatprep.subr.msk.bf16.mxu0 %vm1766_vm12, %v1729_v49  ;;  %1924 = vmatpush1.bf16.msra.mxu1 %v4112_v53  ;;  %v4157_v61 = vrot.slane %v1708_v59, %v4147_v58  ;;  %v4160_v62 = vrot.slane %v1708_v59, %v4154_v60  ;;  %v1734_v59 = vld [vmem:[%s4605_s16 + $0x20] sm:$0xff] }
 0x2ca   : > { %1774 = vmatpush1.bf16.msra.mxu0 %v1768_v50  ;;  %1925 = vmatprep.subr.bf16.mxu1 %v4115_v54 }
 0x2cb   : > { %2055 = vmatprep.subr.bf16.mxu0 %v4081_v39 }
 0x2cd   : > { %3249 = vmatmul.mubr.msk.bf16.vlgmr.msra.gmra.mrb[0].mxu0 %vm1753_vm13, %v1738_v52  ;;  %1926 = vmatpush1.bf16.msra.mxu1 %v4123_v55  ;;  %v1732_v52 = vld [vmem:[%s4605_s16 + $0x10] sm:$0xff] }
 0x2ce   : > { %2056 = vmatpush1.bf16.msra.mxu0 %v4084_v40  ;;  %1815 = vmatprep.mubr.bf16.mxu0 %v3641_v42  ;;  %v1739_v57 = vpack.c.bf16 %v1733_v56, %v1732_v52 }
 0x2cf   : > { %2057 = vmatprep.subr.bf16.mxu0 %v4091_v45  ;;  %1987 = vmatprep.subr.bf16.mxu1 %v4081_v39 }
 0x2d0   : > { %1952 = vmatmul.mubr.bf16.vlgmr.msra.gmra.mrb[0].mxu1 %v3641_v42 }
 0x2d1   : > { %1988 = vmatpush1.bf16.msra.mxu1 %v4084_v40  ;;  %2019 = vmatprep.mubr.bf16.mxu1 %v3641_v42 }
 0x2d2   : > { %2058 = vmatpush1.bf16.msra.mxu0 %v4094_v46  ;;  %1989 = vmatprep.subr.bf16.mxu1 %v4091_v45 }
 0x2d3   : > { %2059 = vmatprep.subr.bf16.mxu0 %v4108_v51 }
 0x2d5   : > { %1990 = vmatpush1.bf16.msra.mxu1 %v4094_v46  ;;  %3250 = vmatmul.mubr.msk.bf16.gmra.mrb[4].mxu0 %vm1753_vm13, %v1739_v57 }
 0x2d6   : > { %2060 = vmatpush1.bf16.msra.mxu0 %v4112_v53  ;;  %1991 = vmatprep.subr.bf16.mxu1 %v4108_v51 }
 0x2d7   : > { %2061 = vmatprep.subr.bf16.mxu0 %v4115_v54  ;;  %1825 = vmatprep.mubr.bf16.mxu0 %v3641_v42 }
 0x2d9   : > { %1992 = vmatpush1.bf16.msra.mxu1 %v4112_v53 }
 0x2da   : > { %2062 = vmatpush1.bf16.msra.mxu0 %v4123_v55  ;;  %1993 = vmatprep.subr.bf16.mxu1 %v4115_v54 }
 0x2db   : > { %2191 = vmatprep.subr.bf16.mxu0 %v4081_v39 }
 0x2dd   : > { %1994 = vmatpush1.bf16.msra.mxu1 %v4123_v55 }
 0x2de   : > { %2123 = vmatprep.subr.bf16.mxu1 %v4081_v39 }
 0x3a0   : > { %v1807_v63 = vpop.f32.mrb[0].mxu0 }
 0x3a1   : > { %v1808_v0 = vadd.f32 %v1807_v63, %v4157_v61  ;;  %v1809_v1 = vpop.f32.mrb[1].mxu0  ;;  %v1735_v63 = vld [vmem:[%s4605_s16 + $0x28] sm:$0xff] }
 0x3a2   : > { %v1810_v2 = vadd.f32 %v1809_v1, %v4160_v62  ;;  %v1811_v3 = vpop.f32.mrb[2].mxu0  ;;  %v1740_v1 = vpack.c.bf16 %v1735_v63, %v1734_v59 }
 0x3a3   : > { %v1812_v5 = vadd.f32 %v1811_v3, %v4157_v61  ;;  %v1813_v6 = vpop.f32.mrb[3].mxu0  ;;  %v1953_v9 = vpop.f32.mrb[0].mxu1  ;;  %v4218_v3 = vld [vmem:[%s4605_s16 + $0x38] sm:$0xff] }
 0x3a4   : > { %1848 = vst.msk [vmem:[#allocation2 + $0x8] sm:$0xff] %vm1847_vm14, %v1810_v2  ;;  %v1814_v7 = vadd.f32 %v1813_v6, %v4160_v62  ;;  %v1954_v10 = vadd.f32 %v1953_v9, %v4173_v8  ;;  %v1955_v11 = vpop.f32.mrb[1].mxu1  ;;  %3251 = vmatmul.mubr.msk.bf16.gmra.mrb[8].mxu0 %vm1753_vm13, %v1740_v1  ;;  %v1736_v2 = vld [vmem:[%s4605_s16 + $0x30] sm:$0xff] }
 0x3a5   : > { %v1957_v12 = vpop.f32.mrb[2].mxu1  ;;  %v1956_v19 = vadd.f32 %v1955_v11, %v4178_v18  ;;  %1835 = vmatprep.mubr.bf16.mxu0 %v3641_v42  ;;  %v1741_v4 = vpack.c.bf16 %v4218_v3, %v1736_v2 }
 0x3a6   : > { %1850 = vst.msk [vmem:[#allocation2 + $0x18] sm:$0xff] %vm1847_vm14, %v1814_v7  ;;  %v1960_v13 = vadd.f32 %v1954_v10, %v1808_v0  ;;  %v1958_v14 = vpop.f32.mrb[3].mxu1 }
 0x3a8   : > { %v3261_v15 = vmul.f32 -1.442695, %v1960_v13  ;;  %v1817_v12 = vpop.f32.mrb[4].mxu0 }
 0x3a9   : > { %v1818_v13 = vadd.f32 %v1817_v12, %v4157_v61  ;;  %v1819_v14 = vpop.f32.mrb[5].mxu0 }
 0x3aa   : > { %3461 = vpow2.f32 %v3261_v15  ;;  %v1820_v15 = vadd.f32 %v1819_v14, %v4160_v62 }
 0x3ab   : > { %v1864_v22 = vld [vmem:[#allocation2 + $0x8] sm:$0xff] }
 0x3ac   : > { %3252 = vmatmul.mubr.msk.bf16.gmra.mrb[12].mxu0 %vm1753_vm13, %v1741_v4  ;;  %1852 = vst.msk [vmem:[#allocation2 + $0x28] sm:$0xff] %vm1847_vm14, %v1820_v15 }
 0x3ad   : > { %v1979_v49 = vld [vmem:[#allocation2 + $0x18] sm:$0xff]  ;;  %2087 = vmatprep.mubr.bf16.mxu0 %v3641_v42 }
 0x3b3   : > { %v2047_v57 = vld [vmem:[#allocation2 + $0x28] sm:$0xff] }
 0x3b4   : > { %v3462_v16 = vpop.eup %3461 }
 0x3b5   : > { %v1964_v17 = vadd.f32 1.0, %v3462_v16  ;;  %v1821_v16 = vpop.f32.mrb[6].mxu0 }
 0x3b7   : > { %3463 = vrcp.f32 %v1964_v17  ;;  %v4231_v17 = vadd.f32 %v1821_v16, %v4157_v61 }
 0x3c1   : > { %v3464_v20 = vpop.eup %3463 }
 0x3c2   : > { %v1967_v21 = vmul.f32 %v3464_v20, %v1956_v19  ;;  %v1970_v25 = vsub.f32 1.0, %v3464_v20  ;;  %v1976_v27 = vmul.f32 0.0, %v3464_v20  ;;  %v1823_v19 = vpop.f32.mrb[7].mxu0 }
 0x3c3   : > { %v1824_v20 = vadd.f32 %v1823_v19, %v4160_v62 }
 0x3c4   : > { %v1968_v23 = vadd.f32 %v1967_v21, %v1864_v22 }
 0x3c5   : > { %1854 = vst.msk [vmem:[#allocation2 + $0x38] sm:$0xff] %vm1847_vm14, %v1824_v20 }
 0x3c6   : > { %3465 = vtanh.f32 %v1968_v23 }
 0x3d0   : > { %v3466_v24 = vpop.eup %3465 }
 0x3d1   : > { %1972 = vrot.lane.b32.xlu0 %v3466_v24, %s3642_s27 }
 0x443   : > { %v1973_v26 = vpop.permute.xlu0 %1972 }
 0x444   : > { %v1975_v28 = vmul.f32 %v1973_v26, %v1970_v25 }
 0x446   : > { %v1977_v29 = vadd.f32 %v1976_v27, %v1975_v28 }
 0x448   : > { %v1980_v30 = vpack.c.bf16 %v1977_v29, %v1977_v29 }
 0x44a   : > { %1982 = vrot.lane.b32.xlu0 %v1980_v30, %s3642_s27 }
 0x477   : > { %v1827_v21 = vpop.f32.mrb[8].mxu0 }
 0x478   : > { %v4237_v22 = vadd.f32 %v1827_v21, %v4157_v61  ;;  %v1829_v23 = vpop.f32.mrb[9].mxu0 }
 0x479   : > { %v1830_v24 = vadd.f32 %v1829_v23, %v4160_v62  ;;  %v1831_v25 = vpop.f32.mrb[10].mxu0 }
 0x47a   : > { %v4241_v26 = vadd.f32 %v1831_v25, %v4157_v61  ;;  %v1833_v27 = vpop.f32.mrb[11].mxu0 }
 0x47b   : > { %1856 = vst.msk [vmem:[#allocation2 + $0x48] sm:$0xff] %vm1847_vm14, %v1830_v24  ;;  %v1834_v28 = vadd.f32 %v1833_v27, %v4160_v62  ;;  %v2115_v24 = vld [vmem:[#allocation2 + $0x38] sm:$0xff] }
 0x47d   : > { %1858 = vst.msk [vmem:[#allocation2 + $0x58] sm:$0xff] %vm1847_vm14, %v1834_v28 }
 0x4bc   : > { %v1983_v31 = vpop.permute.xlu0 %1982 }
 0x4bd   : > { %3262 = vmatmul.mubr.msk.bf16.vlgmr.msra.gmra.mrb[4].mxu1 %vm1847_vm14, %v1983_v31 }
 0x4be   : > { %2124 = vmatpush1.bf16.msra.mxu1 %v4084_v40  ;;  %2155 = vmatprep.mubr.bf16.mxu1 %v3641_v42 }
 0x4bf   : > { %2125 = vmatprep.subr.bf16.mxu1 %v4091_v45 }
 0x4c2   : > { %2126 = vmatpush1.bf16.msra.mxu1 %v4094_v46 }
 0x4c3   : > { %2127 = vmatprep.subr.bf16.mxu1 %v4108_v51 }
 0x4c6   : > { %2128 = vmatpush1.bf16.msra.mxu1 %v4112_v53 }
 0x4c7   : > { %2129 = vmatprep.subr.bf16.mxu1 %v4115_v54 }
 0x4ca   : > { %2130 = vmatpush1.bf16.msra.mxu1 %v4123_v55 }
 0x4cb   : > { %2259 = vmatprep.subr.bf16.mxu1 %v4081_v39 }
 0x590   : > { %v2021_v32 = vpop.f32.mrb[4].mxu1 }
 0x591   : > { %v2022_v33 = vadd.f32 %v2021_v32, %v4173_v8  ;;  %v2023_v34 = vpop.f32.mrb[5].mxu1 }
 0x592   : > { %v2025_v35 = vpop.f32.mrb[6].mxu1  ;;  %v2024_v44 = vadd.f32 %v2023_v34, %v4178_v18 }
 0x593   : > { %v2028_v36 = vadd.f32 %v2022_v33, %v1812_v5  ;;  %v2026_v37 = vpop.f32.mrb[7].mxu1 }
 0x595   : > { %v3263_v38 = vmul.f32 -1.442695, %v2028_v36 }
 0x597   : > { %3467 = vpow2.f32 %v3263_v38 }
 0x5a1   : > { %v3468_v41 = vpop.eup %3467 }
 0x5a2   : > { %v2032_v43 = vadd.f32 1.0, %v3468_v41 }
 0x5a4   : > { %3469 = vrcp.f32 %v2032_v43 }
 0x5ae   : > { %v3470_v47 = vpop.eup %3469 }
 0x5af   : > { %v2035_v48 = vmul.f32 %v3470_v47, %v2024_v44  ;;  %v2038_v5 = vsub.f32 1.0, %v3470_v47  ;;  %v2044_v7 = vmul.f32 %v3470_v47, %v1977_v29  ;;  %v1837_v29 = vpop.f32.mrb[12].mxu0 }
 0x5b0   : > { %v4247_v30 = vadd.f32 %v1837_v29, %v4157_v61  ;;  %v1839_v31 = vpop.f32.mrb[13].mxu0 }
 0x5b1   : > { %v2036_v50 = vadd.f32 %v2035_v48, %v1979_v49  ;;  %v1840_v32 = vadd.f32 %v1839_v31, %v4160_v62  ;;  %v1841_v33 = vpop.f32.mrb[14].mxu0 }
 0x5b2   : > { %v4251_v34 = vadd.f32 %v1841_v33, %v4157_v61  ;;  %v1843_v35 = vpop.f32.mrb[15].mxu0 }
 0x5b3   : > { %3471 = vtanh.f32 %v2036_v50  ;;  %1860 = vst.msk [vmem:[#allocation2 + $0x68] sm:$0xff] %vm1847_vm14, %v1840_v32  ;;  %v1844_v36 = vadd.f32 %v1843_v35, %v4160_v62 }
 0x5b5   : > { %1862 = vst.msk [vmem:[#allocation2 + $0x78] sm:$0xff] %vm1847_vm14, %v1844_v36 }
 0x5bd   : > { %v3472_v0 = vpop.eup %3471 }
 0x5be   : > { %2040 = vrot.lane.b32.xlu1 %v3472_v0, %s3642_s27 }
 0x630   : > { %v2041_v6 = vpop.permute.xlu1 %2040 }
 0x631   : > { %v2043_v9 = vmul.f32 %v2041_v6, %v2038_v5 }
 0x633   : > { %v4223_v10 = vadd.f32 %v2044_v7, %v2043_v9 }
 0x635   : > { %v2048_v11 = vpack.c.bf16 %v4223_v10, %v4223_v10 }
 0x637   : > { %2050 = vrot.lane.b32.xlu1 %v2048_v11, %s3642_s27 }
 0x6a9   : > { %v2051_v37 = vpop.permute.xlu1 %2050 }
 0x6aa   : > { %3264 = vmatmul.mubr.msk.bf16.vlgmr.msra.gmra.mrb[16].mxu0 %vm1847_vm14, %v2051_v37 }
 0x6ab   : > { %2192 = vmatpush1.bf16.msra.mxu0 %v4084_v40  ;;  %2223 = vmatprep.mubr.bf16.mxu0 %v3641_v42 }
 0x6ac   : > { %2193 = vmatprep.subr.bf16.mxu0 %v4091_v45 }
 0x6af   : > { %2194 = vmatpush1.bf16.msra.mxu0 %v4094_v46 }
 0x6b0   : > { %2195 = vmatprep.subr.bf16.mxu0 %v4108_v51 }
 0x6b3   : > { %2196 = vmatpush1.bf16.msra.mxu0 %v4112_v53 }
 0x6b4   : > { %2197 = vmatprep.subr.bf16.mxu0 %v4115_v54 }
 0x6b7   : > { %2198 = vmatpush1.bf16.msra.mxu0 %v4123_v55 }
 0x6b8   : > { %2327 = vmatprep.subr.bf16.mxu0 %v4081_v39 }
 0x77d   : > { %v2089_v61 = vpop.f32.mrb[16].mxu0 }
 0x77e   : > { %v2090_v62 = vadd.f32 %v2089_v61, %v4173_v8  ;;  %v2091_v38 = vpop.f32.mrb[17].mxu0 }
 0x77f   : > { %v2093_v41 = vpop.f32.mrb[18].mxu0  ;;  %v2092_v50 = vadd.f32 %v2091_v38, %v4178_v18 }
 0x780   : > { %v2096_v43 = vadd.f32 %v2090_v62, %v1818_v13  ;;  %v2094_v44 = vpop.f32.mrb[19].mxu0 }
 0x782   : > { %v3265_v47 = vmul.f32 -1.442695, %v2096_v43 }
 0x784   : > { %3473 = vpow2.f32 %v3265_v47 }
 0x78e   : > { %v3474_v48 = vpop.eup %3473 }
 0x78f   : > { %v2100_v49 = vadd.f32 1.0, %v3474_v48 }
 0x791   : > { %3475 = vrcp.f32 %v2100_v49 }
 0x79b   : > { %v3476_v52 = vpop.eup %3475 }
 0x79c   : > { %v2103_v56 = vmul.f32 %v3476_v52, %v2092_v50  ;;  %v2106_v0 = vsub.f32 1.0, %v3476_v52  ;;  %v2112_v2 = vmul.f32 %v3476_v52, %v4223_v10  ;;  %v2183_v50 = vld [vmem:[#allocation2 + $0x48] sm:$0xff] }
 0x79e   : > { %v2104_v59 = vadd.f32 %v2103_v56, %v2047_v57 }
 0x7a0   : > { %3477 = vtanh.f32 %v2104_v59 }
 0x7aa   : > { %v3478_v63 = vpop.eup %3477 }
 0x7ab   : > { %2108 = vrot.lane.b32.xlu0 %v3478_v63, %s3642_s27 }
 0x81d   : > { %v2109_v1 = vpop.permute.xlu0 %2108 }
 0x81e   : > { %v2111_v4 = vmul.f32 %v2109_v1, %v2106_v0 }
 0x820   : > { %v2113_v5 = vadd.f32 %v2112_v2, %v2111_v4 }
 0x822   : > { %v2116_v6 = vpack.c.bf16 %v2113_v5, %v2113_v5 }
 0x824   : > { %2118 = vrot.lane.b32.xlu1 %v2116_v6, %s3642_s27 }
 0x896   : > { %v2119_v7 = vpop.permute.xlu1 %2118 }
 0x897   : > { %3266 = vmatmul.mubr.msk.bf16.vlgmr.msra.gmra.mrb[8].mxu1 %vm1847_vm14, %v2119_v7 }
 0x898   : > { %2260 = vmatpush1.bf16.msra.mxu1 %v4084_v40  ;;  %2291 = vmatprep.mubr.bf16.mxu1 %v3641_v42 }
 0x899   : > { %2261 = vmatprep.subr.bf16.mxu1 %v4091_v45 }
 0x89c   : > { %2262 = vmatpush1.bf16.msra.mxu1 %v4094_v46 }
 0x89d   : > { %2263 = vmatprep.subr.bf16.mxu1 %v4108_v51 }
 0x8a0   : > { %2264 = vmatpush1.bf16.msra.mxu1 %v4112_v53 }
 0x8a1   : > { %2265 = vmatprep.subr.bf16.mxu1 %v4115_v54 }
 0x8a4   : > { %2266 = vmatpush1.bf16.msra.mxu1 %v4123_v55 }
 0x8a5   : > { %2395 = vmatprep.subr.bf16.mxu1 %v4081_v39 }
 0x96a   : > { %v2157_v9 = vpop.f32.mrb[8].mxu1 }
 0x96b   : > { %v2158_v10 = vadd.f32 %v2157_v9, %v4173_v8  ;;  %v2159_v11 = vpop.f32.mrb[9].mxu1 }
 0x96c   : > { %v2161_v12 = vpop.f32.mrb[10].mxu1  ;;  %v2160_v20 = vadd.f32 %v2159_v11, %v4178_v18 }
 0x96d   : > { %v2164_v13 = vadd.f32 %v2158_v10, %v4231_v17  ;;  %v2162_v14 = vpop.f32.mrb[11].mxu1 }
 0x96f   : > { %v3267_v15 = vmul.f32 -1.442695, %v2164_v13 }
 0x971   : > { %3479 = vpow2.f32 %v3267_v15 }
 0x97b   : > { %v3480_v16 = vpop.eup %3479 }
 0x97c   : > { %v2168_v19 = vadd.f32 1.0, %v3480_v16 }
 0x97e   : > { %3481 = vrcp.f32 %v2168_v19 }
 0x988   : > { %v3482_v21 = vpop.eup %3481 }
 0x989   : > { %v2171_v23 = vmul.f32 %v3482_v21, %v2160_v20  ;;  %v2174_v27 = vsub.f32 1.0, %v3482_v21  ;;  %v2180_v29 = vmul.f32 %v3482_v21, %v2113_v5 }
 0x98b   : > { %v2172_v25 = vadd.f32 %v2171_v23, %v2115_v24 }
 0x98d   : > { %3483 = vtanh.f32 %v2172_v25 }
 0x997   : > { %v3484_v39 = vpop.eup %3483 }
 0x998   : > { %2176 = vrot.lane.b32.xlu0 %v3484_v39, %s3642_s27 }
 0xa0a   : > { %v2177_v28 = vpop.permute.xlu0 %2176 }
 0xa0b   : > { %v2179_v17 = vmul.f32 %v2177_v28, %v2174_v27 }
 0xa0d   : > { %v2181_v31 = vadd.f32 %v2180_v29, %v2179_v17 }
 0xa0f   : > { %v2184_v32 = vpack.c.bf16 %v2181_v31, %v2181_v31 }
 0xa11   : > { %2186 = vrot.lane.b32.xlu1 %v2184_v32, %s3642_s27 }
 0xa83   : > { %v2187_v33 = vpop.permute.xlu1 %2186 }
 0xa84   : > { %3268 = vmatmul.mubr.msk.bf16.vlgmr.msra.gmra.mrb[20].mxu0 %vm1847_vm14, %v2187_v33 }
 0xa85   : > { %2328 = vmatpush1.bf16.msra.mxu0 %v4084_v40  ;;  %2359 = vmatprep.mubr.bf16.mxu0 %v3641_v42 }
 0xa86   : > { %2329 = vmatprep.subr.bf16.mxu0 %v4091_v45 }
 0xa89   : > { %2330 = vmatpush1.bf16.msra.mxu0 %v4094_v46 }
 0xa8a   : > { %2331 = vmatprep.subr.bf16.mxu0 %v4108_v51 }
 0xa8d   : > { %2332 = vmatpush1.bf16.msra.mxu0 %v4112_v53 }
 0xa8e   : > { %2333 = vmatprep.subr.bf16.mxu0 %v4115_v54 }
 0xa91   : > { %2334 = vmatpush1.bf16.msra.mxu0 %v4123_v55 }
 0xb57   : > { %v2225_v35 = vpop.f32.mrb[20].mxu0 }
 0xb58   : > { %v2226_v36 = vadd.f32 %v2225_v35, %v4173_v8  ;;  %v2227_v37 = vpop.f32.mrb[21].mxu0  ;;  %v2319_v35 = vld [vmem:[#allocation2 + $0x68] sm:$0xff] }
 0xb59   : > { %v2229_v61 = vpop.f32.mrb[22].mxu0  ;;  %v2228_v47 = vadd.f32 %v2227_v37, %v4178_v18 }
 0xb5a   : > { %v2232_v62 = vadd.f32 %v2226_v36, %v4237_v22  ;;  %v2230_v38 = vpop.f32.mrb[23].mxu0 }
 0xb5c   : > { %v3269_v41 = vmul.f32 -1.442695, %v2232_v62 }
 0xb5e   : > { %3485 = vpow2.f32 %v3269_v41 }
 0xb68   : > { %v3486_v43 = vpop.eup %3485 }
 0xb69   : > { %v2236_v44 = vadd.f32 1.0, %v3486_v43 }
 0xb6b   : > { %3487 = vrcp.f32 %v2236_v44 }
 0xb75   : > { %v3488_v48 = vpop.eup %3487 }
 0xb76   : > { %v2239_v49 = vmul.f32 %v3488_v48, %v2228_v47  ;;  %v2242_v57 = vsub.f32 1.0, %v3488_v48  ;;  %v2248_v63 = vmul.f32 %v3488_v48, %v2181_v31 }
 0xb78   : > { %v2240_v52 = vadd.f32 %v2239_v49, %v2183_v50 }
 0xb7a   : > { %3489 = vtanh.f32 %v2240_v52 }
 0xb84   : > { %v3490_v56 = vpop.eup %3489 }
 0xb85   : > { %2244 = vrot.lane.b32.xlu0 %v3490_v56, %s3642_s27 }
 0xbf7   : > { %v2245_v59 = vpop.permute.xlu0 %2244 }
 0xbf8   : > { %v2247_v22 = vmul.f32 %v2245_v59, %v2242_v57 }
 0xbfa   : > { %v2249_v0 = vadd.f32 %v2248_v63, %v2247_v22 }
 0xbfc   : > { %v2252_v1 = vpack.c.bf16 %v2249_v0, %v2249_v0 }
 0xbfe   : > { %2254 = vrot.lane.b32.xlu1 %v2252_v1, %s3642_s27 }
 0xc70   : > { %v2255_v2 = vpop.permute.xlu1 %2254 }
 0xc71   : > { %3270 = vmatmul.mubr.msk.bf16.vlgmr.msra.gmra.mrb[12].mxu1 %vm1847_vm14, %v2255_v2 }
 0xc72   : > { %2396 = vmatpush1.bf16.msra.mxu1 %v4084_v40  ;;  %2427 = vmatprep.mubr.bf16.mxu1 %v3641_v42 }
 0xc73   : > { %2397 = vmatprep.subr.bf16.mxu1 %v4091_v45 }
 0xc76   : > { %2398 = vmatpush1.bf16.msra.mxu1 %v4094_v46 }
 0xc77   : > { %2399 = vmatprep.subr.bf16.mxu1 %v4108_v51 }
 0xc7a   : > { %2400 = vmatpush1.bf16.msra.mxu1 %v4112_v53 }
 0xc7b   : > { %2401 = vmatprep.subr.bf16.mxu1 %v4115_v54  ;;  %v2251_v54 = vld [vmem:[#allocation2 + $0x58] sm:$0xff] }
 0xc7e   : > { %2402 = vmatpush1.bf16.msra.mxu1 %v4123_v55 }
 0xd44   : > { %v2293_v4 = vpop.f32.mrb[12].mxu1 }
 0xd45   : > { %v2294_v5 = vadd.f32 %v2293_v4, %v4173_v8  ;;  %v2295_v6 = vpop.f32.mrb[13].mxu1  ;;  %v3449_v4 = vld [vmem:[%s4608_s24 + $0x4] ss:$8 sps:$4 sm:$0xff]  }
 0xd46   : > { %v2297_v7 = vpop.f32.mrb[14].mxu1  ;;  %v2296_v51 = vadd.f32 %v2295_v6, %v4178_v18  ;;  %2544 = vmatprep.subr.bf16.mxu0 %v3449_v4  ;;  %2679 = vmatprep.subr.bf16.mxu1 %v3449_v4  ;;  %v4335_v6 = vld [vmem:[%s4608_s24 + $0x10] ss:$8 sps:$4 sm:$0xff]  }
 0xd47   : > { %v2300_v40 = vadd.f32 %v2294_v5, %v4241_v26  ;;  %v2298_v9 = vpop.f32.mrb[15].mxu1  ;;  %v4328_v5 = vld [vmem:[%s4608_s24] ss:$8 sps:$4 sm:$0xff]  }
 0xd48   : > { %v4350_v9 = vld [vmem:[%s4608_s24 + $0x34] ss:$8 sps:$4 sm:$0xff]  }
 0xd49   : > { %v3271_v10 = vmul.f32 -1.442695, %v2300_v40  ;;  %v4346_v40 = vld [vmem:[%s4608_s24 + $0x20] ss:$8 sps:$4 sm:$0xff]  }
 0xd4b   : > { %3491 = vpow2.f32 %v3271_v10  ;;  %v4356_v10 = vld [vmem:[%s4608_s24 + $0x30] ss:$8 sps:$4 sm:$0xff]  }
 0xd55   : > { %v3492_v45 = vpop.eup %3491 }
 0xd56   : > { %v2304_v46 = vadd.f32 1.0, %v3492_v45 }
 0xd58   : > { %3493 = vrcp.f32 %v2304_v46 }
 0xd62   : > { %v3494_v53 = vpop.eup %3493 }
 0xd63   : > { %v2307_v11 = vmul.f32 %v3494_v53, %v2296_v51  ;;  %v2310_v13 = vsub.f32 1.0, %v3494_v53  ;;  %v2316_v15 = vmul.f32 %v3494_v53, %v2249_v0 }
 0xd65   : > { %v2308_v12 = vadd.f32 %v2307_v11, %v2251_v54 }
 0xd67   : > { %3495 = vtanh.f32 %v2308_v12  ;;  %v3286_v12 = vld [vmem:[%s791_s29] ss:$0 sm:$0xff] }
 0xd71   : > { %v3496_v55 = vpop.eup %3495 }
 0xd72   : > { %2312 = vrot.lane.b32.xlu0 %v3496_v55, %s3642_s27  ;;  %v1710_v55 = vld [vmem:[%s780_s22] sm:$0x3] }
 0xde4   : > { %v2313_v14 = vpop.permute.xlu0 %2312 }
 0xde5   : > { %v2315_v26 = vmul.f32 %v2313_v14, %v2310_v13  ;;  %v4386_v13 = vrot.slane %v1710_v55, %v4147_v58  ;;  %v1719_v14 = vld [vmem:[%s784_s21] sm:$0x3] }
 0xde7   : > { %v2317_v16 = vadd.f32 %v2316_v15, %v2315_v26  ;;  %v1720_v26 = vld [vmem:[%s788_s23] sm:$0x3]  ;;  %s4609_s23 = sld [smem:[#allocation16_spill]] }
 0xde9   : > { %v2320_v19 = vpack.c.bf16 %v2317_v16, %v2317_v16 }
 0xdeb   : > { %2322 = vrot.lane.b32.xlu1 %v2320_v19, %s3642_s27 }
 0xe5d   : > { %v2323_v20 = vpop.permute.xlu1 %2322 }
 0xe5e   : > { %3272 = vmatmul.mubr.msk.bf16.vlgmr.msra.gmra.mrb[24].mxu0 %vm1847_vm14, %v2323_v20  ;;  %v4403_v20 = vrot.slane %v1720_v26, %v4147_v58 }
 0xe5f   : > { %2576 = vmatprep.mubr.bf16.mxu0 %v3641_v42  ;;  %2545 = vmatpush1.bf16.msra.mxu0 %v4328_v5 }
 0xf31   : > { %v2361_v21 = vpop.f32.mrb[24].mxu0 }
 0xf32   : > { %v2362_v23 = vadd.f32 %v2361_v21, %v4173_v8  ;;  %v2363_v24 = vpop.f32.mrb[25].mxu0 }
 0xf33   : > { %v2365_v25 = vpop.f32.mrb[26].mxu0  ;;  %v2364_v31 = vadd.f32 %v2363_v24, %v4178_v18 }
 0xf34   : > { %v2368_v39 = vadd.f32 %v2362_v23, %v4247_v30  ;;  %v2366_v27 = vpop.f32.mrb[27].mxu0 }
 0xf36   : > { %v3273_v28 = vmul.f32 -1.442695, %v2368_v39 }
 0xf38   : > { %3497 = vpow2.f32 %v3273_v28 }
 0xf42   : > { %v3498_v29 = vpop.eup %3497 }
 0xf43   : > { %v2372_v17 = vadd.f32 1.0, %v3498_v29 }
 0xf45   : > { %3499 = vrcp.f32 %v2372_v17 }
 0xf4f   : > { %v3500_v32 = vpop.eup %3499 }
 0xf50   : > { %v2375_v33 = vmul.f32 %v3500_v32, %v2364_v31  ;;  %v2378_v61 = vsub.f32 1.0, %v3500_v32  ;;  %v2384_v38 = vmul.f32 %v3500_v32, %v2317_v16  ;;  %v4399_v16 = vrot.slane %v1719_v14, %v4147_v58 }
 0xf51   : > { %v4408_v32 = vrot.slane %v1710_v55, %v4154_v60  ;;  %v4411_v58 = vrot.slane %v1720_v26, %v4154_v60 }
 0xf52   : > { %v2376_v36 = vadd.f32 %v2375_v33, %v2319_v35  ;;  %v4414_v33 = vrot.slane %v1719_v14, %v4154_v60 }
 0xf54   : > { %3501 = vtanh.f32 %v2376_v36 }
 0xf5e   : > { %v3502_v37 = vpop.eup %3501 }
 0xf5f   : > { %2380 = vrot.lane.b32.xlu0 %v3502_v37, %s3642_s27 }
 0xfd1   : > { %v2381_v62 = vpop.permute.xlu0 %2380 }
 0xfd2   : > { %v2383_v30 = vmul.f32 %v2381_v62, %v2378_v61 }
 0xfd4   : > { %v2385_v41 = vadd.f32 %v2384_v38, %v2383_v30 }
 0xfd6   : > { %v2388_v43 = vpack.c.bf16 %v2385_v41, %v2385_v41 }
 0xfd8   : > { %2390 = vrot.lane.b32.xlu1 %v2388_v43, %s3642_s27 }
0x104a   : > { %v2391_v44 = vpop.permute.xlu1 %2390 }
0x104b   : > { %3274 = vmatmul.mubr.msk.bf16.vlgmr.msra.gmra.mrb[16].mxu1 %vm1847_vm14, %v2391_v44 }
0x104c   : > { %2711 = vmatprep.mubr.bf16.mxu1 %v3641_v42  ;;  %2680 = vmatpush1.bf16.msra.mxu1 %v4328_v5 }
0x111e   : > { %v2429_v47 = vpop.f32.mrb[16].mxu1 }
0x111f   : > { %v2430_v48 = vadd.f32 %v2429_v47, %v4173_v8  ;;  %v2431_v49 = vpop.f32.mrb[17].mxu1  ;;  %v2387_v8 = vld [vmem:[#allocation2 + $0x78] sm:$0xff] }
0x1120   : > { %v2433_v50 = vpop.f32.mrb[18].mxu1  ;;  %v2432_v22 = vadd.f32 %v2431_v49, %v4178_v18  ;;  %v4340_v18 = vld [vmem:[%s4608_s24 + $0x24] ss:$8 sps:$4 sm:$0xff]  }
0x1121   : > { %v2436_v52 = vadd.f32 %v2430_v48, %v4251_v34  ;;  %v2434_v56 = vpop.f32.mrb[19].mxu1  ;;  %v4331_v34 = vld [vmem:[%s4608_s24 + $0x14] ss:$8 sps:$4 sm:$0xff]  }
0x1122   : > { %2546 = vmatprep.subr.bf16.mxu0 %v4331_v34  ;;  %2681 = vmatprep.subr.bf16.mxu1 %v4331_v34 }
0x1123   : > { %v3275_v57 = vmul.f32 -1.442695, %v2436_v52  ;;  %2547 = vmatpush1.bf16.msra.mxu0 %v4335_v6  ;;  %2682 = vmatpush1.bf16.msra.mxu1 %v4335_v6 }
0x1124   : > { %2548 = vmatprep.subr.bf16.mxu0 %v4340_v18  ;;  %2683 = vmatprep.subr.bf16.mxu1 %v4340_v18 }
0x1125   : > { %3503 = vpow2.f32 %v3275_v57 }
0x1127   : > { %2549 = vmatpush1.bf16.msra.mxu0 %v4346_v40  ;;  %2684 = vmatpush1.bf16.msra.mxu1 %v4346_v40 }
0x1128   : > { %2550 = vmatprep.subr.bf16.mxu0 %v4350_v9  ;;  %2685 = vmatprep.subr.bf16.mxu1 %v4350_v9 }
0x112b   : > { %2551 = vmatpush1.bf16.msra.mxu0 %v4356_v10  ;;  %2686 = vmatpush1.bf16.msra.mxu1 %v4356_v10 }
0x112c   : > { %2799 = vmatprep.subr.bf16.mxu0 %v3449_v4  ;;  %2919 = vmatprep.subr.bf16.mxu1 %v3449_v4 }
0x112f   : > { %v3504_v59 = vpop.eup %3503 }
0x1130   : > { %v2440_v63 = vadd.f32 1.0, %v3504_v59 }
0x1132   : > { %3505 = vrcp.f32 %v2440_v63 }
0x113c   : > { %v3506_v0 = vpop.eup %3505 }
0x113d   : > { %v2443_v1 = vmul.f32 %v3506_v0, %v2432_v22  ;;  %v2446_v45 = vsub.f32 1.0, %v3506_v0  ;;  %v2452_v51 = vmul.f32 %v3506_v0, %v2385_v41 }
0x113f   : > { %v2444_v2 = vadd.f32 %v2443_v1, %v2387_v8 }
0x1141   : > { %3507 = vtanh.f32 %v2444_v2 }
0x114b   : > { %v3508_v7 = vpop.eup %3507 }
0x114c   : > { %2448 = vrot.lane.b32.xlu0 %v3508_v7, %s3642_s27 }
0x1150   : > { %2457 = vperm.xlu0 %3434, %v4218_v3  }
0x1154   : > { %2608 = vrot.lane.b32.xlu0 %v3286_v12, %s3642_s27 }
0x11be   : > { %v2449_v46 = vpop.permute.xlu0 %2448 }
0x11bf   : > { %v2451_v53 = vmul.f32 %v2449_v46, %v2446_v45 }
0x11c1   : > { %v2453_v11 = vadd.f32 %v2452_v51, %v2451_v53 }
0x11c3   : > { %v2486_v3 = vpack.c.bf16 %v2453_v11, %v2453_v11 }
0x11c5   : > { %2499 = vrot.lane.b32.xlu1 %v2486_v3, %s3642_s27 }
0x11cf   : > { %v2458_v15 = vpop.permute.xlu0 %2457 }
0x11d0   : > { %v2471_v19 = vmul.f32 %v4386_v13, %v2458_v15  ;;  %v2472_v35 = vmul.f32 %v4408_v32, %v2458_v15 }
0x11d2   : > { %v2484_v21 = vadd.f32 %v4399_v16, %v2471_v19  ;;  %v2485_v61 = vadd.f32 %v4414_v33, %v2472_v35 }
0x11d3   : > { %v4420_v49 = vpop.permute.xlu0 %2608 }
0x1237   : > { %v2500_v54 = vpop.permute.xlu1 %2499 }
0x1238   : > { %3284 = vmatmul.mubr.msk.bf16.vlgmr.msra.gmra.mrb[28].mxu0 %vm1847_vm14, %v2500_v54 }
0x1239   : > { %2800 = vmatpush1.bf16.msra.mxu0 %v4328_v5  ;;  %2831 = vmatprep.mubr.bf16.mxu0 %v3641_v42 }
0x123a   : > { %2801 = vmatprep.subr.bf16.mxu0 %v4331_v34 }
0x123d   : > { %2802 = vmatpush1.bf16.msra.mxu0 %v4335_v6 }
0x123e   : > { %2803 = vmatprep.subr.bf16.mxu0 %v4340_v18 }
0x1241   : > { %2804 = vmatpush1.bf16.msra.mxu0 %v4346_v40 }
0x1242   : > { %2805 = vmatprep.subr.bf16.mxu0 %v4350_v9 }
0x1245   : > { %2806 = vmatpush1.bf16.msra.mxu0 %v4356_v10 }
0x130b   : > { %v2578_v23 = vpop.f32.mrb[28].mxu0 }
0x130c   : > { %v2579_v24 = vadd.f32 %v2578_v23, %v4403_v20  ;;  %v2580_v25 = vpop.f32.mrb[29].mxu0 }
0x130d   : > { %v2582_v39 = vpop.f32.mrb[30].mxu0  ;;  %v2581_v36 = vadd.f32 %v2580_v25, %v4411_v58 }
0x130e   : > { %v2585_v27 = vadd.f32 %v2579_v24, %v2484_v21  ;;  %v2583_v28 = vpop.f32.mrb[31].mxu0 }
0x1310   : > { %v3285_v29 = vmul.f32 -1.442695, %v2585_v27 }
0x1312   : > { %3509 = vpow2.f32 %v3285_v29 }
0x131c   : > { %v3510_v17 = vpop.eup %3509 }
0x131d   : > { %v2589_v31 = vadd.f32 1.0, %v3510_v17 }
0x131f   : > { %3511 = vrcp.f32 %v2589_v31 }
0x1329   : > { %v3512_v37 = vpop.eup %3511 }
0x132a   : > { %v2592_v62 = vmul.f32 %v3512_v37, %v2581_v36  ;;  %v2595_v41 = vsub.f32 1.0, %v3512_v37  ;;  %v2601_v44 = vmul.f32 %v3512_v37, %v2453_v11 }
0x132c   : > { %v2593_v38 = vadd.f32 %v2592_v62, %v2485_v61 }
0x132e   : > { %3513 = vtanh.f32 %v2593_v38 }
0x1338   : > { %v3514_v30 = vpop.eup %3513 }
0x1339   : > { %2597 = vrot.lane.b32.xlu1 %v3514_v30, %s3642_s27 }
0x13ab   : > { %v2598_v43 = vpop.permute.xlu1 %2597 }
0x13ac   : > { %v2600_v47 = vmul.f32 %v2598_v43, %v2595_v41 }
0x13ae   : > { %v2602_v48 = vadd.f32 %v2601_v44, %v2600_v47 }
0x13b0   : > { %v2672_v60 = vpack.c.bf16 %v2602_v48, %v2602_v48  ;;  %v2611_v50 = vmul.f32 %v4420_v49, %v2602_v48 }
0x13b2   : > { %2674 = vrot.lane.b32.xlu1 %v2672_v60, %s3642_s27 }
0x13b6   : > { %2613 = vrot.lane.b32.xlu1 %v2611_v50, %s3642_s27 }
0x1424   : > { %v2675_v52 = vpop.permute.xlu1 %2674 }
0x1425   : > { %3288 = vmatmul.mubr.msk.bf16.vlgmr.msra.gmra.mrb[20].mxu1 %vm1847_vm14, %v2675_v52 }
0x1426   : > { %2920 = vmatpush1.bf16.msra.mxu1 %v4328_v5  ;;  %2951 = vmatprep.mubr.bf16.mxu1 %v3641_v42  ;;  %v4440_v42 = vld [vmem:[%s794_s20] ss:$0 sm:$0xff]  ;;  %s4610_s20 = scalar_lea.vmem %s4609_s23, %s3899_s18 }
0x1427   : > { %2921 = vmatprep.subr.bf16.mxu1 %v4331_v34 }
0x1428   : > { %v2614_v56 = vpop.permute.xlu1 %2613 }
0x1429   : > { %v2616_v57 = vsel %vm1847_vm14, %v2614_v56, 0.0 }
0x142a   : > { %2617 = vadd.xlane.f32.xlu0 %v2616_v57  ;;  %2922 = vmatpush1.bf16.msra.mxu1 %v4335_v6 }
0x142b   : > { %2923 = vmatprep.subr.bf16.mxu1 %v4340_v18 }
0x142e   : > { %2924 = vmatpush1.bf16.msra.mxu1 %v4346_v40 }
0x142f   : > { %2925 = vmatprep.subr.bf16.mxu1 %v4350_v9 }
0x1432   : > { %2926 = vmatpush1.bf16.msra.mxu1 %v4356_v10 }
0x14b7   : > { %v2618_v59 = vpop.xlane.xlu0 %2617 }
0x14b8   : > { %v4443_v63 = vadd.f32 %v4440_v42, %v2618_v59 }
0x14ba   : > { %2665 = vperm.xlu1 %3435, %v4443_v63  }
0x14f8   : > { %v2713_v22 = vpop.f32.mrb[20].mxu1 }
0x14f9   : > { %v2715_v0 = vpop.f32.mrb[21].mxu1  ;;  %v2714_v5 = vadd.f32 %v2713_v22, %v4403_v20 }
0x14fa   : > { %v2717_v1 = vpop.f32.mrb[22].mxu1  ;;  %v2716_v10 = vadd.f32 %v2715_v0, %v4411_v58 }
0x14fb   : > { %v2718_v8 = vpop.f32.mrb[23].mxu1 }
0x1539   : > { %v2666_v2 = vpop.permute.xlu1 %2665 }
0x153a   : > { %v2668_v4 = vmul.f32 %v2666_v2, %v4386_v13  ;;  %v2669_v9 = vmul.f32 %v2666_v2, %v4408_v32 }
0x153c   : > { %v2670_v34 = vadd.f32 %v2668_v4, %v4399_v16  ;;  %v2671_v46 = vadd.f32 %v2669_v9, %v4414_v33 }
0x153e   : > { %v2720_v6 = vadd.f32 %v2714_v5, %v2670_v34 }
0x1540   : > { %v3289_v18 = vmul.f32 -1.442695, %v2720_v6 }
0x1542   : > { %3515 = vpow2.f32 %v3289_v18 }
0x154c   : > { %v3516_v7 = vpop.eup %3515 }
0x154d   : > { %v2724_v40 = vadd.f32 1.0, %v3516_v7 }
0x154f   : > { %3517 = vrcp.f32 %v2724_v40 }
0x1559   : > { %v3518_v45 = vpop.eup %3517 }
0x155a   : > { %v2727_v51 = vmul.f32 %v3518_v45, %v2716_v10  ;;  %v2730_v3 = vsub.f32 1.0, %v3518_v45  ;;  %v2736_v12 = vmul.f32 %v3518_v45, %v2602_v48 }
0x155c   : > { %v2728_v53 = vadd.f32 %v2727_v51, %v2671_v46 }
0x155e   : > { %3519 = vtanh.f32 %v2728_v53 }
0x1568   : > { %v3520_v11 = vpop.eup %3519 }
0x1569   : > { %2732 = vrot.lane.b32.xlu1 %v3520_v11, %s3642_s27 }
0x15db   : > { %v2733_v54 = vpop.permute.xlu1 %2732 }
0x15dc   : > { %v2735_v55 = vmul.f32 %v2733_v54, %v2730_v3 }
0x15de   : > { %v2737_v14 = vadd.f32 %v2736_v12, %v2735_v55 }
0x15e0   : > { %v2792_v15 = vpack.c.bf16 %v2737_v14, %v2737_v14  ;;  %v2738_v26 = vmul.f32 %v2737_v14, %v4420_v49 }
0x15e2   : > { %2794 = vrot.lane.b32.xlu1 %v2792_v15, %s3642_s27 }
0x15e6   : > { %2740 = vrot.lane.b32.xlu1 %v2738_v26, %s3642_s27 }
0x1654   : > { %v2795_v19 = vpop.permute.xlu1 %2794 }
0x1655   : > { %3290 = vmatmul.mubr.msk.bf16.vlgmr.msra.gmra.mrb[32].mxu0 %vm1847_vm14, %v2795_v19 }
0x1658   : > { %v2741_v21 = vpop.permute.xlu1 %2740 }
0x1659   : > { %v2743_v23 = vsel %vm1847_vm14, %v2741_v21, 0.0 }
0x165a   : > { %2744 = vadd.xlane.f32.xlu1 %v2743_v23  ;;  %v2626_v23 = vld [vmem:[%s4611_s28] sm:$0x1] }
0x16e7   : > { %v2745_v24 = vpop.xlane.xlu1 %2744 }
0x16e8   : > { %v4459_v25 = vadd.f32 %v4440_v42, %v2745_v24 }
0x16ea   : > { %2785 = vperm.xlu0 %3434, %v4459_v25  }
0x1728   : > { %v2833_v39 = vpop.f32.mrb[32].mxu0 }
0x1729   : > { %v2835_v27 = vpop.f32.mrb[33].mxu0  ;;  %v2834_v35 = vadd.f32 %v2833_v39, %v4403_v20 }
0x172a   : > { %v2837_v28 = vpop.f32.mrb[34].mxu0  ;;  %v2836_v41 = vadd.f32 %v2835_v27, %v4411_v58 }
0x172b   : > { %v2838_v29 = vpop.f32.mrb[35].mxu0 }
0x1769   : > { %v2786_v17 = vpop.permute.xlu0 %2785 }
0x176a   : > { %v2788_v31 = vmul.f32 %v2786_v17, %v4386_v13  ;;  %v2789_v30 = vmul.f32 %v2786_v17, %v4408_v32 }
0x176c   : > { %v2790_v36 = vadd.f32 %v2788_v31, %v4399_v16  ;;  %v2791_v44 = vadd.f32 %v2789_v30, %v4414_v33 }
0x176e   : > { %v2840_v37 = vadd.f32 %v2834_v35, %v2790_v36  ;;  %v2747_v36 = vld [vmem:[%s4611_s28 + $0x1] sm:$0x1] }
0x1770   : > { %v3291_v61 = vmul.f32 -1.442695, %v2840_v37 }
0x1772   : > { %3521 = vpow2.f32 %v3291_v61 }
0x177c   : > { %v3522_v62 = vpop.eup %3521 }
0x177d   : > { %v2844_v38 = vadd.f32 1.0, %v3522_v62 }
0x177f   : > { %3523 = vrcp.f32 %v2844_v38 }
0x1789   : > { %v3524_v43 = vpop.eup %3523 }
0x178a   : > { %v2847_v47 = vmul.f32 %v3524_v43, %v2836_v41  ;;  %v2850_v50 = vsub.f32 1.0, %v3524_v43  ;;  %v2856_v56 = vmul.f32 %v3524_v43, %v2737_v14 }
0x178c   : > { %v2848_v48 = vadd.f32 %v2847_v47, %v2791_v44 }
0x178e   : > { %3525 = vtanh.f32 %v2848_v48 }
0x1798   : > { %v3526_v60 = vpop.eup %3525 }
0x1799   : > { %2852 = vrot.lane.b32.xlu1 %v3526_v60, %s3642_s27 }
0x180b   : > { %v2853_v52 = vpop.permute.xlu1 %2852 }
0x180c   : > { %v2855_v57 = vmul.f32 %v2853_v52, %v2850_v50 }
0x180e   : > { %v2857_v59 = vadd.f32 %v2856_v56, %v2855_v57 }
0x1810   : > { %v2912_v22 = vpack.c.bf16 %v2857_v59, %v2857_v59  ;;  %v2858_v0 = vmul.f32 %v2857_v59, %v4420_v49 }
0x1812   : > { %2914 = vrot.lane.b32.xlu0 %v2912_v22, %s3642_s27 }
0x1816   : > { %2860 = vrot.lane.b32.xlu0 %v2858_v0, %s3642_s27 }
0x1884   : > { %v2915_v1 = vpop.permute.xlu0 %2914 }
0x1885   : > { %3292 = vmatmul.mubr.msk.bf16.vlgmr.msra.gmra.mrb[24].mxu1 %vm1847_vm14, %v2915_v1 }
0x1888   : > { %v2861_v8 = vpop.permute.xlu0 %2860 }
0x1889   : > { %v2863_v2 = vsel %vm1847_vm14, %v2861_v8, 0.0 }
0x188a   : > { %2864 = vadd.xlane.f32.xlu0 %v2863_v2 }
0x18b7   : > { %2627 = vxpose.xlu0.b32.start.end [1/1] (short) (narrow) %v4443_v63, 8 }
0x1917   : > { %v2865_v4 = vpop.xlane.xlu0 %2864 }
0x1918   : > { %v2866_v5 = vadd.f32 %v4440_v42, %v2865_v4 }
0x191a   : > { %2868 = vxpose.xlu0.b32.start.end [1/1] (short) (narrow) %v2866_v5, 8  ;;  %2905 = vperm.xlu1 %3435, %v2866_v5  }
0x1937   : > { %v2643_v24 = vpop.trf.xlu0 }
0x1958   : > { %v2953_v34 = vpop.f32.mrb[24].mxu1 }
0x1959   : > { %v2955_v6 = vpop.f32.mrb[25].mxu1  ;;  %v2954_v10 = vadd.f32 %v2953_v34, %v4403_v20 }
0x195a   : > { %v2957_v18 = vpop.f32.mrb[26].mxu1  ;;  %v2956_v3 = vadd.f32 %v2955_v6, %v4411_v58 }
0x195b   : > { %v2958_v7 = vpop.f32.mrb[27].mxu1 }
0x1999   : > { %v2906_v40 = vpop.permute.xlu1 %2905 }
0x199a   : > { %v2908_v9 = vmul.f32 %v2906_v40, %v4386_v13  ;;  %v2909_v11 = vmul.f32 %v2906_v40, %v4408_v32  ;;  %v2884_v28 = vpop.trf.xlu0 }
0x199c   : > { %v2910_v45 = vadd.f32 %v2908_v9, %v4399_v16  ;;  %v2911_v12 = vadd.f32 %v2909_v11, %v4414_v33  ;;  %v1723_v33 = vld [vmem:[%s4610_s20] sm:$0x1] }
0x199d   : > { %v2659_v39 = vmul.f32 %v2643_v24, %v1723_v33  ;;  %v2900_v29 = vmul.f32 %v2884_v28, %v1723_v33 }
0x199e   : > { %v2960_v46 = vadd.f32 %v2954_v10, %v2910_v45 }
0x199f   : > { %v2660_v27 = vadd.f32 %v2659_v39, %v2626_v23 }
0x19a0   : > { %v3293_v51 = vmul.f32 -1.442695, %v2960_v46 }
0x19a1   : > { %2662 = vst.msk [vmem:[%s4611_s28] sm:$0x1] %vm2661_vm15, %v2660_v27 }
0x19a2   : > { %3527 = vpow2.f32 %v3293_v51 }
0x19ac   : > { %v3528_v63 = vpop.eup %3527 }
0x19ad   : > { %v2964_v53 = vadd.f32 1.0, %v3528_v63 }
0x19af   : > { %3529 = vrcp.f32 %v2964_v53 }
0x19b9   : > { %v3530_v54 = vpop.eup %3529 }
0x19ba   : > { %v2967_v55 = vmul.f32 %v3530_v54, %v2956_v3  ;;  %v2970_v16 = vsub.f32 1.0, %v3530_v54  ;;  %v2976_v15 = vmul.f32 %v3530_v54, %v2857_v59 }
0x19bc   : > { %v2968_v13 = vadd.f32 %v2967_v55, %v2911_v12 }
0x19be   : > { %3531 = vtanh.f32 %v2968_v13 }
0x19c8   : > { %v3532_v20 = vpop.eup %3531 }
0x19c9   : > { %2972 = vrot.lane.b32.xlu1 %v3532_v20, %s3642_s27 }
0x1a3b   : > { %v2973_v14 = vpop.permute.xlu1 %2972 }
0x1a3c   : > { %v2975_v26 = vmul.f32 %v2973_v14, %v2970_v16 }
0x1a3e   : > { %v2977_v19 = vadd.f32 %v2976_v15, %v2975_v26 }
0x1a40   : > { %v2978_v21 = vmul.f32 %v2977_v19, %v4420_v49  ;;  %v2867_v49 = vld [vmem:[%s4611_s28 + $0x2] sm:$0x1] }
0x1a41   : > { %v2901_v17 = vadd.f32 %v2900_v29, %v2867_v49 }
0x1a42   : > { %2980 = vrot.lane.b32.xlu1 %v2978_v21, %s3642_s27 }
0x1a43   : > { %2902 = vst.msk [vmem:[%s4611_s28 + $0x2] sm:$0x1] %vm2661_vm15, %v2901_v17 }
0x1ab4   : > { %v2981_v32 = vpop.permute.xlu1 %2980 }
0x1ab5   : > { %v2983_v58 = vsel %vm1847_vm14, %v2981_v32, 0.0 }
0x1ab6   : > { %2984 = vadd.xlane.f32.xlu1 %v2983_v58 }
0x1ae9   : > { %2748 = vxpose.xlu1.b32.start.end [1/1] (short) (narrow) %v4459_v25, 8  ;;  %v2987_v25 = vld [vmem:[%s4611_s28 + $0x3] sm:$0x1] }
0x1b43   : > { %v2985_v31 = vpop.xlane.xlu1 %2984 }
0x1b44   : > { %v2986_v35 = vadd.f32 %v4440_v42, %v2985_v31 }
0x1b46   : > { %2988 = vxpose.xlu0.b32.start.end [1/1] (short) (narrow) %v2986_v35, 8 }
0x1b69   : > { %v2764_v37 = vpop.trf.xlu1 }
0x1b6a   : > { %v2780_v61 = vmul.f32 %v2764_v37, %v1723_v33 }
0x1b6c   : > { %v2781_v62 = vadd.f32 %v2780_v61, %v2747_v36 }
0x1b6e   : > { %2782 = vst.msk [vmem:[%s4611_s28 + $0x1] sm:$0x1] %vm2661_vm15, %v2781_v62 }
0x1bc6   : > { %v3004_v38 = vpop.trf.xlu0 }
0x1bc7   : > { %v3020_v30 = vmul.f32 %v3004_v38, %v1723_v33 }
0x1bc9   : > { %v3021_v42 = vadd.f32 %v3020_v30, %v2987_v25 }
0x1bcb   : > { %3022 = vst.msk [vmem:[%s4611_s28 + $0x3] sm:$0x1] %vm2661_vm15, %v3021_v42 }
0x1bcc PF: > { %s4612_s21 = sld [smem:[#allocation11_spill]]  ;;  %s4613_s0 = sld [smem:[#allocation9_spill]] }
0x1bcd   : > { %s4614_s30 = sld [smem:[#allocation10_spill]]  ;;  %s4615_s20 = sld [smem:[#allocation12_spill]] }
0x1bd2   : > { %p32_p3 = scmp.ge.s32.totalorder %s4612_s21, 12  }
0x1bd4   :  { %34 = sbr.rel (!%p32_p3) target bundleno = 16 (0x10), region = 197 }
0x1bdb   :  { %3034 = vsyncpa [#allocation4], 1 }
0x1bdc   :  { %3036 = vsyncpa [#allocation4 + $0x1], 1 }
0x1bdd   :  { %3037 = vsyncpa [#allocation6], 1 }
0x1bde   :  { %3039 = vsyncpa [#allocation6 + $0x1], 1 }

</bundles_post_ra>
